<compile_context>
chip_gen: v7x
topology: tpu7x:2x2x1
jax: 0.10.0
libtpu: 0.0.40
codegen_flags: <defaults>
</compile_context>

<pallas_src>
import functools

import jax
import jax.numpy as jnp
from jax.experimental import pallas as pl
from jax.experimental.pallas import tpu as pltpu


# ----------------------------------------------------------------------------
# Pallas kernel: fused  out = act(W @ cols + b)  on the MXU.
#   W    : (R, K)  bf16   (R = Cout or 4*Cout, small -> single full block)
#   cols : (K, M)  bf16   (M = N*D*H*W on the lane axis, tiled at 512)
#   b    : (R, 1)  f32
#   out  : (R, M)  f32    (lane-dense stores)
# ----------------------------------------------------------------------------
def _gemm_bias_act_kernel(w_ref, x_ref, b_ref, o_ref, *, relu):
    acc = jnp.dot(w_ref[...], x_ref[...], preferred_element_type=jnp.float32)
    acc = acc + b_ref[...]
    if relu:
        acc = jnp.maximum(acc, 0.0)
    o_ref[...] = acc


def gemm_bias_act(wmat, cols, bias, relu):
    R, K = wmat.shape
    K2, M = cols.shape
    assert K == K2
    tn = M                                   # fall back to a single block
    for cand in (512, 256, 128):
        if M % cand == 0:
            tn = cand
            break
    return pl.pallas_call(
        functools.partial(_gemm_bias_act_kernel, relu=relu),
        out_shape=jax.ShapeDtypeStruct((R, M), jnp.float32),
        grid=(M // tn,),
        in_specs=[pl.BlockSpec((R, K), lambda j: (0, 0)),
                  pl.BlockSpec((K, tn), lambda j: (0, j)),
                  pl.BlockSpec((R, 1), lambda j: (0, 0))],
        out_specs=pl.BlockSpec((R, tn), lambda j: (0, j)),
        compiler_params=pltpu.CompilerParams(
            dimension_semantics=("parallel",),
            vmem_limit_bytes=32 * 1024 * 1024),
    )(wmat, cols, bias.reshape(R, 1).astype(jnp.float32))


# ----------------------------------------------------------------------------
# Conv glue (all activations kept in (C, N, D, H, W) layout)
# ----------------------------------------------------------------------------
def conv3d(x, w, b, relu):
    """x: (Cin, N, D, H, W) f32; w: (Cout, Cin, 3, 3, 3); stride 1, 'same' pad."""
    Cin, N, D, H, W = x.shape
    Cout, _, kd, kh, kw = w.shape
    pd, ph, pw = kd // 2, kh // 2, kw // 2
    xp = jnp.pad(x, ((0, 0), (0, 0), (pd, pd), (ph, ph), (pw, pw)))
    xp = xp.astype(jnp.bfloat16)             # halve im2col HBM bytes
    # TODO(synk): build these patches inside the Pallas pipeline (shifted
    # windows / K-split accumulation) instead of materializing the 27x slab.
    taps = [xp[:, :, a:a + D, e:e + H, f:f + W]
            for a in range(kd) for e in range(kh) for f in range(kw)]
    cols = jnp.stack(taps, axis=1).reshape(Cin * kd * kh * kw, N * D * H * W)
    wmat = w.reshape(Cout, Cin * kd * kh * kw).astype(jnp.bfloat16)
    out = gemm_bias_act(wmat, cols, b, relu)
    return out.reshape(Cout, N, D, H, W)


def conv_transpose3d_up(x, w, b):
    """ConvTranspose3d(kernel=(3,2,2), stride=(1,2,2), padding=(1,0,0)) via a
    sub-pixel decomposition.  x: (Cin,N,D,H,W); w: (Cin,Cout,3,2,2) (torch)."""
    Cin, N, D, H, W = x.shape
    _, Cout, kd, kh, kw = w.shape
    # depth-only im2col (kd=3, pad 1): 3x input, shared by all 4 (e,f) phases
    xp = jnp.pad(x, ((0, 0), (0, 0), (1, 1), (0, 0), (0, 0))).astype(jnp.bfloat16)
    cols = jnp.stack([xp[:, :, a:a + D] for a in range(kd)], axis=1)
    cols = cols.reshape(Cin * kd, N * D * H * W)
    # combined phase weights: rows ordered (co, e, f); depth flipped (transposed conv)
    wmat = jnp.transpose(jnp.flip(w, axis=2), (1, 3, 4, 0, 2))   # (Co,kh,kw,Cin,kd)
    wmat = wmat.reshape(Cout * kh * kw, Cin * kd).astype(jnp.bfloat16)
    bias = jnp.repeat(b, kh * kw)
    g = gemm_bias_act(wmat, cols, bias, relu=False)              # (Co*4, M)
    g = g.reshape(Cout, kh, kw, N, D, H, W)
    g = jnp.transpose(g, (0, 3, 4, 5, 1, 6, 2))                  # (Co,N,D,H,e,W,f)
    return g.reshape(Cout, N, D, H * kh, W * kw)


def maxpool_1_2_2(x):
    # MaxPool3d(kernel=(1,2,2), stride=(1,2,2)) -- cheap XLA reshape/max.
    C, N, D, H, W = x.shape
    return jnp.max(x.reshape(C, N, D, H // 2, 2, W // 2, 2), axis=(4, 6))


# ----------------------------------------------------------------------------
# UNet forward (matches model.py: DownConv / UpConv(num_block=0) / final_conv)
# ----------------------------------------------------------------------------
def unet_forward(x, params):
    """x: (N, 3, D, H, W), the PyTorch NCDHW convention."""
    h = jnp.transpose(x, (1, 0, 2, 3, 4))                # -> (C, N, D, H, W)
    n_down = len(params['down'])
    enc = []
    for i, dc in enumerate(params['down']):
        h = conv3d(h, dc['c1_w'], dc['c1_b'], relu=True)
        h = conv3d(h, dc['c2_w'], dc['c2_b'], relu=True)
        enc.append(h)                                     # before_pool
        if i < n_down - 1:                                # pooling flag
            h = maxpool_1_2_2(h)
    for i, uc in enumerate(params['up']):
        skip = enc[-(i + 2)]             # UpConv(num_block=0): resnet_blocks = identity
        up = conv_transpose3d_up(h, uc['up_w'], uc['up_b'])
        h = jnp.concatenate([up, skip], axis=0)           # cat((from_up, from_down), C)
        h = conv3d(h, uc['c1_w'], uc['c1_b'], relu=True)
        h = conv3d(h, uc['c2_w'], uc['c2_b'], relu=True)
    out = conv3d(h, params['fin_w'], params['fin_b'], relu=False)
    return jnp.transpose(out, (1, 0, 2, 3, 4))            # back to NCDHW


# ----------------------------------------------------------------------------
# Deterministic parameter init
# ----------------------------------------------------------------------------
def init_params(key, channel=8, depth=2):
    cnt = [0]

    def nrm(shape, scale=0.05):
        k = jax.random.fold_in(key, cnt[0])
        cnt[0] += 1
        return (scale * jax.random.normal(k, shape)).astype(jnp.float32)

    down = []
    outs = channel
    for i in range(depth):
        ins = 3 if i == 0 else outs
        outs = channel * 2 ** i
        down.append(dict(
            c1_w=nrm((outs, ins, 3, 3, 3)), c1_b=nrm((outs,)),
            c2_w=nrm((outs, outs, 3, 3, 3)), c2_b=nrm((outs,))))
    up = []
    for _ in range(depth - 1):
        ins = outs
        outs = ins // 2
        up.append(dict(
            up_w=nrm((ins, outs, 3, 2, 2)), up_b=nrm((outs,)),       # ConvTranspose3d layout
            c1_w=nrm((outs, 2 * outs, 3, 3, 3)), c1_b=nrm((outs,)),
            c2_w=nrm((outs, outs, 3, 3, 3)), c2_b=nrm((outs,))))
    return dict(down=down, up=up,
                fin_w=nrm((3, channel, 3, 3, 3)), fin_b=nrm((3,)))


if __name__ == "__main__":
    key = jax.random.PRNGKey(0)
    params = init_params(jax.random.fold_in(key, 1), channel=8, depth=2)
    # NCDHW input matching nn.Conv3d: (N=2, C=3, D=4, H=16, W=16)
    x = jax.random.normal(jax.random.fold_in(key, 2),
                          (2, 3, 4, 16, 16), dtype=jnp.float32)

    fwd = jax.jit(unet_forward)
    out = jax.block_until_ready(fwd(x, params))
    assert out.shape == (2, 3, 4, 16, 16), out.shape
    assert bool(jnp.all(jnp.isfinite(out)))
    print("KERNEL_OK")
</pallas_src>

<mosaic_0001>
module attributes {stable_mosaic.version = 11 : i64} {
  func.func @_gemm_bias_act_kernel(%arg0: i32, %arg1: memref<8x81xbf16, #tpu.memory_space<vmem>>, %arg2: memref<81x512xbf16, #tpu.memory_space<vmem>>, %arg3: memref<8x1xf32, #tpu.memory_space<vmem>>, %arg4: memref<8x512xf32, #tpu.memory_space<vmem>>) attributes {dimension_semantics = [#tpu.dimension_semantics<parallel>], iteration_bounds = array<i64: 4>, scalar_prefetch = 0 : i64, scratch_operands = 0 : i64, tpu.core_type = #tpu.core_type<tc>, window_params = [{pipeline_mode = #tpu.pipeline_mode<synchronous>, transform_indices = @transform_0, window_bounds = array<i64: 8, 81>}, {transform_indices = @transform_1, window_bounds = array<i64: 81, 512>}, {pipeline_mode = #tpu.pipeline_mode<synchronous>, transform_indices = @transform_2, window_bounds = array<i64: 8, 1>}, {transform_indices = @transform_3, window_bounds = array<i64: 8, 512>}]} {
    %c0 = arith.constant 0 : index
    %c0_0 = arith.constant 0 : index
    %0 = vector.load %arg1[%c0, %c0_0] : memref<8x81xbf16, #tpu.memory_space<vmem>>, vector<8x81xbf16>
    %c0_1 = arith.constant 0 : index
    %c0_2 = arith.constant 0 : index
    %1 = vector.load %arg2[%c0_1, %c0_2] : memref<81x512xbf16, #tpu.memory_space<vmem>>, vector<81x512xbf16>
    %cst = arith.constant dense<0.000000e+00> : vector<8x512xf32>
    %2 = tpu.matmul %0, %1, %cst {dimension_numbers = #tpu.dot_dimension_numbers<[1], [0], [0], [1], [0, 0, 1, 1], [], []>} : vector<8x81xbf16>, vector<81x512xbf16>, vector<8x512xf32> -> vector<8x512xf32>
    %c0_3 = arith.constant 0 : index
    %c0_4 = arith.constant 0 : index
    %3 = vector.load %arg3[%c0_3, %c0_4] : memref<8x1xf32, #tpu.memory_space<vmem>>, vector<8x1xf32>
    %4 = vector.broadcast %3 : vector<8x1xf32> to vector<8x512xf32>
    %5 = arith.addf %2, %4 : vector<8x512xf32>
    %cst_5 = arith.constant 0.000000e+00 : f32
    %6 = vector.broadcast %cst_5 : f32 to vector<8x512xf32>
    %7 = arith.maximumf %5, %6 : vector<8x512xf32>
    %c0_6 = arith.constant 0 : index
    %c0_7 = arith.constant 0 : index
    %8 = vector.load %arg4[%c0_6, %c0_7] : memref<8x512xf32, #tpu.memory_space<vmem>>, vector<8x512xf32>
    tpu.vector_store %arg4[%c0_6, %c0_7], %7 {strides = array<i32>} : memref<8x512xf32, #tpu.memory_space<vmem>>, vector<8x512xf32>,
    return
  }
  func.func @transform_0(%arg0: i32) -> (i32, i32) {
    %c0_i32 = arith.constant 0 : i32
    %c0_i32_0 = arith.constant 0 : i32
    %c0_i32_1 = arith.constant 0 : i32
    return %c0_i32, %c0_i32_0 : i32, i32
  }
  func.func @transform_1(%arg0: i32) -> (i32, i32) {
    %c0_i32 = arith.constant 0 : i32
    %c0_i32_0 = arith.constant 0 : i32
    return %c0_i32, %arg0 : i32, i32
  }
  func.func @transform_2(%arg0: i32) -> (i32, i32) {
    %c0_i32 = arith.constant 0 : i32
    %c0_i32_0 = arith.constant 0 : i32
    %c0_i32_1 = arith.constant 0 : i32
    return %c0_i32, %c0_i32_0 : i32, i32
  }
  func.func @transform_3(%arg0: i32) -> (i32, i32) {
    %c0_i32 = arith.constant 0 : i32
    %c0_i32_0 = arith.constant 0 : i32
    return %c0_i32, %arg0 : i32, i32
  }
}

module attributes {stable_mosaic.version = 11 : i64} {
  func.func @_gemm_bias_act_kernel(%arg0: i32, %arg1: memref<8x216xbf16, #tpu.memory_space<vmem>>, %arg2: memref<216x512xbf16, #tpu.memory_space<vmem>>, %arg3: memref<8x1xf32, #tpu.memory_space<vmem>>, %arg4: memref<8x512xf32, #tpu.memory_space<vmem>>) attributes {dimension_semantics = [#tpu.dimension_semantics<parallel>], iteration_bounds = array<i64: 4>, scalar_prefetch = 0 : i64, scratch_operands = 0 : i64, tpu.core_type = #tpu.core_type<tc>, window_params = [{pipeline_mode = #tpu.pipeline_mode<synchronous>, transform_indices = @transform_0, window_bounds = array<i64: 8, 216>}, {transform_indices = @transform_1, window_bounds = array<i64: 216, 512>}, {pipeline_mode = #tpu.pipeline_mode<synchronous>, transform_indices = @transform_2, window_bounds = array<i64: 8, 1>}, {transform_indices = @transform_3, window_bounds = array<i64: 8, 512>}]} {
    %c0 = arith.constant 0 : index
    %c0_0 = arith.constant 0 : index
    %0 = vector.load %arg1[%c0, %c0_0] : memref<8x216xbf16, #tpu.memory_space<vmem>>, vector<8x216xbf16>
    %c0_1 = arith.constant 0 : index
    %c0_2 = arith.constant 0 : index
    %1 = vector.load %arg2[%c0_1, %c0_2] : memref<216x512xbf16, #tpu.memory_space<vmem>>, vector<216x512xbf16>
    %cst = arith.constant dense<0.000000e+00> : vector<8x512xf32>
    %2 = tpu.matmul %0, %1, %cst {dimension_numbers = #tpu.dot_dimension_numbers<[1], [0], [0], [1], [0, 0, 1, 1], [], []>} : vector<8x216xbf16>, vector<216x512xbf16>, vector<8x512xf32> -> vector<8x512xf32>
    %c0_3 = arith.constant 0 : index
    %c0_4 = arith.constant 0 : index
    %3 = vector.load %arg3[%c0_3, %c0_4] : memref<8x1xf32, #tpu.memory_space<vmem>>, vector<8x1xf32>
    %4 = vector.broadcast %3 : vector<8x1xf32> to vector<8x512xf32>
    %5 = arith.addf %2, %4 : vector<8x512xf32>
    %cst_5 = arith.constant 0.000000e+00 : f32
    %6 = vector.broadcast %cst_5 : f32 to vector<8x512xf32>
    %7 = arith.maximumf %5, %6 : vector<8x512xf32>
    %c0_6 = arith.constant 0 : index
    %c0_7 = arith.constant 0 : index
    %8 = vector.load %arg4[%c0_6, %c0_7] : memref<8x512xf32, #tpu.memory_space<vmem>>, vector<8x512xf32>
    tpu.vector_store %arg4[%c0_6, %c0_7], %7 {strides = array<i32>} : memref<8x512xf32, #tpu.memory_space<vmem>>, vector<8x512xf32>,
    return
  }
  func.func @transform_0(%arg0: i32) -> (i32, i32) {
    %c0_i32 = arith.constant 0 : i32
    %c0_i32_0 = arith.constant 0 : i32
    %c0_i32_1 = arith.constant 0 : i32
    return %c0_i32, %c0_i32_0 : i32, i32
  }
  func.func @transform_1(%arg0: i32) -> (i32, i32) {
    %c0_i32 = arith.constant 0 : i32
    %c0_i32_0 = arith.constant 0 : i32
    return %c0_i32, %arg0 : i32, i32
  }
  func.func @transform_2(%arg0: i32) -> (i32, i32) {
    %c0_i32 = arith.constant 0 : i32
    %c0_i32_0 = arith.constant 0 : i32
    %c0_i32_1 = arith.constant 0 : i32
    return %c0_i32, %c0_i32_0 : i32, i32
  }
  func.func @transform_3(%arg0: i32) -> (i32, i32) {
    %c0_i32 = arith.constant 0 : i32
    %c0_i32_0 = arith.constant 0 : i32
    return %c0_i32, %arg0 : i32, i32
  }
}

module attributes {stable_mosaic.version = 11 : i64} {
  func.func @_gemm_bias_act_kernel(%arg0: i32, %arg1: memref<16x216xbf16, #tpu.memory_space<vmem>>, %arg2: memref<216x512xbf16, #tpu.memory_space<vmem>>, %arg3: memref<16x1xf32, #tpu.memory_space<vmem>>, %arg4: memref<16x512xf32, #tpu.memory_space<vmem>>) attributes {dimension_semantics = [#tpu.dimension_semantics<parallel>], iteration_bounds = array<i64: 1>, scalar_prefetch = 0 : i64, scratch_operands = 0 : i64, tpu.core_type = #tpu.core_type<tc>, window_params = [{pipeline_mode = #tpu.pipeline_mode<synchronous>, transform_indices = @transform_0, window_bounds = array<i64: 16, 216>}, {transform_indices = @transform_1, window_bounds = array<i64: 216, 512>}, {pipeline_mode = #tpu.pipeline_mode<synchronous>, transform_indices = @transform_2, window_bounds = array<i64: 16, 1>}, {transform_indices = @transform_3, window_bounds = array<i64: 16, 512>}]} {
    %c0 = arith.constant 0 : index
    %c0_0 = arith.constant 0 : index
    %0 = vector.load %arg1[%c0, %c0_0] : memref<16x216xbf16, #tpu.memory_space<vmem>>, vector<16x216xbf16>
    %c0_1 = arith.constant 0 : index
    %c0_2 = arith.constant 0 : index
    %1 = vector.load %arg2[%c0_1, %c0_2] : memref<216x512xbf16, #tpu.memory_space<vmem>>, vector<216x512xbf16>
    %cst = arith.constant dense<0.000000e+00> : vector<16x512xf32>
    %2 = tpu.matmul %0, %1, %cst {dimension_numbers = #tpu.dot_dimension_numbers<[1], [0], [0], [1], [0, 0, 1, 1], [], []>} : vector<16x216xbf16>, vector<216x512xbf16>, vector<16x512xf32> -> vector<16x512xf32>
    %c0_3 = arith.constant 0 : index
    %c0_4 = arith.constant 0 : index
    %3 = vector.load %arg3[%c0_3, %c0_4] : memref<16x1xf32, #tpu.memory_space<vmem>>, vector<16x1xf32>
    %4 = vector.broadcast %3 : vector<16x1xf32> to vector<16x512xf32>
    %5 = arith.addf %2, %4 : vector<16x512xf32>
    %cst_5 = arith.constant 0.000000e+00 : f32
    %6 = vector.broadcast %cst_5 : f32 to vector<16x512xf32>
    %7 = arith.maximumf %5, %6 : vector<16x512xf32>
    %c0_6 = arith.constant 0 : index
    %c0_7 = arith.constant 0 : index
    %8 = vector.load %arg4[%c0_6, %c0_7] : memref<16x512xf32, #tpu.memory_space<vmem>>, vector<16x512xf32>
    tpu.vector_store %arg4[%c0_6, %c0_7], %7 {strides = array<i32>} : memref<16x512xf32, #tpu.memory_space<vmem>>, vector<16x512xf32>,
    return
  }
  func.func @transform_0(%arg0: i32) -> (i32, i32) {
    %c0_i32 = arith.constant 0 : i32
    %c0_i32_0 = arith.constant 0 : i32
    %c0_i32_1 = arith.constant 0 : i32
    return %c0_i32, %c0_i32_0 : i32, i32
  }
  func.func @transform_1(%arg0: i32) -> (i32, i32) {
    %c0_i32 = arith.constant 0 : i32
    %c0_i32_0 = arith.constant 0 : i32
    return %c0_i32, %arg0 : i32, i32
  }
  func.func @transform_2(%arg0: i32) -> (i32, i32) {
    %c0_i32 = arith.constant 0 : i32
    %c0_i32_0 = arith.constant 0 : i32
    %c0_i32_1 = arith.constant 0 : i32
    return %c0_i32, %c0_i32_0 : i32, i32
  }
  func.func @transform_3(%arg0: i32) -> (i32, i32) {
    %c0_i32 = arith.constant 0 : i32
    %c0_i32_0 = arith.constant 0 : i32
    return %c0_i32, %arg0 : i32, i32
  }
}

module attributes {stable_mosaic.version = 11 : i64} {
  func.func @_gemm_bias_act_kernel(%arg0: i32, %arg1: memref<16x432xbf16, #tpu.memory_space<vmem>>, %arg2: memref<432x512xbf16, #tpu.memory_space<vmem>>, %arg3: memref<16x1xf32, #tpu.memory_space<vmem>>, %arg4: memref<16x512xf32, #tpu.memory_space<vmem>>) attributes {dimension_semantics = [#tpu.dimension_semantics<parallel>], iteration_bounds = array<i64: 1>, scalar_prefetch = 0 : i64, scratch_operands = 0 : i64, tpu.core_type = #tpu.core_type<tc>, window_params = [{pipeline_mode = #tpu.pipeline_mode<synchronous>, transform_indices = @transform_0, window_bounds = array<i64: 16, 432>}, {transform_indices = @transform_1, window_bounds = array<i64: 432, 512>}, {pipeline_mode = #tpu.pipeline_mode<synchronous>, transform_indices = @transform_2, window_bounds = array<i64: 16, 1>}, {transform_indices = @transform_3, window_bounds = array<i64: 16, 512>}]} {
    %c0 = arith.constant 0 : index
    %c0_0 = arith.constant 0 : index
    %0 = vector.load %arg1[%c0, %c0_0] : memref<16x432xbf16, #tpu.memory_space<vmem>>, vector<16x432xbf16>
    %c0_1 = arith.constant 0 : index
    %c0_2 = arith.constant 0 : index
    %1 = vector.load %arg2[%c0_1, %c0_2] : memref<432x512xbf16, #tpu.memory_space<vmem>>, vector<432x512xbf16>
    %cst = arith.constant dense<0.000000e+00> : vector<16x512xf32>
    %2 = tpu.matmul %0, %1, %cst {dimension_numbers = #tpu.dot_dimension_numbers<[1], [0], [0], [1], [0, 0, 1, 1], [], []>} : vector<16x432xbf16>, vector<432x512xbf16>, vector<16x512xf32> -> vector<16x512xf32>
    %c0_3 = arith.constant 0 : index
    %c0_4 = arith.constant 0 : index
    %3 = vector.load %arg3[%c0_3, %c0_4] : memref<16x1xf32, #tpu.memory_space<vmem>>, vector<16x1xf32>
    %4 = vector.broadcast %3 : vector<16x1xf32> to vector<16x512xf32>
    %5 = arith.addf %2, %4 : vector<16x512xf32>
    %cst_5 = arith.constant 0.000000e+00 : f32
    %6 = vector.broadcast %cst_5 : f32 to vector<16x512xf32>
    %7 = arith.maximumf %5, %6 : vector<16x512xf32>
    %c0_6 = arith.constant 0 : index
    %c0_7 = arith.constant 0 : index
    %8 = vector.load %arg4[%c0_6, %c0_7] : memref<16x512xf32, #tpu.memory_space<vmem>>, vector<16x512xf32>
    tpu.vector_store %arg4[%c0_6, %c0_7], %7 {strides = array<i32>} : memref<16x512xf32, #tpu.memory_space<vmem>>, vector<16x512xf32>,
    return
  }
  func.func @transform_0(%arg0: i32) -> (i32, i32) {
    %c0_i32 = arith.constant 0 : i32
    %c0_i32_0 = arith.constant 0 : i32
    %c0_i32_1 = arith.constant 0 : i32
    return %c0_i32, %c0_i32_0 : i32, i32
  }
  func.func @transform_1(%arg0: i32) -> (i32, i32) {
    %c0_i32 = arith.constant 0 : i32
    %c0_i32_0 = arith.constant 0 : i32
    return %c0_i32, %arg0 : i32, i32
  }
  func.func @transform_2(%arg0: i32) -> (i32, i32) {
    %c0_i32 = arith.constant 0 : i32
    %c0_i32_0 = arith.constant 0 : i32
    %c0_i32_1 = arith.constant 0 : i32
    return %c0_i32, %c0_i32_0 : i32, i32
  }
  func.func @transform_3(%arg0: i32) -> (i32, i32) {
    %c0_i32 = arith.constant 0 : i32
    %c0_i32_0 = arith.constant 0 : i32
    return %c0_i32, %arg0 : i32, i32
  }
}

module attributes {stable_mosaic.version = 11 : i64} {
  func.func @_gemm_bias_act_kernel(%arg0: i32, %arg1: memref<32x48xbf16, #tpu.memory_space<vmem>>, %arg2: memref<48x512xbf16, #tpu.memory_space<vmem>>, %arg3: memref<32x1xf32, #tpu.memory_space<vmem>>, %arg4: memref<32x512xf32, #tpu.memory_space<vmem>>) attributes {dimension_semantics = [#tpu.dimension_semantics<parallel>], iteration_bounds = array<i64: 1>, scalar_prefetch = 0 : i64, scratch_operands = 0 : i64, tpu.core_type = #tpu.core_type<tc>, window_params = [{pipeline_mode = #tpu.pipeline_mode<synchronous>, transform_indices = @transform_0, window_bounds = array<i64: 32, 48>}, {transform_indices = @transform_1, window_bounds = array<i64: 48, 512>}, {pipeline_mode = #tpu.pipeline_mode<synchronous>, transform_indices = @transform_2, window_bounds = array<i64: 32, 1>}, {transform_indices = @transform_3, window_bounds = array<i64: 32, 512>}]} {
    %c0 = arith.constant 0 : index
    %c0_0 = arith.constant 0 : index
    %0 = vector.load %arg1[%c0, %c0_0] : memref<32x48xbf16, #tpu.memory_space<vmem>>, vector<32x48xbf16>
    %c0_1 = arith.constant 0 : index
    %c0_2 = arith.constant 0 : index
    %1 = vector.load %arg2[%c0_1, %c0_2] : memref<48x512xbf16, #tpu.memory_space<vmem>>, vector<48x512xbf16>
    %cst = arith.constant dense<0.000000e+00> : vector<32x512xf32>
    %2 = tpu.matmul %0, %1, %cst {dimension_numbers = #tpu.dot_dimension_numbers<[1], [0], [0], [1], [0, 0, 1, 1], [], []>} : vector<32x48xbf16>, vector<48x512xbf16>, vector<32x512xf32> -> vector<32x512xf32>
    %c0_3 = arith.constant 0 : index
    %c0_4 = arith.constant 0 : index
    %3 = vector.load %arg3[%c0_3, %c0_4] : memref<32x1xf32, #tpu.memory_space<vmem>>, vector<32x1xf32>
    %4 = vector.broadcast %3 : vector<32x1xf32> to vector<32x512xf32>
    %5 = arith.addf %2, %4 : vector<32x512xf32>
    %c0_5 = arith.constant 0 : index
    %c0_6 = arith.constant 0 : index
    %6 = vector.load %arg4[%c0_5, %c0_6] : memref<32x512xf32, #tpu.memory_space<vmem>>, vector<32x512xf32>
    tpu.vector_store %arg4[%c0_5, %c0_6], %5 {strides = array<i32>} : memref<32x512xf32, #tpu.memory_space<vmem>>, vector<32x512xf32>,
    return
  }
  func.func @transform_0(%arg0: i32) -> (i32, i32) {
    %c0_i32 = arith.constant 0 : i32
    %c0_i32_0 = arith.constant 0 : i32
    %c0_i32_1 = arith.constant 0 : i32
    return %c0_i32, %c0_i32_0 : i32, i32
  }
  func.func @transform_1(%arg0: i32) -> (i32, i32) {
    %c0_i32 = arith.constant 0 : i32
    %c0_i32_0 = arith.constant 0 : i32
    return %c0_i32, %arg0 : i32, i32
  }
  func.func @transform_2(%arg0: i32) -> (i32, i32) {
    %c0_i32 = arith.constant 0 : i32
    %c0_i32_0 = arith.constant 0 : i32
    %c0_i32_1 = arith.constant 0 : i32
    return %c0_i32, %c0_i32_0 : i32, i32
  }
  func.func @transform_3(%arg0: i32) -> (i32, i32) {
    %c0_i32 = arith.constant 0 : i32
    %c0_i32_0 = arith.constant 0 : i32
    return %c0_i32, %arg0 : i32, i32
  }
}

module attributes {stable_mosaic.version = 11 : i64} {
  func.func @_gemm_bias_act_kernel(%arg0: i32, %arg1: memref<8x432xbf16, #tpu.memory_space<vmem>>, %arg2: memref<432x512xbf16, #tpu.memory_space<vmem>>, %arg3: memref<8x1xf32, #tpu.memory_space<vmem>>, %arg4: memref<8x512xf32, #tpu.memory_space<vmem>>) attributes {dimension_semantics = [#tpu.dimension_semantics<parallel>], iteration_bounds = array<i64: 4>, scalar_prefetch = 0 : i64, scratch_operands = 0 : i64, tpu.core_type = #tpu.core_type<tc>, window_params = [{pipeline_mode = #tpu.pipeline_mode<synchronous>, transform_indices = @transform_0, window_bounds = array<i64: 8, 432>}, {transform_indices = @transform_1, window_bounds = array<i64: 432, 512>}, {pipeline_mode = #tpu.pipeline_mode<synchronous>, transform_indices = @transform_2, window_bounds = array<i64: 8, 1>}, {transform_indices = @transform_3, window_bounds = array<i64: 8, 512>}]} {
    %c0 = arith.constant 0 : index
    %c0_0 = arith.constant 0 : index
    %0 = vector.load %arg1[%c0, %c0_0] : memref<8x432xbf16, #tpu.memory_space<vmem>>, vector<8x432xbf16>
    %c0_1 = arith.constant 0 : index
    %c0_2 = arith.constant 0 : index
    %1 = vector.load %arg2[%c0_1, %c0_2] : memref<432x512xbf16, #tpu.memory_space<vmem>>, vector<432x512xbf16>
    %cst = arith.constant dense<0.000000e+00> : vector<8x512xf32>
    %2 = tpu.matmul %0, %1, %cst {dimension_numbers = #tpu.dot_dimension_numbers<[1], [0], [0], [1], [0, 0, 1, 1], [], []>} : vector<8x432xbf16>, vector<432x512xbf16>, vector<8x512xf32> -> vector<8x512xf32>
    %c0_3 = arith.constant 0 : index
    %c0_4 = arith.constant 0 : index
    %3 = vector.load %arg3[%c0_3, %c0_4] : memref<8x1xf32, #tpu.memory_space<vmem>>, vector<8x1xf32>
    %4 = vector.broadcast %3 : vector<8x1xf32> to vector<8x512xf32>
    %5 = arith.addf %2, %4 : vector<8x512xf32>
    %cst_5 = arith.constant 0.000000e+00 : f32
    %6 = vector.broadcast %cst_5 : f32 to vector<8x512xf32>
    %7 = arith.maximumf %5, %6 : vector<8x512xf32>
    %c0_6 = arith.constant 0 : index
    %c0_7 = arith.constant 0 : index
    %8 = vector.load %arg4[%c0_6, %c0_7] : memref<8x512xf32, #tpu.memory_space<vmem>>, vector<8x512xf32>
    tpu.vector_store %arg4[%c0_6, %c0_7], %7 {strides = array<i32>} : memref<8x512xf32, #tpu.memory_space<vmem>>, vector<8x512xf32>,
    return
  }
  func.func @transform_0(%arg0: i32) -> (i32, i32) {
    %c0_i32 = arith.constant 0 : i32
    %c0_i32_0 = arith.constant 0 : i32
    %c0_i32_1 = arith.constant 0 : i32
    return %c0_i32, %c0_i32_0 : i32, i32
  }
  func.func @transform_1(%arg0: i32) -> (i32, i32) {
    %c0_i32 = arith.constant 0 : i32
    %c0_i32_0 = arith.constant 0 : i32
    return %c0_i32, %arg0 : i32, i32
  }
  func.func @transform_2(%arg0: i32) -> (i32, i32) {
    %c0_i32 = arith.constant 0 : i32
    %c0_i32_0 = arith.constant 0 : i32
    %c0_i32_1 = arith.constant 0 : i32
    return %c0_i32, %c0_i32_0 : i32, i32
  }
  func.func @transform_3(%arg0: i32) -> (i32, i32) {
    %c0_i32 = arith.constant 0 : i32
    %c0_i32_0 = arith.constant 0 : i32
    return %c0_i32, %arg0 : i32, i32
  }
}

module attributes {stable_mosaic.version = 11 : i64} {
  func.func @_gemm_bias_act_kernel(%arg0: i32, %arg1: memref<3x216xbf16, #tpu.memory_space<vmem>>, %arg2: memref<216x512xbf16, #tpu.memory_space<vmem>>, %arg3: memref<3x1xf32, #tpu.memory_space<vmem>>, %arg4: memref<3x512xf32, #tpu.memory_space<vmem>>) attributes {dimension_semantics = [#tpu.dimension_semantics<parallel>], iteration_bounds = array<i64: 4>, scalar_prefetch = 0 : i64, scratch_operands = 0 : i64, tpu.core_type = #tpu.core_type<tc>, window_params = [{pipeline_mode = #tpu.pipeline_mode<synchronous>, transform_indices = @transform_0, window_bounds = array<i64: 3, 216>}, {transform_indices = @transform_1, window_bounds = array<i64: 216, 512>}, {pipeline_mode = #tpu.pipeline_mode<synchronous>, transform_indices = @transform_2, window_bounds = array<i64: 3, 1>}, {transform_indices = @transform_3, window_bounds = array<i64: 3, 512>}]} {
    %c0 = arith.constant 0 : index
    %c0_0 = arith.constant 0 : index
    %0 = vector.load %arg1[%c0, %c0_0] : memref<3x216xbf16, #tpu.memory_space<vmem>>, vector<3x216xbf16>
    %c0_1 = arith.constant 0 : index
    %c0_2 = arith.constant 0 : index
    %1 = vector.load %arg2[%c0_1, %c0_2] : memref<216x512xbf16, #tpu.memory_space<vmem>>, vector<216x512xbf16>
    %cst = arith.constant dense<0.000000e+00> : vector<3x512xf32>
    %2 = tpu.matmul %0, %1, %cst {dimension_numbers = #tpu.dot_dimension_numbers<[1], [0], [0], [1], [0, 0, 1, 1], [], []>} : vector<3x216xbf16>, vector<216x512xbf16>, vector<3x512xf32> -> vector<3x512xf32>
    %c0_3 = arith.constant 0 : index
    %c0_4 = arith.constant 0 : index
    %3 = vector.load %arg3[%c0_3, %c0_4] : memref<3x1xf32, #tpu.memory_space<vmem>>, vector<3x1xf32>
    %4 = vector.broadcast %3 : vector<3x1xf32> to vector<3x512xf32>
    %5 = arith.addf %2, %4 : vector<3x512xf32>
    %c0_5 = arith.constant 0 : index
    %c0_6 = arith.constant 0 : index
    %6 = vector.load %arg4[%c0_5, %c0_6] : memref<3x512xf32, #tpu.memory_space<vmem>>, vector<3x512xf32>
    tpu.vector_store %arg4[%c0_5, %c0_6], %5 {strides = array<i32>} : memref<3x512xf32, #tpu.memory_space<vmem>>, vector<3x512xf32>,
    return
  }
  func.func @transform_0(%arg0: i32) -> (i32, i32) {
    %c0_i32 = arith.constant 0 : i32
    %c0_i32_0 = arith.constant 0 : i32
    %c0_i32_1 = arith.constant 0 : i32
    return %c0_i32, %c0_i32_0 : i32, i32
  }
  func.func @transform_1(%arg0: i32) -> (i32, i32) {
    %c0_i32 = arith.constant 0 : i32
    %c0_i32_0 = arith.constant 0 : i32
    return %c0_i32, %arg0 : i32, i32
  }
  func.func @transform_2(%arg0: i32) -> (i32, i32) {
    %c0_i32 = arith.constant 0 : i32
    %c0_i32_0 = arith.constant 0 : i32
    %c0_i32_1 = arith.constant 0 : i32
    return %c0_i32, %c0_i32_0 : i32, i32
  }
  func.func @transform_3(%arg0: i32) -> (i32, i32) {
    %c0_i32 = arith.constant 0 : i32
    %c0_i32_0 = arith.constant 0 : i32
    return %c0_i32, %arg0 : i32, i32
  }
}

</mosaic_0001>

<bundles_post_ra>
// kernel: unet_forward.8
= control target key start
LH: loop header
LB: loop body
LE: loop exit
PB: predicated region body
PF: predicated region fallthrough
CT: control target
= control target key end

     0   :  { %s691_s12 = smov 0   ;;  %s693_s13 = smov 0   ;;  %s821_s0 = inlined_call_operand.vmem [shape: bf16[8,81], index: 0, kind: input, shape index: {}]   ;;  %s822_s1 = inlined_call_operand.vmem [shape: bf16[81,2048], index: 1, kind: input, shape index: {}]   ;;  %s823_s2 = inlined_call_operand.vmem [shape: f32[8,1], index: 2, kind: input, shape index: {}]   ;;  %s824_s3 = inlined_call_operand.vmem [shape: f32[8,2048], index: 3, kind: output, shape index: {}]  }
   0x1   :  { %s695_s14 = smov 0  }
   0x2 LB: > { %s546_s15 = sadd.s32 4294967295, %s668_s14   ;;  %s708_s16 = sadd.s32 1, %s668_s14   ;;  %s668_s14 = sphi %s695_s14, %s827_s14   ;;  %s664_s13 = sphi %s693_s13, %s826_s13   ;;  %s660_s12 = sphi %s691_s12, %s825_s12  }
   0x3   : > { %s38_s17 = ssub.s32 %s668_s14, %s708_s16  ;;  %s41_s18 = sadd.s32 1, %s664_s13 }
   0x4   : > { %p39_p0 = scmp.eq.s32.totalorder %s38_s17, 0  ;;  %p48_p1 = scmp.ne.s32.totalorder %s664_s13, %s660_s12 }
   0x5   : > { %p49_p2 = scmp.eq.s32.totalorder %s668_s14, 0  ;;  %p549_p4 = scmp.ge.s32.totalorder %s668_s14, 4 }
   0x6   : > { %s717_s19 = scalar_select %p39_p0, %s664_s13, %s41_s18  }
   0x7   : > { %p50_p3 = por %p49_p2, %p48_p1  ;;  %127 = sbr.rel (%p549_p4) target bundleno = 29 (0x1d), region = 24 }
   0xe   : > { %130 = sbr.rel (!%p50_p3) target bundleno = 29 (0x1d), region = 28  ;;  %s132_s20 = sand.u32 (%p50_p3), 1, %s664_s13  }
   0xf   : > { %s583_s21 = sshll.u32 (%p50_p3), %s668_s14, 4  ;;  %s584_s22 = smul.u32 (%p50_p3), 176, %s132_s20 }
  0x10   : > { %s725_s25 = scalar_lea.vmem (%p50_p3), %s822_s1, %s583_s21 }
  0x11   : > { %v150_v0 = vld [vmem:[%s725_s25] sm:$0xff] (%p50_p3)  ;;  %v152_v1 = vld [vmem:[%s725_s25 + $0x8] sm:$0xff] (%p50_p3)  ;;  %s733_s26 = scalar_lea.vmem (%p50_p3), [#allocation2], %s584_s22 }
  0x12   : > { %v154_v2 = vld [vmem:[%s725_s25 + $0x40] sm:$0xff] (%p50_p3)  ;;  %v156_v3 = vld [vmem:[%s725_s25 + $0x48] sm:$0xff] (%p50_p3)  ;;  %151 = vst [vmem:[%s733_s26] sm:$0xff] (%p50_p3), %v150_v0  ;;  %153 = vst [vmem:[%s733_s26 + $0x8] sm:$0xff] (%p50_p3), %v152_v1 }
  0x13   : > { %v158_v4 = vld [vmem:[%s725_s25 + $0x80] sm:$0xff] (%p50_p3)  ;;  %v160_v5 = vld [vmem:[%s725_s25 + $0x88] sm:$0xff] (%p50_p3)  ;;  %155 = vst [vmem:[%s733_s26 + $0x10] sm:$0xff] (%p50_p3), %v154_v2  ;;  %157 = vst [vmem:[%s733_s26 + $0x18] sm:$0xff] (%p50_p3), %v156_v3 }
  0x14   : > { %159 = vst [vmem:[%s733_s26 + $0x20] sm:$0xff] (%p50_p3), %v158_v4  ;;  %161 = vst [vmem:[%s733_s26 + $0x28] sm:$0xff] (%p50_p3), %v160_v5  ;;  %v162_v6 = vld [vmem:[%s725_s25 + $0xc0] sm:$0xff] (%p50_p3)  ;;  %v164_v7 = vld [vmem:[%s725_s25 + $0xc8] sm:$0xff] (%p50_p3) }
  0x15   : > { %v166_v8 = vld [vmem:[%s725_s25 + $0x100] sm:$0xff]  ;;  %163 = vst [vmem:[%s733_s26 + $0x30] sm:$0xff] %v162_v6  ;;  %165 = vst [vmem:[%s733_s26 + $0x38] sm:$0xff] %v164_v7  ;;  %v168_v9 = vld [vmem:[%s725_s25 + $0x108] sm:$0xff] }
  0x16   : > { %167 = vst [vmem:[%s733_s26 + $0x40] sm:$0xff] %v166_v8  ;;  %v170_v10 = vld [vmem:[%s725_s25 + $0x140] sm:$0xff]  ;;  %v172_v11 = vld [vmem:[%s725_s25 + $0x148] sm:$0xff]  ;;  %169 = vst [vmem:[%s733_s26 + $0x48] sm:$0xff] %v168_v9 }
  0x17   : > { %171 = vst [vmem:[%s733_s26 + $0x50] sm:$0xff] %v170_v10  ;;  %173 = vst [vmem:[%s733_s26 + $0x58] sm:$0xff] %v172_v11  ;;  %v174_v12 = vld [vmem:[%s725_s25 + $0x180] sm:$0xff]  ;;  %v176_v13 = vld [vmem:[%s725_s25 + $0x188] sm:$0xff] }
  0x18   : > { %v178_v14 = vld [vmem:[%s725_s25 + $0x1c0] sm:$0xff]  ;;  %175 = vst [vmem:[%s733_s26 + $0x60] sm:$0xff] %v174_v12  ;;  %177 = vst [vmem:[%s733_s26 + $0x68] sm:$0xff] %v176_v13  ;;  %v180_v15 = vld [vmem:[%s725_s25 + $0x1c8] sm:$0xff] }
  0x19   : > { %179 = vst [vmem:[%s733_s26 + $0x70] sm:$0xff] %v178_v14  ;;  %v182_v16 = vld [vmem:[%s725_s25 + $0x200] sm:$0xff]  ;;  %v184_v17 = vld [vmem:[%s725_s25 + $0x208] sm:$0xff]  ;;  %181 = vst [vmem:[%s733_s26 + $0x78] sm:$0xff] %v180_v15 }
  0x1a   : > { %183 = vst [vmem:[%s733_s26 + $0x80] sm:$0xff] %v182_v16  ;;  %185 = vst [vmem:[%s733_s26 + $0x88] sm:$0xff] %v184_v17  ;;  %v186_v18 = vld [vmem:[%s725_s25 + $0x240] sm:$0xff]  ;;  %v188_v19 = vld [vmem:[%s725_s25 + $0x248] sm:$0xff] }
  0x1b   : > { %v190_v20 = vld [vmem:[%s725_s25 + $0x280] sm:$0xff]  ;;  %187 = vst [vmem:[%s733_s26 + $0x90] sm:$0xff] %v186_v18  ;;  %189 = vst [vmem:[%s733_s26 + $0x98] sm:$0xff] %v188_v19  ;;  %v192_v21 = vld [vmem:[%s725_s25 + $0x288] sm:$0xff] }
  0x1c   : > { %191 = vst [vmem:[%s733_s26 + $0xa0] sm:$0xff] %v190_v20  ;;  %193 = vst [vmem:[%s733_s26 + $0xa8] sm:$0xff] %v192_v21 }
  0x1d PF: > { %p552_p5 = scmp.ge.s32.totalorder %s668_s14, 1  ;;  %p198_p6 = scmp.lt.s32.totalorder %s668_s14, 5 }
  0x1f   : > { %p199_p7 = pnand %p552_p5, %p198_p6 }
  0x20   : > { %s205_s27 = sand.u32 (!%p199_p7), 1, %s660_s12   ;;  %v670_v22 = vmov (!%p199_p7), 0   ;;  %v259_v23 = vld [vmem:[%s823_s2] sm:$0xff] (!%p199_p7)  ;;  %vm379_vm0 = vcmask (!%p199_p7), 1040384   ;;  %vm375_vm1 = vcmask (!%p199_p7), 662528   ;;  %s553_s7 = sshll.u32 (!%p199_p7), %s546_s15, 2 }
  0x21   : > { %202 = sbr.rel (%p199_p7) target bundleno = 280 (0x118), region = 51  ;;  %426 = vmatprep.mubr.bf16.mxu0 (!%p199_p7), %v670_v22  ;;  %467 = vmatprep.mubr.bf16.mxu1 (!%p199_p7), %v670_v22  ;;  %v381_v45 = vsel (!%p199_p7), %vm379_vm0, 65535, %v670_v22  ;;  %v236_v55 = vld [vmem:[%s821_s0] sm:$0xf] (!%p199_p7)  ;;  %p230_p8 = scmp.lt.s32.totalorder (!%p199_p7), %s553_s7, 15 }
  0x22   : > { %s585_s28 = smul.u32 (!%p199_p7), 176, %s205_s27  ;;  %611 = vset.pattern.permute.xlu0 (!%p199_p7), %v670_v22 }
  0x23   : > { %262 = vperm.xlu0 (!%p199_p7), %611, %v259_v23  }
  0x24   : > { %s779_s4 = scalar_lea.vmem (!%p199_p7), [#allocation2], %s585_s28 }
  0x25   : > { %v612_v24 = vld [vmem:[%s779_s4 + $0x4] ss:$16 sps:$4 sm:$0xff] (!%p199_p7)   ;;  %v614_v25 = vld [vmem:[%s779_s4 + $0xc] ss:$16 sps:$4 sm:$0xff] (!%p199_p7)   ;;  %v616_v26 = vld [vmem:[%s779_s4] ss:$16 sps:$4 sm:$0xff] (!%p199_p7)  }
  0x26   : > { %394 = vmatprep.subr.bf16.mxu0 (!%p199_p7), %v612_v24  ;;  %v617_v27 = vld [vmem:[%s779_s4 + $0x8] ss:$16 sps:$4 sm:$0xff] (!%p199_p7)   ;;  %435 = vmatprep.subr.bf16.mxu1 (!%p199_p7), %v614_v25  ;;  %v618_v28 = vld [vmem:[%s779_s4 + $0x24] ss:$16 sps:$4 sm:$0xff] (!%p199_p7)   ;;  %v620_v29 = vld [vmem:[%s779_s4 + $0x2c] ss:$16 sps:$4 sm:$0xff] (!%p199_p7)  }
  0x27   : > { %395 = vmatpush1.bf16.msra.mxu0 (!%p199_p7), %v616_v26  ;;  %436 = vmatpush1.bf16.msra.mxu1 (!%p199_p7), %v617_v27  ;;  %v622_v30 = vld [vmem:[%s779_s4 + $0x20] ss:$16 sps:$4 sm:$0xff] (!%p199_p7)   ;;  %v623_v31 = vld [vmem:[%s779_s4 + $0x28] ss:$16 sps:$4 sm:$0xff] (!%p199_p7)   ;;  %v624_v32 = vld [vmem:[%s779_s4 + $0x44] ss:$16 sps:$4 sm:$0xff] (!%p199_p7)  }
  0x28   : > { %396 = vmatprep.subr.bf16.mxu0 %v618_v28  ;;  %437 = vmatprep.subr.bf16.mxu1 %v620_v29  ;;  %v626_v33 = vld [vmem:[%s779_s4 + $0x4c] ss:$16 sps:$4 sm:$0xff]   ;;  %v628_v34 = vld [vmem:[%s779_s4 + $0x40] ss:$16 sps:$4 sm:$0xff]   ;;  %v629_v35 = vld [vmem:[%s779_s4 + $0x48] ss:$16 sps:$4 sm:$0xff]  }
  0x29   : > { %v630_v36 = vld [vmem:[%s779_s4 + $0x64] ss:$16 sps:$4 sm:$0xff]   ;;  %v632_v37 = vld [vmem:[%s779_s4 + $0x6c] ss:$16 sps:$4 sm:$0xff]   ;;  %v634_v38 = vld [vmem:[%s779_s4 + $0x60] ss:$16 sps:$4 sm:$0xff]  }
  0x2a   : > { %v635_v39 = vld [vmem:[%s779_s4 + $0x68] ss:$16 sps:$4 sm:$0xff]   ;;  %v636_v40 = vld [vmem:[%s779_s4 + $0x84] ss:$16 sps:$4 sm:$0xff]   ;;  %v638_v41 = vld [vmem:[%s779_s4 + $0x8c] ss:$16 sps:$4 sm:$0xff]  }
  0x2b   : > { %397 = vmatpush1.bf16.msra.mxu0 %v622_v30  ;;  %438 = vmatpush1.bf16.msra.mxu1 %v623_v31  ;;  %v257_v42 = vld [vmem:[%s779_s4 + $0xa0] sm:$0x11]  ;;  %v258_v43 = vld [vmem:[%s779_s4 + $0xa8] sm:$0x11]  ;;  %s829_s7 = smov (!%p230_p8, %s553_s7), 15 }
  0x2c   : > { %398 = vmatprep.subr.bf16.mxu0 %v624_v32  ;;  %439 = vmatprep.subr.bf16.mxu1 %v626_v33  ;;  %v576_v44 = vcombine.high %v257_v42, %v257_v42  ;;  %v578_v46 = vcombine.high %v258_v43, %v258_v43  ;;  %v640_v47 = vld [vmem:[%s779_s4 + $0x80] ss:$16 sps:$4 sm:$0xff]   ;;  %v641_v48 = vld [vmem:[%s779_s4 + $0x88] ss:$16 sps:$4 sm:$0xff]   ;;  %v575_v49 = vcombine.low %v257_v42, %v257_v42  ;;  %s554_s8 = sshll.u32 %s829_s7, 3 }
  0x2d   : > { %v577_v50 = vcombine.low %v258_v43, %v258_v43  ;;  %s233_s11 = scalar_lea.vmem %s824_s3, %s554_s8 }
  0x2e   : > { %v386_v51 = vand.u32 %v576_v44, %v381_v45  ;;  %v392_v52 = vand.u32 %v578_v46, %v381_v45  ;;  %v383_v53 = vand.u32 %v575_v49, %v381_v45 }
  0x2f   : > { %399 = vmatpush1.bf16.msra.mxu0 %v628_v34  ;;  %440 = vmatpush1.bf16.msra.mxu1 %v629_v35  ;;  %v389_v54 = vand.u32 %v577_v50, %v381_v45 }
  0x30   : > { %400 = vmatprep.subr.bf16.mxu0 %v630_v36  ;;  %441 = vmatprep.subr.bf16.mxu1 %v632_v37 }
  0x33   : > { %401 = vmatpush1.bf16.msra.mxu0 %v634_v38  ;;  %442 = vmatpush1.bf16.msra.mxu1 %v635_v39 }
  0x34   : > { %402 = vmatprep.subr.bf16.mxu0 %v636_v40  ;;  %443 = vmatprep.subr.bf16.mxu1 %v638_v41 }
  0x37   : > { %403 = vmatpush1.bf16.msra.mxu0 %v640_v47  ;;  %444 = vmatpush1.bf16.msra.mxu1 %v641_v48 }
  0x38   : > { %404 = vmatprep.subr.bf16.mxu0 %v386_v51  ;;  %445 = vmatprep.subr.bf16.mxu1 %v392_v52 }
  0x3b   : > { %405 = vmatpush1.bf16.msra.mxu0 %v383_v53  ;;  %446 = vmatpush1.bf16.msra.mxu1 %v389_v54 }
  0x3e   : > { %579 = vmatmul.mubr.msk.bf16.vlgmr.msra.gmra.mrb[0].mxu0 %vm375_vm1, %v236_v55  ;;  %580 = vmatmul.mubr.msk.bf16.vlgmr.msra.gmra.mrb[0].mxu1 %vm375_vm1, %v236_v55 }
  0xa2   : > { %v263_v56 = vpop.permute.xlu0 %262 }
 0x111   : > { %v428_v57 = vpop.f32.mrb[0].mxu0  ;;  %v469_v58 = vpop.f32.mrb[0].mxu1 }
 0x112   : > { %v429_v59 = vadd.f32 %v428_v57, %v263_v56  ;;  %v470_v60 = vadd.f32 %v469_v58, %v263_v56  ;;  %v430_v61 = vpop.f32.mrb[1].mxu0  ;;  %v471_v62 = vpop.f32.mrb[1].mxu1 }
 0x113   : > { %v431_v63 = vadd.f32 %v430_v61, %v263_v56  ;;  %v472_v0 = vadd.f32 %v471_v62, %v263_v56  ;;  %v432_v1 = vpop.f32.mrb[2].mxu0  ;;  %v473_v2 = vpop.f32.mrb[2].mxu1 }
 0x114   : > { %v476_v3 = vmax.f32 %v429_v59, 0.0  ;;  %v478_v4 = vmax.f32 %v470_v60, 0.0  ;;  %v433_v5 = vpop.f32.mrb[3].mxu0  ;;  %v474_v6 = vpop.f32.mrb[3].mxu1 }
 0x115   : > { %v477_v7 = vmax.f32 %v431_v63, 0.0  ;;  %v479_v8 = vmax.f32 %v472_v0, 0.0 }
 0x116   : > { %480 = vst [vmem:[%s233_s11] sm:$0xff] %v476_v3  ;;  %482 = vst [vmem:[%s233_s11 + $0x10] sm:$0xff] %v478_v4 }
 0x117   : > { %481 = vst [vmem:[%s233_s11 + $0x8] sm:$0xff] %v477_v7  ;;  %483 = vst [vmem:[%s233_s11 + $0x18] sm:$0xff] %v479_v8 }
 0x118 PF: > { %p10_p9 = scmp.ge.s32.totalorder %s708_s16, 6   ;;  %s825_s12 = smov %s664_s13 }
 0x119   : > { %s826_s13 = smov %s717_s19  ;;  %s827_s14 = smov %s708_s16 }
 0x11a   :  { %12 = sbr.rel (!%p10_p9) target bundleno = 2 (0x2), region = 90 }

// kernel: unet_forward.9
= control target key start
LH: loop header
LB: loop body
LE: loop exit
PB: predicated region body
PF: predicated region fallthrough
CT: control target
= control target key end

     0   :  { %s1037_s12 = smov 0   ;;  %s1039_s13 = smov 0   ;;  %s1269_s0 = inlined_call_operand.vmem [shape: bf16[8,216], index: 0, kind: input, shape index: {}]   ;;  %s1270_s1 = inlined_call_operand.vmem [shape: bf16[216,2048], index: 1, kind: input, shape index: {}]   ;;  %s1271_s2 = inlined_call_operand.vmem [shape: f32[8,1], index: 2, kind: input, shape index: {}]   ;;  %s1272_s3 = inlined_call_operand.vmem [shape: f32[8,2048], index: 3, kind: output, shape index: {}]  }
   0x1   :  { %s1041_s14 = smov 0  }
   0x2 LB: > { %s806_s15 = sadd.s32 4294967295, %s1014_s14   ;;  %s1054_s16 = sadd.s32 1, %s1014_s14   ;;  %s1014_s14 = sphi %s1041_s14, %s1275_s14   ;;  %s1010_s13 = sphi %s1039_s13, %s1274_s13   ;;  %s1006_s12 = sphi %s1037_s12, %s1273_s12  }
   0x3   : > { %s38_s17 = ssub.s32 %s1014_s14, %s1054_s16  ;;  %s41_s18 = sadd.s32 1, %s1010_s13 }
   0x4   : > { %p39_p0 = scmp.eq.s32.totalorder %s38_s17, 0  ;;  %p48_p1 = scmp.ne.s32.totalorder %s1010_s13, %s1006_s12 }
   0x5   : > { %p49_p2 = scmp.eq.s32.totalorder %s1014_s14, 0  ;;  %p809_p4 = scmp.ge.s32.totalorder %s1014_s14, 4 }
   0x6   : > { %s1063_s19 = scalar_select %p39_p0, %s1010_s13, %s41_s18  }
   0x7   : > { %p50_p3 = por %p49_p2, %p48_p1  ;;  %127 = sbr.rel (%p809_p4) target bundleno = 45 (0x2d), region = 24 }
   0xe   : > { %130 = sbr.rel (!%p50_p3) target bundleno = 45 (0x2d), region = 28  ;;  %s132_s20 = sand.u32 (%p50_p3), 1, %s1010_s13  }
   0xf   : > { %s879_s21 = sshll.u32 (%p50_p3), %s1014_s14, 4  ;;  %s880_s22 = smul.u32 (%p50_p3), 432, %s132_s20 }
  0x10   : > { %s1071_s25 = scalar_lea.vmem (%p50_p3), %s1270_s1, %s879_s21 }
  0x11   : > { %v150_v0 = vld [vmem:[%s1071_s25] sm:$0xff] (%p50_p3)  ;;  %v152_v1 = vld [vmem:[%s1071_s25 + $0x8] sm:$0xff] (%p50_p3)  ;;  %s1079_s26 = scalar_lea.vmem (%p50_p3), [#allocation2], %s880_s22 }
  0x12   : > { %v154_v2 = vld [vmem:[%s1071_s25 + $0x40] sm:$0xff] (%p50_p3)  ;;  %v156_v3 = vld [vmem:[%s1071_s25 + $0x48] sm:$0xff] (%p50_p3)  ;;  %151 = vst [vmem:[%s1079_s26] sm:$0xff] (%p50_p3), %v150_v0  ;;  %153 = vst [vmem:[%s1079_s26 + $0x8] sm:$0xff] (%p50_p3), %v152_v1 }
  0x13   : > { %v158_v4 = vld [vmem:[%s1071_s25 + $0x80] sm:$0xff] (%p50_p3)  ;;  %v160_v5 = vld [vmem:[%s1071_s25 + $0x88] sm:$0xff] (%p50_p3)  ;;  %155 = vst [vmem:[%s1079_s26 + $0x10] sm:$0xff] (%p50_p3), %v154_v2  ;;  %157 = vst [vmem:[%s1079_s26 + $0x18] sm:$0xff] (%p50_p3), %v156_v3 }
  0x14   : > { %159 = vst [vmem:[%s1079_s26 + $0x20] sm:$0xff] (%p50_p3), %v158_v4  ;;  %161 = vst [vmem:[%s1079_s26 + $0x28] sm:$0xff] (%p50_p3), %v160_v5  ;;  %v162_v6 = vld [vmem:[%s1071_s25 + $0xc0] sm:$0xff] (%p50_p3)  ;;  %v164_v7 = vld [vmem:[%s1071_s25 + $0xc8] sm:$0xff] (%p50_p3) }
  0x15   : > { %v166_v8 = vld [vmem:[%s1071_s25 + $0x100] sm:$0xff]  ;;  %163 = vst [vmem:[%s1079_s26 + $0x30] sm:$0xff] %v162_v6  ;;  %165 = vst [vmem:[%s1079_s26 + $0x38] sm:$0xff] %v164_v7  ;;  %v168_v9 = vld [vmem:[%s1071_s25 + $0x108] sm:$0xff] }
  0x16   : > { %167 = vst [vmem:[%s1079_s26 + $0x40] sm:$0xff] %v166_v8  ;;  %v170_v10 = vld [vmem:[%s1071_s25 + $0x140] sm:$0xff]  ;;  %v172_v11 = vld [vmem:[%s1071_s25 + $0x148] sm:$0xff]  ;;  %169 = vst [vmem:[%s1079_s26 + $0x48] sm:$0xff] %v168_v9 }
  0x17   : > { %171 = vst [vmem:[%s1079_s26 + $0x50] sm:$0xff] %v170_v10  ;;  %173 = vst [vmem:[%s1079_s26 + $0x58] sm:$0xff] %v172_v11  ;;  %v174_v12 = vld [vmem:[%s1071_s25 + $0x180] sm:$0xff]  ;;  %v176_v13 = vld [vmem:[%s1071_s25 + $0x188] sm:$0xff] }
  0x18   : > { %v178_v14 = vld [vmem:[%s1071_s25 + $0x1c0] sm:$0xff]  ;;  %175 = vst [vmem:[%s1079_s26 + $0x60] sm:$0xff] %v174_v12  ;;  %177 = vst [vmem:[%s1079_s26 + $0x68] sm:$0xff] %v176_v13  ;;  %v180_v15 = vld [vmem:[%s1071_s25 + $0x1c8] sm:$0xff] }
  0x19   : > { %179 = vst [vmem:[%s1079_s26 + $0x70] sm:$0xff] %v178_v14  ;;  %v182_v16 = vld [vmem:[%s1071_s25 + $0x200] sm:$0xff]  ;;  %v184_v17 = vld [vmem:[%s1071_s25 + $0x208] sm:$0xff]  ;;  %181 = vst [vmem:[%s1079_s26 + $0x78] sm:$0xff] %v180_v15 }
  0x1a   : > { %183 = vst [vmem:[%s1079_s26 + $0x80] sm:$0xff] %v182_v16  ;;  %185 = vst [vmem:[%s1079_s26 + $0x88] sm:$0xff] %v184_v17  ;;  %v186_v18 = vld [vmem:[%s1071_s25 + $0x240] sm:$0xff]  ;;  %v188_v19 = vld [vmem:[%s1071_s25 + $0x248] sm:$0xff] }
  0x1b   : > { %v190_v20 = vld [vmem:[%s1071_s25 + $0x280] sm:$0xff]  ;;  %187 = vst [vmem:[%s1079_s26 + $0x90] sm:$0xff] %v186_v18  ;;  %189 = vst [vmem:[%s1079_s26 + $0x98] sm:$0xff] %v188_v19  ;;  %v192_v21 = vld [vmem:[%s1071_s25 + $0x288] sm:$0xff] }
  0x1c   : > { %191 = vst [vmem:[%s1079_s26 + $0xa0] sm:$0xff] %v190_v20  ;;  %v194_v22 = vld [vmem:[%s1071_s25 + $0x2c0] sm:$0xff]  ;;  %v196_v23 = vld [vmem:[%s1071_s25 + $0x2c8] sm:$0xff]  ;;  %193 = vst [vmem:[%s1079_s26 + $0xa8] sm:$0xff] %v192_v21 }
  0x1d   : > { %195 = vst [vmem:[%s1079_s26 + $0xb0] sm:$0xff] %v194_v22  ;;  %197 = vst [vmem:[%s1079_s26 + $0xb8] sm:$0xff] %v196_v23  ;;  %v198_v24 = vld [vmem:[%s1071_s25 + $0x300] sm:$0xff]  ;;  %v200_v25 = vld [vmem:[%s1071_s25 + $0x308] sm:$0xff] }
  0x1e   : > { %v202_v26 = vld [vmem:[%s1071_s25 + $0x340] sm:$0xff]  ;;  %199 = vst [vmem:[%s1079_s26 + $0xc0] sm:$0xff] %v198_v24  ;;  %201 = vst [vmem:[%s1079_s26 + $0xc8] sm:$0xff] %v200_v25  ;;  %v204_v27 = vld [vmem:[%s1071_s25 + $0x348] sm:$0xff] }
  0x1f   : > { %203 = vst [vmem:[%s1079_s26 + $0xd0] sm:$0xff] %v202_v26  ;;  %v206_v28 = vld [vmem:[%s1071_s25 + $0x380] sm:$0xff]  ;;  %v208_v29 = vld [vmem:[%s1071_s25 + $0x388] sm:$0xff]  ;;  %205 = vst [vmem:[%s1079_s26 + $0xd8] sm:$0xff] %v204_v27 }
  0x20   : > { %207 = vst [vmem:[%s1079_s26 + $0xe0] sm:$0xff] %v206_v28  ;;  %209 = vst [vmem:[%s1079_s26 + $0xe8] sm:$0xff] %v208_v29  ;;  %v210_v30 = vld [vmem:[%s1071_s25 + $0x3c0] sm:$0xff]  ;;  %v212_v31 = vld [vmem:[%s1071_s25 + $0x3c8] sm:$0xff] }
  0x21   : > { %v214_v32 = vld [vmem:[%s1071_s25 + $0x400] sm:$0xff]  ;;  %211 = vst [vmem:[%s1079_s26 + $0xf0] sm:$0xff] %v210_v30  ;;  %213 = vst [vmem:[%s1079_s26 + $0xf8] sm:$0xff] %v212_v31  ;;  %v216_v33 = vld [vmem:[%s1071_s25 + $0x408] sm:$0xff] }
  0x22   : > { %215 = vst [vmem:[%s1079_s26 + $0x100] sm:$0xff] %v214_v32  ;;  %v218_v34 = vld [vmem:[%s1071_s25 + $0x440] sm:$0xff]  ;;  %v220_v35 = vld [vmem:[%s1071_s25 + $0x448] sm:$0xff]  ;;  %217 = vst [vmem:[%s1079_s26 + $0x108] sm:$0xff] %v216_v33 }
  0x23   : > { %219 = vst [vmem:[%s1079_s26 + $0x110] sm:$0xff] %v218_v34  ;;  %221 = vst [vmem:[%s1079_s26 + $0x118] sm:$0xff] %v220_v35  ;;  %v222_v36 = vld [vmem:[%s1071_s25 + $0x480] sm:$0xff]  ;;  %v224_v37 = vld [vmem:[%s1071_s25 + $0x488] sm:$0xff] }
  0x24   : > { %v226_v38 = vld [vmem:[%s1071_s25 + $0x4c0] sm:$0xff]  ;;  %223 = vst [vmem:[%s1079_s26 + $0x120] sm:$0xff] %v222_v36  ;;  %225 = vst [vmem:[%s1079_s26 + $0x128] sm:$0xff] %v224_v37  ;;  %v228_v39 = vld [vmem:[%s1071_s25 + $0x4c8] sm:$0xff] }
  0x25   : > { %227 = vst [vmem:[%s1079_s26 + $0x130] sm:$0xff] %v226_v38  ;;  %v230_v40 = vld [vmem:[%s1071_s25 + $0x500] sm:$0xff]  ;;  %v232_v41 = vld [vmem:[%s1071_s25 + $0x508] sm:$0xff]  ;;  %229 = vst [vmem:[%s1079_s26 + $0x138] sm:$0xff] %v228_v39 }
  0x26   : > { %231 = vst [vmem:[%s1079_s26 + $0x140] sm:$0xff] %v230_v40  ;;  %233 = vst [vmem:[%s1079_s26 + $0x148] sm:$0xff] %v232_v41  ;;  %v234_v42 = vld [vmem:[%s1071_s25 + $0x540] sm:$0xff]  ;;  %v236_v43 = vld [vmem:[%s1071_s25 + $0x548] sm:$0xff] }
  0x27   : > { %v238_v44 = vld [vmem:[%s1071_s25 + $0x580] sm:$0xff]  ;;  %235 = vst [vmem:[%s1079_s26 + $0x150] sm:$0xff] %v234_v42  ;;  %237 = vst [vmem:[%s1079_s26 + $0x158] sm:$0xff] %v236_v43  ;;  %v240_v45 = vld [vmem:[%s1071_s25 + $0x588] sm:$0xff] }
  0x28   : > { %239 = vst [vmem:[%s1079_s26 + $0x160] sm:$0xff] %v238_v44  ;;  %v242_v46 = vld [vmem:[%s1071_s25 + $0x5c0] sm:$0xff]  ;;  %v244_v47 = vld [vmem:[%s1071_s25 + $0x5c8] sm:$0xff]  ;;  %241 = vst [vmem:[%s1079_s26 + $0x168] sm:$0xff] %v240_v45 }
  0x29   : > { %243 = vst [vmem:[%s1079_s26 + $0x170] sm:$0xff] %v242_v46  ;;  %245 = vst [vmem:[%s1079_s26 + $0x178] sm:$0xff] %v244_v47  ;;  %v246_v48 = vld [vmem:[%s1071_s25 + $0x600] sm:$0xff]  ;;  %v248_v49 = vld [vmem:[%s1071_s25 + $0x608] sm:$0xff] }
  0x2a   : > { %v250_v50 = vld [vmem:[%s1071_s25 + $0x640] sm:$0xff]  ;;  %247 = vst [vmem:[%s1079_s26 + $0x180] sm:$0xff] %v246_v48  ;;  %249 = vst [vmem:[%s1079_s26 + $0x188] sm:$0xff] %v248_v49  ;;  %v252_v51 = vld [vmem:[%s1071_s25 + $0x648] sm:$0xff] }
  0x2b   : > { %251 = vst [vmem:[%s1079_s26 + $0x190] sm:$0xff] %v250_v50  ;;  %v254_v52 = vld [vmem:[%s1071_s25 + $0x680] sm:$0xff]  ;;  %v256_v53 = vld [vmem:[%s1071_s25 + $0x688] sm:$0xff]  ;;  %253 = vst [vmem:[%s1079_s26 + $0x198] sm:$0xff] %v252_v51 }
  0x2c   : > { %255 = vst [vmem:[%s1079_s26 + $0x1a0] sm:$0xff] %v254_v52  ;;  %257 = vst [vmem:[%s1079_s26 + $0x1a8] sm:$0xff] %v256_v53 }
  0x2d PF: > { %p812_p5 = scmp.ge.s32.totalorder %s1014_s14, 1  ;;  %p262_p6 = scmp.lt.s32.totalorder %s1014_s14, 5 }
  0x2f   : > { %p263_p7 = pnand %p812_p5, %p262_p6 }
  0x30   : > { %s269_s27 = sand.u32 (!%p263_p7), 1, %s1006_s12   ;;  %v1189_v54 = vld [vmem:[%s1269_s0] sm:$0xff] (!%p263_p7)  ;;  %vm637_vm0 = vcmask (!%p263_p7), 719872   ;;  %v1016_v57 = vmov (!%p263_p7), 0   ;;  %vm641_vm1 = vcmask (!%p263_p7), 1043456   ;;  %s813_s7 = sshll.u32 (!%p263_p7), %s806_s15, 2 }
  0x31   : > { %266 = sbr.rel (%p263_p7) target bundleno = 328 (0x148), region = 51  ;;  %v355_v55 = vld [vmem:[%s1271_s2] sm:$0xff] (!%p263_p7)  ;;  %v816_v56 = vcombine.high (!%p263_p7), %v1189_v54, %v1189_v54  ;;  %907 = vset.pattern.permute.xlu0 (!%p263_p7), %v1016_v57  ;;  %p294_p8 = scmp.lt.s32.totalorder (!%p263_p7), %s813_s7, 15 }
  0x32   : > { %s881_s5 = smul.u32 (!%p263_p7), 432, %s269_s27  ;;  %358 = vperm.xlu0 (!%p263_p7), %907, %v355_v55   ;;  %v815_v55 = vcombine.low (!%p263_p7), %v1189_v54, %v1189_v54 }
  0x33   : > { %874 = vmatprep.mubr.msk.bf16.mxu0 (!%p263_p7), %vm637_vm0, %v816_v56  ;;  %876 = vmatprep.mubr.msk.bf16.mxu1 (!%p263_p7), %vm637_vm0, %v816_v56 }
  0x34   : > { %s1196_s6 = scalar_lea.vmem (!%p263_p7), [#allocation2], %s881_s5 }
  0x35   : > { %v908_v58 = vld [vmem:[%s1196_s6 + $0x4] ss:$16 sps:$4 sm:$0xff] (!%p263_p7)   ;;  %v910_v59 = vld [vmem:[%s1196_s6 + $0xc] ss:$16 sps:$4 sm:$0xff] (!%p263_p7)   ;;  %v912_v60 = vld [vmem:[%s1196_s6] ss:$16 sps:$4 sm:$0xff] (!%p263_p7)  }
  0x36   : > { %654 = vmatprep.subr.bf16.mxu0 (!%p263_p7), %v908_v58  ;;  %v913_v61 = vld [vmem:[%s1196_s6 + $0x8] ss:$16 sps:$4 sm:$0xff] (!%p263_p7)   ;;  %695 = vmatprep.subr.bf16.mxu1 (!%p263_p7), %v910_v59  ;;  %v914_v62 = vld [vmem:[%s1196_s6 + $0x24] ss:$16 sps:$4 sm:$0xff] (!%p263_p7)   ;;  %v916_v63 = vld [vmem:[%s1196_s6 + $0x2c] ss:$16 sps:$4 sm:$0xff] (!%p263_p7)  }
  0x37   : > { %655 = vmatpush1.bf16.msra.mxu0 (!%p263_p7), %v912_v60  ;;  %696 = vmatpush1.bf16.msra.mxu1 (!%p263_p7), %v913_v61  ;;  %v918_v0 = vld [vmem:[%s1196_s6 + $0x20] ss:$16 sps:$4 sm:$0xff] (!%p263_p7)   ;;  %v919_v1 = vld [vmem:[%s1196_s6 + $0x28] ss:$16 sps:$4 sm:$0xff] (!%p263_p7)   ;;  %v920_v2 = vld [vmem:[%s1196_s6 + $0x44] ss:$16 sps:$4 sm:$0xff] (!%p263_p7)  }
  0x38   : > { %656 = vmatprep.subr.bf16.mxu0 %v914_v62  ;;  %697 = vmatprep.subr.bf16.mxu1 %v916_v63  ;;  %v922_v3 = vld [vmem:[%s1196_s6 + $0x4c] ss:$16 sps:$4 sm:$0xff]   ;;  %v924_v4 = vld [vmem:[%s1196_s6 + $0x40] ss:$16 sps:$4 sm:$0xff]   ;;  %v925_v5 = vld [vmem:[%s1196_s6 + $0x48] ss:$16 sps:$4 sm:$0xff]  }
  0x39   : > { %v926_v6 = vld [vmem:[%s1196_s6 + $0x64] ss:$16 sps:$4 sm:$0xff]   ;;  %v928_v7 = vld [vmem:[%s1196_s6 + $0x6c] ss:$16 sps:$4 sm:$0xff]   ;;  %v930_v8 = vld [vmem:[%s1196_s6 + $0x60] ss:$16 sps:$4 sm:$0xff]  }
  0x3a   : > { %v931_v9 = vld [vmem:[%s1196_s6 + $0x68] ss:$16 sps:$4 sm:$0xff]   ;;  %v932_v10 = vld [vmem:[%s1196_s6 + $0x84] ss:$16 sps:$4 sm:$0xff]   ;;  %v934_v11 = vld [vmem:[%s1196_s6 + $0x8c] ss:$16 sps:$4 sm:$0xff]  }
  0x3b   : > { %657 = vmatpush1.bf16.msra.mxu0 %v918_v0  ;;  %698 = vmatpush1.bf16.msra.mxu1 %v919_v1  ;;  %v936_v12 = vld [vmem:[%s1196_s6 + $0x80] ss:$16 sps:$4 sm:$0xff]   ;;  %v937_v13 = vld [vmem:[%s1196_s6 + $0x88] ss:$16 sps:$4 sm:$0xff]   ;;  %v938_v14 = vld [vmem:[%s1196_s6 + $0xa4] ss:$16 sps:$4 sm:$0xff]  }
  0x3c   : > { %658 = vmatprep.subr.bf16.mxu0 %v920_v2  ;;  %699 = vmatprep.subr.bf16.mxu1 %v922_v3  ;;  %v940_v15 = vld [vmem:[%s1196_s6 + $0xac] ss:$16 sps:$4 sm:$0xff]   ;;  %v942_v16 = vld [vmem:[%s1196_s6 + $0xa0] ss:$16 sps:$4 sm:$0xff]   ;;  %v943_v17 = vld [vmem:[%s1196_s6 + $0xa8] ss:$16 sps:$4 sm:$0xff]  }
  0x3d   : > { %v944_v18 = vld [vmem:[%s1196_s6 + $0xc4] ss:$16 sps:$4 sm:$0xff]   ;;  %v946_v19 = vld [vmem:[%s1196_s6 + $0xcc] ss:$16 sps:$4 sm:$0xff]   ;;  %v948_v20 = vld [vmem:[%s1196_s6 + $0xc0] ss:$16 sps:$4 sm:$0xff]  }
  0x3e   : > { %v949_v21 = vld [vmem:[%s1196_s6 + $0xc8] ss:$16 sps:$4 sm:$0xff]   ;;  %v950_v22 = vld [vmem:[%s1196_s6 + $0xe4] ss:$16 sps:$4 sm:$0xff]   ;;  %v952_v23 = vld [vmem:[%s1196_s6 + $0xec] ss:$16 sps:$4 sm:$0xff]  }
  0x3f   : > { %659 = vmatpush1.bf16.msra.mxu0 %v924_v4  ;;  %700 = vmatpush1.bf16.msra.mxu1 %v925_v5  ;;  %v954_v24 = vld [vmem:[%s1196_s6 + $0xe0] ss:$16 sps:$4 sm:$0xff]   ;;  %v955_v25 = vld [vmem:[%s1196_s6 + $0xe8] ss:$16 sps:$4 sm:$0xff]   ;;  %v956_v26 = vld [vmem:[%s1196_s6 + $0x104] ss:$16 sps:$4 sm:$0xff]  }
  0x40   : > { %660 = vmatprep.subr.bf16.mxu0 %v926_v6  ;;  %701 = vmatprep.subr.bf16.mxu1 %v928_v7  ;;  %v958_v27 = vld [vmem:[%s1196_s6 + $0x10c] ss:$16 sps:$4 sm:$0xff]   ;;  %v960_v28 = vld [vmem:[%s1196_s6 + $0x100] ss:$16 sps:$4 sm:$0xff]   ;;  %v961_v29 = vld [vmem:[%s1196_s6 + $0x108] ss:$16 sps:$4 sm:$0xff]  }
  0x41   : > { %v962_v30 = vld [vmem:[%s1196_s6 + $0x124] ss:$16 sps:$4 sm:$0xff]   ;;  %v964_v31 = vld [vmem:[%s1196_s6 + $0x12c] ss:$16 sps:$4 sm:$0xff]   ;;  %v966_v32 = vld [vmem:[%s1196_s6 + $0x120] ss:$16 sps:$4 sm:$0xff]  }
  0x42   : > { %v967_v33 = vld [vmem:[%s1196_s6 + $0x128] ss:$16 sps:$4 sm:$0xff]   ;;  %v968_v34 = vld [vmem:[%s1196_s6 + $0x144] ss:$16 sps:$4 sm:$0xff]   ;;  %v970_v35 = vld [vmem:[%s1196_s6 + $0x14c] ss:$16 sps:$4 sm:$0xff]  }
  0x43   : > { %661 = vmatpush1.bf16.msra.mxu0 %v930_v8  ;;  %702 = vmatpush1.bf16.msra.mxu1 %v931_v9  ;;  %v972_v36 = vld [vmem:[%s1196_s6 + $0x140] ss:$16 sps:$4 sm:$0xff]   ;;  %v973_v37 = vld [vmem:[%s1196_s6 + $0x148] ss:$16 sps:$4 sm:$0xff]   ;;  %v974_v38 = vld [vmem:[%s1196_s6 + $0x164] ss:$16 sps:$4 sm:$0xff]  }
  0x44   : > { %662 = vmatprep.subr.bf16.mxu0 %v932_v10  ;;  %703 = vmatprep.subr.bf16.mxu1 %v934_v11  ;;  %v976_v39 = vld [vmem:[%s1196_s6 + $0x16c] ss:$16 sps:$4 sm:$0xff]   ;;  %v978_v40 = vld [vmem:[%s1196_s6 + $0x160] ss:$16 sps:$4 sm:$0xff]   ;;  %v979_v41 = vld [vmem:[%s1196_s6 + $0x168] ss:$16 sps:$4 sm:$0xff]  }
  0x45   : > { %v980_v42 = vld [vmem:[%s1196_s6 + $0x184] ss:$16 sps:$4 sm:$0xff]   ;;  %v982_v43 = vld [vmem:[%s1196_s6 + $0x18c] ss:$16 sps:$4 sm:$0xff]   ;;  %v984_v46 = vld [vmem:[%s1196_s6 + $0x180] ss:$16 sps:$4 sm:$0xff]  }
  0x46   : > { %v353_v44 = vld [vmem:[%s1196_s6 + $0x1a0] sm:$0xff]  ;;  %v354_v45 = vld [vmem:[%s1196_s6 + $0x1a8] sm:$0xff]  ;;  %s1277_s7 = smov (!%p294_p8, %s813_s7), 15 }
  0x47   : > { %663 = vmatpush1.bf16.msra.mxu0 %v936_v12  ;;  %704 = vmatpush1.bf16.msra.mxu1 %v937_v13  ;;  %v985_v47 = vld [vmem:[%s1196_s6 + $0x188] ss:$16 sps:$4 sm:$0xff]   ;;  %v870_v48 = vcombine.high %v353_v44, %v353_v44  ;;  %v872_v49 = vcombine.high %v354_v45, %v354_v45  ;;  %v869_v50 = vcombine.low %v353_v44, %v353_v44  ;;  %s814_s8 = sshll.u32 %s1277_s7, 3 }
  0x48   : > { %664 = vmatprep.subr.bf16.mxu0 %v938_v14  ;;  %705 = vmatprep.subr.bf16.mxu1 %v940_v15  ;;  %v871_v51 = vcombine.low %v354_v45, %v354_v45  ;;  %s297_s11 = scalar_lea.vmem %s1272_s3, %s814_s8 }
  0x49   : > { %v643_v52 = vsel %vm641_vm1, %v869_v50, 0 }
  0x4a   : > { %v649_v53 = vsel %vm641_vm1, %v871_v51, 0 }
  0x4b   : > { %665 = vmatpush1.bf16.msra.mxu0 %v942_v16  ;;  %706 = vmatpush1.bf16.msra.mxu1 %v943_v17 }
  0x4c   : > { %666 = vmatprep.subr.bf16.mxu0 %v944_v18  ;;  %707 = vmatprep.subr.bf16.mxu1 %v946_v19 }
  0x4f   : > { %667 = vmatpush1.bf16.msra.mxu0 %v948_v20  ;;  %708 = vmatpush1.bf16.msra.mxu1 %v949_v21 }
  0x50   : > { %668 = vmatprep.subr.bf16.mxu0 %v950_v22  ;;  %709 = vmatprep.subr.bf16.mxu1 %v952_v23 }
  0x53   : > { %669 = vmatpush1.bf16.msra.mxu0 %v954_v24  ;;  %710 = vmatpush1.bf16.msra.mxu1 %v955_v25 }
  0x54   : > { %670 = vmatprep.subr.bf16.mxu0 %v956_v26  ;;  %711 = vmatprep.subr.bf16.mxu1 %v958_v27 }
  0x57   : > { %671 = vmatpush1.bf16.msra.mxu0 %v960_v28  ;;  %712 = vmatpush1.bf16.msra.mxu1 %v961_v29 }
  0x58   : > { %672 = vmatprep.subr.bf16.mxu0 %v962_v30  ;;  %713 = vmatprep.subr.bf16.mxu1 %v964_v31 }
  0x5b   : > { %673 = vmatpush1.bf16.msra.mxu0 %v966_v32  ;;  %714 = vmatpush1.bf16.msra.mxu1 %v967_v33 }
  0x5c   : > { %674 = vmatprep.subr.bf16.mxu0 %v968_v34  ;;  %715 = vmatprep.subr.bf16.mxu1 %v970_v35 }
  0x5f   : > { %675 = vmatpush1.bf16.msra.mxu0 %v972_v36  ;;  %716 = vmatpush1.bf16.msra.mxu1 %v973_v37 }
  0x60   : > { %676 = vmatprep.subr.bf16.mxu0 %v974_v38  ;;  %717 = vmatprep.subr.bf16.mxu1 %v976_v39 }
  0x63   : > { %677 = vmatpush1.bf16.msra.mxu0 %v978_v40  ;;  %718 = vmatpush1.bf16.msra.mxu1 %v979_v41 }
  0x64   : > { %678 = vmatprep.subr.bf16.mxu0 %v980_v42  ;;  %719 = vmatprep.subr.bf16.mxu1 %v982_v43 }
  0x67   : > { %679 = vmatpush1.bf16.msra.mxu0 %v984_v46  ;;  %720 = vmatpush1.bf16.msra.mxu1 %v985_v47 }
  0x68   : > { %873 = vmatprep.subr.msk.bf16.mxu0 %vm641_vm1, %v870_v48  ;;  %875 = vmatprep.subr.msk.bf16.mxu1 %vm641_vm1, %v872_v49 }
  0x6b   : > { %681 = vmatpush1.bf16.msra.mxu0 %v643_v52  ;;  %722 = vmatpush1.bf16.msra.mxu1 %v649_v53 }
  0x6e   : > { %687 = vmatmul.mubr.bf16.vlgmr.msra.gmra.mrb[0].mxu0 %v815_v55  ;;  %728 = vmatmul.mubr.bf16.vlgmr.msra.gmra.mrb[0].mxu1 %v815_v55 }
  0xb1   : > { %v359_v56 = vpop.permute.xlu0 %358 }
 0x141   : > { %v688_v57 = vpop.f32.mrb[0].mxu0  ;;  %v729_v58 = vpop.f32.mrb[0].mxu1 }
 0x142   : > { %v689_v59 = vadd.f32 %v688_v57, %v359_v56  ;;  %v730_v60 = vadd.f32 %v729_v58, %v359_v56  ;;  %v690_v61 = vpop.f32.mrb[1].mxu0  ;;  %v731_v62 = vpop.f32.mrb[1].mxu1 }
 0x143   : > { %v691_v54 = vadd.f32 %v690_v61, %v359_v56  ;;  %v732_v63 = vadd.f32 %v731_v62, %v359_v56  ;;  %v692_v0 = vpop.f32.mrb[2].mxu0  ;;  %v733_v1 = vpop.f32.mrb[2].mxu1 }
 0x144   : > { %v736_v2 = vmax.f32 %v689_v59, 0.0  ;;  %v738_v3 = vmax.f32 %v730_v60, 0.0  ;;  %v693_v4 = vpop.f32.mrb[3].mxu0  ;;  %v734_v5 = vpop.f32.mrb[3].mxu1 }
 0x145   : > { %v737_v6 = vmax.f32 %v691_v54, 0.0  ;;  %v739_v7 = vmax.f32 %v732_v63, 0.0 }
 0x146   : > { %740 = vst [vmem:[%s297_s11] sm:$0xff] %v736_v2  ;;  %742 = vst [vmem:[%s297_s11 + $0x10] sm:$0xff] %v738_v3 }
 0x147   : > { %741 = vst [vmem:[%s297_s11 + $0x8] sm:$0xff] %v737_v6  ;;  %743 = vst [vmem:[%s297_s11 + $0x18] sm:$0xff] %v739_v7 }
 0x148 PF: > { %p10_p9 = scmp.ge.s32.totalorder %s1054_s16, 6   ;;  %s1273_s12 = smov %s1010_s13 }
 0x149   : > { %s1274_s13 = smov %s1063_s19  ;;  %s1275_s14 = smov %s1054_s16 }
 0x14a   :  { %12 = sbr.rel (!%p10_p9) target bundleno = 2 (0x2), region = 90 }

// kernel: unet_forward.10
= control target key start
LH: loop header
LB: loop body
LE: loop exit
PB: predicated region body
PF: predicated region fallthrough
CT: control target
= control target key end

     0   :  { %v634_v1 = vmov 0   ;;  %vm362_vm0 = vcmask 719872   ;;  %vm366_vm1 = vcmask 1043456   ;;  %s853_s1 = inlined_call_operand.vmem [shape: bf16[216,512], index: 1, kind: input, shape index: {}]   ;;  %s854_s0 = inlined_call_operand.vmem [shape: bf16[16,216], index: 0, kind: input, shape index: {}]   ;;  %s855_s2 = inlined_call_operand.vmem [shape: f32[16,1], index: 2, kind: input, shape index: {}]   ;;  %s856_s3 = inlined_call_operand.vmem [shape: f32[16,512], index: 3, kind: output, shape index: {}]  }
   0x1   :  { %v549_v0 = vld [vmem:[%s853_s1 + $0x4] ss:$16 sps:$4 sm:$0xff]   ;;  %548 = vset.pattern.permute.xlu0 %v634_v1  ;;  %v551_v2 = vld [vmem:[%s853_s1 + $0xc] ss:$16 sps:$4 sm:$0xff]   ;;  %v553_v3 = vld [vmem:[%s853_s1] ss:$16 sps:$4 sm:$0xff]  }
   0x2   :  { %379 = vmatprep.subr.bf16.mxu0 %v549_v0  ;;  %v554_v4 = vld [vmem:[%s853_s1 + $0x8] ss:$16 sps:$4 sm:$0xff]   ;;  %422 = vmatprep.subr.bf16.mxu1 %v551_v2  ;;  %v555_v5 = vld [vmem:[%s853_s1 + $0x24] ss:$16 sps:$4 sm:$0xff]   ;;  %v557_v6 = vld [vmem:[%s853_s1 + $0x2c] ss:$16 sps:$4 sm:$0xff]  }
   0x3   :  { %380 = vmatpush1.bf16.msra.mxu0 %v553_v3  ;;  %423 = vmatpush1.bf16.msra.mxu1 %v554_v4  ;;  %v559_v7 = vld [vmem:[%s853_s1 + $0x20] ss:$16 sps:$4 sm:$0xff]   ;;  %v560_v8 = vld [vmem:[%s853_s1 + $0x28] ss:$16 sps:$4 sm:$0xff]   ;;  %v561_v9 = vld [vmem:[%s853_s1 + $0x44] ss:$16 sps:$4 sm:$0xff]  }
   0x4   :  { %381 = vmatprep.subr.bf16.mxu0 %v555_v5  ;;  %424 = vmatprep.subr.bf16.mxu1 %v557_v6  ;;  %v563_v10 = vld [vmem:[%s853_s1 + $0x4c] ss:$16 sps:$4 sm:$0xff]   ;;  %v565_v11 = vld [vmem:[%s853_s1 + $0x40] ss:$16 sps:$4 sm:$0xff]   ;;  %v566_v12 = vld [vmem:[%s853_s1 + $0x48] ss:$16 sps:$4 sm:$0xff]  }
   0x5   :  { %v567_v13 = vld [vmem:[%s853_s1 + $0x64] ss:$16 sps:$4 sm:$0xff]   ;;  %v569_v14 = vld [vmem:[%s853_s1 + $0x6c] ss:$16 sps:$4 sm:$0xff]   ;;  %v571_v15 = vld [vmem:[%s853_s1 + $0x60] ss:$16 sps:$4 sm:$0xff]  }
   0x6   :  { %v572_v16 = vld [vmem:[%s853_s1 + $0x68] ss:$16 sps:$4 sm:$0xff]   ;;  %v573_v17 = vld [vmem:[%s853_s1 + $0x84] ss:$16 sps:$4 sm:$0xff]   ;;  %v575_v18 = vld [vmem:[%s853_s1 + $0x8c] ss:$16 sps:$4 sm:$0xff]  }
   0x7   :  { %382 = vmatpush1.bf16.msra.mxu0 %v559_v7  ;;  %425 = vmatpush1.bf16.msra.mxu1 %v560_v8  ;;  %v577_v19 = vld [vmem:[%s853_s1 + $0x80] ss:$16 sps:$4 sm:$0xff]   ;;  %v578_v20 = vld [vmem:[%s853_s1 + $0x88] ss:$16 sps:$4 sm:$0xff]   ;;  %v579_v21 = vld [vmem:[%s853_s1 + $0xa4] ss:$16 sps:$4 sm:$0xff]  }
   0x8   :  { %383 = vmatprep.subr.bf16.mxu0 %v561_v9  ;;  %426 = vmatprep.subr.bf16.mxu1 %v563_v10  ;;  %v581_v22 = vld [vmem:[%s853_s1 + $0xac] ss:$16 sps:$4 sm:$0xff]   ;;  %v583_v23 = vld [vmem:[%s853_s1 + $0xa0] ss:$16 sps:$4 sm:$0xff]   ;;  %v584_v24 = vld [vmem:[%s853_s1 + $0xa8] ss:$16 sps:$4 sm:$0xff]  }
   0x9   :  { %v585_v25 = vld [vmem:[%s853_s1 + $0xc4] ss:$16 sps:$4 sm:$0xff]   ;;  %v587_v26 = vld [vmem:[%s853_s1 + $0xcc] ss:$16 sps:$4 sm:$0xff]   ;;  %v589_v27 = vld [vmem:[%s853_s1 + $0xc0] ss:$16 sps:$4 sm:$0xff]  }
   0xa   :  { %v590_v28 = vld [vmem:[%s853_s1 + $0xc8] ss:$16 sps:$4 sm:$0xff]   ;;  %v591_v29 = vld [vmem:[%s853_s1 + $0xe4] ss:$16 sps:$4 sm:$0xff]   ;;  %v593_v30 = vld [vmem:[%s853_s1 + $0xec] ss:$16 sps:$4 sm:$0xff]  }
   0xb   :  { %384 = vmatpush1.bf16.msra.mxu0 %v565_v11  ;;  %427 = vmatpush1.bf16.msra.mxu1 %v566_v12  ;;  %v595_v31 = vld [vmem:[%s853_s1 + $0xe0] ss:$16 sps:$4 sm:$0xff]   ;;  %v596_v32 = vld [vmem:[%s853_s1 + $0xe8] ss:$16 sps:$4 sm:$0xff]   ;;  %v597_v33 = vld [vmem:[%s853_s1 + $0x104] ss:$16 sps:$4 sm:$0xff]  }
   0xc   :  { %385 = vmatprep.subr.bf16.mxu0 %v567_v13  ;;  %428 = vmatprep.subr.bf16.mxu1 %v569_v14  ;;  %v599_v34 = vld [vmem:[%s853_s1 + $0x10c] ss:$16 sps:$4 sm:$0xff]   ;;  %v601_v35 = vld [vmem:[%s853_s1 + $0x100] ss:$16 sps:$4 sm:$0xff]   ;;  %v602_v36 = vld [vmem:[%s853_s1 + $0x108] ss:$16 sps:$4 sm:$0xff]  }
   0xd   :  { %v603_v37 = vld [vmem:[%s853_s1 + $0x124] ss:$16 sps:$4 sm:$0xff]   ;;  %v605_v38 = vld [vmem:[%s853_s1 + $0x12c] ss:$16 sps:$4 sm:$0xff]   ;;  %v607_v39 = vld [vmem:[%s853_s1 + $0x120] ss:$16 sps:$4 sm:$0xff]  }
   0xe   :  { %v608_v40 = vld [vmem:[%s853_s1 + $0x128] ss:$16 sps:$4 sm:$0xff]   ;;  %v633_v41 = vld [vmem:[%s854_s0 + $0x4] ss:$8 sps:$4 sm:$0xff]   ;;  %v613_v45 = vld [vmem:[%s853_s1 + $0x140] ss:$16 sps:$4 sm:$0xff]  }
   0xf   :  { %386 = vmatpush1.bf16.msra.mxu0 %v571_v15  ;;  %429 = vmatpush1.bf16.msra.mxu1 %v572_v16  ;;  %v71_v42 = vld [vmem:[%s855_s2] sm:$0xff]  ;;  %v611_v44 = vld [vmem:[%s853_s1 + $0x14c] ss:$16 sps:$4 sm:$0xff]   ;;  %v614_v46 = vld [vmem:[%s853_s1 + $0x148] ss:$16 sps:$4 sm:$0xff]  }
  0x10   :  { %387 = vmatprep.subr.bf16.mxu0 %v573_v17  ;;  %430 = vmatprep.subr.bf16.mxu1 %v575_v18  ;;  %v609_v43 = vld [vmem:[%s853_s1 + $0x144] ss:$16 sps:$4 sm:$0xff]   ;;  %v72_v47 = vld [vmem:[%s855_s2 + $0x8] sm:$0xff]  ;;  %v619_v50 = vld [vmem:[%s853_s1 + $0x160] ss:$16 sps:$4 sm:$0xff]  }
  0x11   :  { %544 = vmatprep.mubr.msk.bf16.mxu0 %vm362_vm0, %v633_v41  ;;  %546 = vmatprep.mubr.msk.bf16.mxu1 %vm362_vm0, %v633_v41  ;;  %v615_v48 = vld [vmem:[%s853_s1 + $0x164] ss:$16 sps:$4 sm:$0xff]   ;;  %v617_v49 = vld [vmem:[%s853_s1 + $0x16c] ss:$16 sps:$4 sm:$0xff]   ;;  %v620_v51 = vld [vmem:[%s853_s1 + $0x168] ss:$16 sps:$4 sm:$0xff]  }
  0x12   :  { %75 = vperm.xlu0 %548, %v71_v42   ;;  %v621_v52 = vld [vmem:[%s853_s1 + $0x184] ss:$16 sps:$4 sm:$0xff]   ;;  %v623_v53 = vld [vmem:[%s853_s1 + $0x18c] ss:$16 sps:$4 sm:$0xff]   ;;  %v625_v56 = vld [vmem:[%s853_s1 + $0x180] ss:$16 sps:$4 sm:$0xff]  }
  0x13   :  { %388 = vmatpush1.bf16.msra.mxu0 %v577_v19  ;;  %431 = vmatpush1.bf16.msra.mxu1 %v578_v20  ;;  %v69_v54 = vld [vmem:[%s853_s1 + $0x1a0] sm:$0xff]  ;;  %v70_v55 = vld [vmem:[%s853_s1 + $0x1a8] sm:$0xff] }
  0x14   :  { %389 = vmatprep.subr.bf16.mxu0 %v579_v21  ;;  %432 = vmatprep.subr.bf16.mxu1 %v581_v22  ;;  %v626_v57 = vld [vmem:[%s853_s1 + $0x188] ss:$16 sps:$4 sm:$0xff]   ;;  %v540_v58 = vcombine.high %v69_v54, %v69_v54  ;;  %v542_v59 = vcombine.high %v70_v55, %v70_v55  ;;  %v539_v60 = vcombine.low %v69_v54, %v69_v54 }
  0x15   :  { %v541_v61 = vcombine.low %v70_v55, %v70_v55  ;;  %v631_v0 = vld [vmem:[%s854_s0] ss:$8 sps:$4 sm:$0xff]  }
  0x16   :  { %80 = vperm.xlu0 %548, %v72_v47   ;;  %v368_v62 = vsel %vm366_vm1, %v539_v60, 0 }
  0x17   :  { %390 = vmatpush1.bf16.msra.mxu0 %v583_v23  ;;  %433 = vmatpush1.bf16.msra.mxu1 %v584_v24  ;;  %v374_v63 = vsel %vm366_vm1, %v541_v61, 0 }
  0x18   :  { %391 = vmatprep.subr.bf16.mxu0 %v585_v25  ;;  %434 = vmatprep.subr.bf16.mxu1 %v587_v26 }
  0x1b   :  { %392 = vmatpush1.bf16.msra.mxu0 %v589_v27  ;;  %435 = vmatpush1.bf16.msra.mxu1 %v590_v28 }
  0x1c   :  { %393 = vmatprep.subr.bf16.mxu0 %v591_v29  ;;  %436 = vmatprep.subr.bf16.mxu1 %v593_v30 }
  0x1f   :  { %394 = vmatpush1.bf16.msra.mxu0 %v595_v31  ;;  %437 = vmatpush1.bf16.msra.mxu1 %v596_v32 }
  0x20   :  { %395 = vmatprep.subr.bf16.mxu0 %v597_v33  ;;  %438 = vmatprep.subr.bf16.mxu1 %v599_v34 }
  0x23   :  { %396 = vmatpush1.bf16.msra.mxu0 %v601_v35  ;;  %439 = vmatpush1.bf16.msra.mxu1 %v602_v36 }
  0x24   :  { %397 = vmatprep.subr.bf16.mxu0 %v603_v37  ;;  %440 = vmatprep.subr.bf16.mxu1 %v605_v38 }
  0x27   :  { %398 = vmatpush1.bf16.msra.mxu0 %v607_v39  ;;  %441 = vmatpush1.bf16.msra.mxu1 %v608_v40 }
  0x28   :  { %399 = vmatprep.subr.bf16.mxu0 %v609_v43  ;;  %442 = vmatprep.subr.bf16.mxu1 %v611_v44 }
  0x2b   :  { %400 = vmatpush1.bf16.msra.mxu0 %v613_v45  ;;  %443 = vmatpush1.bf16.msra.mxu1 %v614_v46 }
  0x2c   :  { %401 = vmatprep.subr.bf16.mxu0 %v615_v48  ;;  %444 = vmatprep.subr.bf16.mxu1 %v617_v49 }
  0x2f   :  { %402 = vmatpush1.bf16.msra.mxu0 %v619_v50  ;;  %445 = vmatpush1.bf16.msra.mxu1 %v620_v51 }
  0x30   :  { %403 = vmatprep.subr.bf16.mxu0 %v621_v52  ;;  %446 = vmatprep.subr.bf16.mxu1 %v623_v53 }
  0x33   :  { %404 = vmatpush1.bf16.msra.mxu0 %v625_v56  ;;  %447 = vmatpush1.bf16.msra.mxu1 %v626_v57 }
  0x34   :  { %543 = vmatprep.subr.msk.bf16.mxu0 %vm366_vm1, %v540_v58  ;;  %545 = vmatprep.subr.msk.bf16.mxu1 %vm366_vm1, %v542_v59 }
  0x37   :  { %406 = vmatpush1.bf16.msra.mxu0 %v368_v62  ;;  %449 = vmatpush1.bf16.msra.mxu1 %v374_v63 }
  0x3a   :  { %412 = vmatmul.mubr.bf16.vlgmr.msra.gmra.mrb[0].mxu0 %v631_v0  ;;  %455 = vmatmul.mubr.bf16.vlgmr.msra.gmra.mrb[0].mxu1 %v631_v0 }
  0x91   :  { %v76_v1 = vpop.permute.xlu0 %75 }
  0x95   :  { %v81_v2 = vpop.permute.xlu0 %80 }
 0x10d   :  { %v413_v3 = vpop.f32.mrb[0].mxu0  ;;  %v456_v4 = vpop.f32.mrb[0].mxu1 }
 0x10e   :  { %v414_v5 = vadd.f32 %v413_v3, %v76_v1  ;;  %v457_v6 = vadd.f32 %v456_v4, %v76_v1  ;;  %v415_v7 = vpop.f32.mrb[1].mxu0  ;;  %v458_v8 = vpop.f32.mrb[1].mxu1 }
 0x10f   :  { %v416_v9 = vadd.f32 %v415_v7, %v76_v1  ;;  %v459_v10 = vadd.f32 %v458_v8, %v76_v1  ;;  %v417_v11 = vpop.f32.mrb[2].mxu0  ;;  %v460_v12 = vpop.f32.mrb[2].mxu1 }
 0x110   :  { %v465_v13 = vmax.f32 %v414_v5, 0.0  ;;  %v467_v14 = vmax.f32 %v457_v6, 0.0  ;;  %v418_v15 = vadd.f32 %v417_v11, %v81_v2  ;;  %v461_v16 = vadd.f32 %v460_v12, %v81_v2  ;;  %v419_v17 = vpop.f32.mrb[3].mxu0  ;;  %v462_v18 = vpop.f32.mrb[3].mxu1 }
 0x111   :  { %v466_v19 = vmax.f32 %v416_v9, 0.0  ;;  %v468_v20 = vmax.f32 %v459_v10, 0.0  ;;  %v420_v21 = vadd.f32 %v419_v17, %v81_v2  ;;  %v463_v22 = vadd.f32 %v462_v18, %v81_v2 }
 0x112   :  { %473 = vst [vmem:[%s856_s3] sm:$0xff] %v465_v13  ;;  %475 = vst [vmem:[%s856_s3 + $0x10] sm:$0xff] %v467_v14  ;;  %v469_v23 = vmax.f32 %v418_v15, 0.0  ;;  %v471_v24 = vmax.f32 %v461_v16, 0.0 }
 0x113   :  { %474 = vst [vmem:[%s856_s3 + $0x8] sm:$0xff] %v466_v19  ;;  %476 = vst [vmem:[%s856_s3 + $0x18] sm:$0xff] %v468_v20  ;;  %v470_v25 = vmax.f32 %v420_v21, 0.0  ;;  %v472_v26 = vmax.f32 %v463_v22, 0.0 }
 0x114   :  { %477 = vst [vmem:[%s856_s3 + $0x20] sm:$0xff] %v469_v23  ;;  %479 = vst [vmem:[%s856_s3 + $0x30] sm:$0xff] %v471_v24 }
 0x115   :  { %478 = vst [vmem:[%s856_s3 + $0x28] sm:$0xff] %v470_v25  ;;  %480 = vst [vmem:[%s856_s3 + $0x38] sm:$0xff] %v472_v26 }

// kernel: unet_forward.11
= control target key start
LH: loop header
LB: loop body
LE: loop exit
PB: predicated region body
PF: predicated region fallthrough
CT: control target
= control target key end

     0   :  { %v1194_v1 = vmov 0   ;;  %vm698_vm0 = vcmask 392192   ;;  %s1581_s1 = inlined_call_operand.vmem [shape: bf16[432,512], index: 1, kind: input, shape index: {}]   ;;  %s1582_s0 = inlined_call_operand.vmem [shape: bf16[16,432], index: 0, kind: input, shape index: {}]   ;;  %s1583_s2 = inlined_call_operand.vmem [shape: f32[16,1], index: 2, kind: input, shape index: {}]   ;;  %s1584_s3 = inlined_call_operand.vmem [shape: f32[16,512], index: 3, kind: output, shape index: {}]  }
   0x1   :  { %v1026_v0 = vld [vmem:[%s1581_s1 + $0x4] ss:$16 sps:$4 sm:$0xff]   ;;  %1025 = vset.pattern.permute.xlu0 %v1194_v1  ;;  %v1028_v2 = vld [vmem:[%s1581_s1 + $0xc] ss:$16 sps:$4 sm:$0xff]   ;;  %v1030_v3 = vld [vmem:[%s1581_s1] ss:$16 sps:$4 sm:$0xff]  }
   0x2   :  { %702 = vmatprep.subr.bf16.mxu0 %v1026_v0  ;;  %v1031_v4 = vld [vmem:[%s1581_s1 + $0x8] ss:$16 sps:$4 sm:$0xff]   ;;  %788 = vmatprep.subr.bf16.mxu1 %v1028_v2  ;;  %v1032_v5 = vld [vmem:[%s1581_s1 + $0x24] ss:$16 sps:$4 sm:$0xff]   ;;  %v1034_v6 = vld [vmem:[%s1581_s1 + $0x2c] ss:$16 sps:$4 sm:$0xff]  }
   0x3   :  { %703 = vmatpush1.bf16.msra.mxu0 %v1030_v3  ;;  %789 = vmatpush1.bf16.msra.mxu1 %v1031_v4  ;;  %v1036_v7 = vld [vmem:[%s1581_s1 + $0x20] ss:$16 sps:$4 sm:$0xff]   ;;  %v1037_v8 = vld [vmem:[%s1581_s1 + $0x28] ss:$16 sps:$4 sm:$0xff]   ;;  %v1038_v9 = vld [vmem:[%s1581_s1 + $0x44] ss:$16 sps:$4 sm:$0xff]  }
   0x4   :  { %704 = vmatprep.subr.bf16.mxu0 %v1032_v5  ;;  %790 = vmatprep.subr.bf16.mxu1 %v1034_v6  ;;  %v1040_v10 = vld [vmem:[%s1581_s1 + $0x4c] ss:$16 sps:$4 sm:$0xff]   ;;  %v1042_v11 = vld [vmem:[%s1581_s1 + $0x40] ss:$16 sps:$4 sm:$0xff]   ;;  %v1043_v12 = vld [vmem:[%s1581_s1 + $0x48] ss:$16 sps:$4 sm:$0xff]  }
   0x5   :  { %v1044_v13 = vld [vmem:[%s1581_s1 + $0x64] ss:$16 sps:$4 sm:$0xff]   ;;  %v1046_v14 = vld [vmem:[%s1581_s1 + $0x6c] ss:$16 sps:$4 sm:$0xff]   ;;  %v1048_v15 = vld [vmem:[%s1581_s1 + $0x60] ss:$16 sps:$4 sm:$0xff]  }
   0x6   :  { %v1049_v16 = vld [vmem:[%s1581_s1 + $0x68] ss:$16 sps:$4 sm:$0xff]   ;;  %v1050_v17 = vld [vmem:[%s1581_s1 + $0x84] ss:$16 sps:$4 sm:$0xff]   ;;  %v1052_v18 = vld [vmem:[%s1581_s1 + $0x8c] ss:$16 sps:$4 sm:$0xff]  }
   0x7   :  { %705 = vmatpush1.bf16.msra.mxu0 %v1036_v7  ;;  %791 = vmatpush1.bf16.msra.mxu1 %v1037_v8  ;;  %v1054_v19 = vld [vmem:[%s1581_s1 + $0x80] ss:$16 sps:$4 sm:$0xff]   ;;  %v1055_v20 = vld [vmem:[%s1581_s1 + $0x88] ss:$16 sps:$4 sm:$0xff]   ;;  %v1056_v21 = vld [vmem:[%s1581_s1 + $0xa4] ss:$16 sps:$4 sm:$0xff]  }
   0x8   :  { %706 = vmatprep.subr.bf16.mxu0 %v1038_v9  ;;  %792 = vmatprep.subr.bf16.mxu1 %v1040_v10  ;;  %v1058_v22 = vld [vmem:[%s1581_s1 + $0xac] ss:$16 sps:$4 sm:$0xff]   ;;  %v1060_v23 = vld [vmem:[%s1581_s1 + $0xa0] ss:$16 sps:$4 sm:$0xff]   ;;  %v1061_v24 = vld [vmem:[%s1581_s1 + $0xa8] ss:$16 sps:$4 sm:$0xff]  }
   0x9   :  { %v1062_v25 = vld [vmem:[%s1581_s1 + $0xc4] ss:$16 sps:$4 sm:$0xff]   ;;  %v1064_v26 = vld [vmem:[%s1581_s1 + $0xcc] ss:$16 sps:$4 sm:$0xff]   ;;  %v1066_v27 = vld [vmem:[%s1581_s1 + $0xc0] ss:$16 sps:$4 sm:$0xff]  }
   0xa   :  { %v1067_v28 = vld [vmem:[%s1581_s1 + $0xc8] ss:$16 sps:$4 sm:$0xff]   ;;  %v1068_v29 = vld [vmem:[%s1581_s1 + $0xe4] ss:$16 sps:$4 sm:$0xff]   ;;  %v1070_v30 = vld [vmem:[%s1581_s1 + $0xec] ss:$16 sps:$4 sm:$0xff]  }
   0xb   :  { %707 = vmatpush1.bf16.msra.mxu0 %v1042_v11  ;;  %793 = vmatpush1.bf16.msra.mxu1 %v1043_v12  ;;  %v1072_v31 = vld [vmem:[%s1581_s1 + $0xe0] ss:$16 sps:$4 sm:$0xff]   ;;  %v1073_v32 = vld [vmem:[%s1581_s1 + $0xe8] ss:$16 sps:$4 sm:$0xff]   ;;  %v1074_v33 = vld [vmem:[%s1581_s1 + $0x104] ss:$16 sps:$4 sm:$0xff]  }
   0xc   :  { %708 = vmatprep.subr.bf16.mxu0 %v1044_v13  ;;  %794 = vmatprep.subr.bf16.mxu1 %v1046_v14  ;;  %v1076_v34 = vld [vmem:[%s1581_s1 + $0x10c] ss:$16 sps:$4 sm:$0xff]   ;;  %v1078_v35 = vld [vmem:[%s1581_s1 + $0x100] ss:$16 sps:$4 sm:$0xff]   ;;  %v1079_v36 = vld [vmem:[%s1581_s1 + $0x108] ss:$16 sps:$4 sm:$0xff]  }
   0xd   :  { %v1080_v37 = vld [vmem:[%s1581_s1 + $0x124] ss:$16 sps:$4 sm:$0xff]   ;;  %v1082_v38 = vld [vmem:[%s1581_s1 + $0x12c] ss:$16 sps:$4 sm:$0xff]   ;;  %v1084_v39 = vld [vmem:[%s1581_s1 + $0x120] ss:$16 sps:$4 sm:$0xff]  }
   0xe   :  { %v1085_v40 = vld [vmem:[%s1581_s1 + $0x128] ss:$16 sps:$4 sm:$0xff]   ;;  %v1086_v41 = vld [vmem:[%s1581_s1 + $0x144] ss:$16 sps:$4 sm:$0xff]   ;;  %v1088_v42 = vld [vmem:[%s1581_s1 + $0x14c] ss:$16 sps:$4 sm:$0xff]  }
   0xf   :  { %709 = vmatpush1.bf16.msra.mxu0 %v1048_v15  ;;  %795 = vmatpush1.bf16.msra.mxu1 %v1049_v16  ;;  %v1090_v43 = vld [vmem:[%s1581_s1 + $0x140] ss:$16 sps:$4 sm:$0xff]   ;;  %v1091_v44 = vld [vmem:[%s1581_s1 + $0x148] ss:$16 sps:$4 sm:$0xff]   ;;  %v1092_v45 = vld [vmem:[%s1581_s1 + $0x164] ss:$16 sps:$4 sm:$0xff]  }
  0x10   :  { %710 = vmatprep.subr.bf16.mxu0 %v1050_v17  ;;  %796 = vmatprep.subr.bf16.mxu1 %v1052_v18  ;;  %v1094_v46 = vld [vmem:[%s1581_s1 + $0x16c] ss:$16 sps:$4 sm:$0xff]   ;;  %v1096_v47 = vld [vmem:[%s1581_s1 + $0x160] ss:$16 sps:$4 sm:$0xff]   ;;  %v1097_v48 = vld [vmem:[%s1581_s1 + $0x168] ss:$16 sps:$4 sm:$0xff]  }
  0x11   :  { %v1124_v49 = vld [vmem:[%s1582_s0 + $0x4] ss:$16 sps:$4 sm:$0xff]   ;;  %v1100_v51 = vld [vmem:[%s1581_s1 + $0x18c] ss:$16 sps:$4 sm:$0xff]   ;;  %v1102_v52 = vld [vmem:[%s1581_s1 + $0x180] ss:$16 sps:$4 sm:$0xff]  }
  0x12   :  { %v1098_v50 = vld [vmem:[%s1581_s1 + $0x184] ss:$16 sps:$4 sm:$0xff]   ;;  %734 = vmatprep.mubr.bf16.mxu0 %v1124_v49  ;;  %820 = vmatprep.mubr.bf16.mxu1 %v1124_v49  ;;  %v1103_v53 = vld [vmem:[%s1581_s1 + $0x188] ss:$16 sps:$4 sm:$0xff]   ;;  %v1106_v55 = vld [vmem:[%s1581_s1 + $0x1ac] ss:$16 sps:$4 sm:$0xff]  }
  0x13   :  { %711 = vmatpush1.bf16.msra.mxu0 %v1054_v19  ;;  %797 = vmatpush1.bf16.msra.mxu1 %v1055_v20  ;;  %v1104_v54 = vld [vmem:[%s1581_s1 + $0x1a4] ss:$16 sps:$4 sm:$0xff]   ;;  %v1108_v56 = vld [vmem:[%s1581_s1 + $0x1a0] ss:$16 sps:$4 sm:$0xff]   ;;  %v1109_v57 = vld [vmem:[%s1581_s1 + $0x1a8] ss:$16 sps:$4 sm:$0xff]  }
  0x14   :  { %712 = vmatprep.subr.bf16.mxu0 %v1056_v21  ;;  %798 = vmatprep.subr.bf16.mxu1 %v1058_v22  ;;  %v1110_v58 = vld [vmem:[%s1581_s1 + $0x1c4] ss:$16 sps:$4 sm:$0xff]   ;;  %v1112_v59 = vld [vmem:[%s1581_s1 + $0x1cc] ss:$16 sps:$4 sm:$0xff]   ;;  %v1114_v60 = vld [vmem:[%s1581_s1 + $0x1c0] ss:$16 sps:$4 sm:$0xff]  }
  0x15   :  { %v1115_v61 = vld [vmem:[%s1581_s1 + $0x1c8] ss:$16 sps:$4 sm:$0xff]   ;;  %v1116_v62 = vld [vmem:[%s1581_s1 + $0x1e4] ss:$16 sps:$4 sm:$0xff]   ;;  %v1118_v63 = vld [vmem:[%s1581_s1 + $0x1ec] ss:$16 sps:$4 sm:$0xff]  }
  0x16   :  { %v1120_v0 = vld [vmem:[%s1581_s1 + $0x1e0] ss:$16 sps:$4 sm:$0xff]   ;;  %v1121_v1 = vld [vmem:[%s1581_s1 + $0x1e8] ss:$16 sps:$4 sm:$0xff]   ;;  %v1127_v2 = vld [vmem:[%s1581_s1 + $0x204] ss:$16 sps:$4 sm:$0xff]  }
  0x17   :  { %713 = vmatpush1.bf16.msra.mxu0 %v1060_v23  ;;  %799 = vmatpush1.bf16.msra.mxu1 %v1061_v24  ;;  %v1130_v3 = vld [vmem:[%s1581_s1 + $0x20c] ss:$16 sps:$4 sm:$0xff]   ;;  %v1122_v4 = vld [vmem:[%s1582_s0] ss:$16 sps:$4 sm:$0xff]   ;;  %v1128_v6 = vld [vmem:[%s1581_s1 + $0x208] ss:$16 sps:$4 sm:$0xff]  }
  0x18   :  { %714 = vmatprep.subr.bf16.mxu0 %v1062_v25  ;;  %800 = vmatprep.subr.bf16.mxu1 %v1064_v26  ;;  %v1125_v5 = vld [vmem:[%s1581_s1 + $0x200] ss:$16 sps:$4 sm:$0xff]   ;;  %v1133_v7 = vld [vmem:[%s1581_s1 + $0x224] ss:$16 sps:$4 sm:$0xff]   ;;  %v1136_v8 = vld [vmem:[%s1581_s1 + $0x22c] ss:$16 sps:$4 sm:$0xff]  }
  0x19   :  { %v1131_v9 = vld [vmem:[%s1581_s1 + $0x220] ss:$16 sps:$4 sm:$0xff]   ;;  %v1134_v10 = vld [vmem:[%s1581_s1 + $0x228] ss:$16 sps:$4 sm:$0xff]   ;;  %v1139_v11 = vld [vmem:[%s1581_s1 + $0x244] ss:$16 sps:$4 sm:$0xff]  }
  0x1a   :  { %v1142_v12 = vld [vmem:[%s1581_s1 + $0x24c] ss:$16 sps:$4 sm:$0xff]   ;;  %v1137_v13 = vld [vmem:[%s1581_s1 + $0x240] ss:$16 sps:$4 sm:$0xff]   ;;  %v1140_v14 = vld [vmem:[%s1581_s1 + $0x248] ss:$16 sps:$4 sm:$0xff]  }
  0x1b   :  { %715 = vmatpush1.bf16.msra.mxu0 %v1066_v27  ;;  %801 = vmatpush1.bf16.msra.mxu1 %v1067_v28  ;;  %v1145_v15 = vld [vmem:[%s1581_s1 + $0x264] ss:$16 sps:$4 sm:$0xff]   ;;  %v1148_v16 = vld [vmem:[%s1581_s1 + $0x26c] ss:$16 sps:$4 sm:$0xff]   ;;  %v1143_v19 = vld [vmem:[%s1581_s1 + $0x260] ss:$16 sps:$4 sm:$0xff]  }
  0x1c   :  { %716 = vmatprep.subr.bf16.mxu0 %v1068_v29  ;;  %802 = vmatprep.subr.bf16.mxu1 %v1070_v30  ;;  %v1191_v17 = vld [vmem:[%s1582_s0 + $0xc] ss:$16 sps:$4 sm:$0xff]   ;;  %v127_v18 = vld [vmem:[%s1583_s2] sm:$0xff]  ;;  %v1146_v20 = vld [vmem:[%s1581_s1 + $0x268] ss:$16 sps:$4 sm:$0xff]  }
  0x1d   :  { %131 = vperm.xlu0 %1025, %v127_v18   ;;  %v128_v21 = vld [vmem:[%s1583_s2 + $0x8] sm:$0xff]  ;;  %v1151_v22 = vld [vmem:[%s1581_s1 + $0x284] ss:$16 sps:$4 sm:$0xff]   ;;  %v1149_v24 = vld [vmem:[%s1581_s1 + $0x280] ss:$16 sps:$4 sm:$0xff]  }
  0x1e   :  { %v1154_v23 = vld [vmem:[%s1581_s1 + $0x28c] ss:$16 sps:$4 sm:$0xff]   ;;  %v1152_v25 = vld [vmem:[%s1581_s1 + $0x288] ss:$16 sps:$4 sm:$0xff]   ;;  %v1157_v26 = vld [vmem:[%s1581_s1 + $0x2a4] ss:$16 sps:$4 sm:$0xff]  }
  0x1f   :  { %717 = vmatpush1.bf16.msra.mxu0 %v1072_v31  ;;  %803 = vmatpush1.bf16.msra.mxu1 %v1073_v32  ;;  %v1160_v27 = vld [vmem:[%s1581_s1 + $0x2ac] ss:$16 sps:$4 sm:$0xff]   ;;  %v1155_v28 = vld [vmem:[%s1581_s1 + $0x2a0] ss:$16 sps:$4 sm:$0xff]   ;;  %v1158_v29 = vld [vmem:[%s1581_s1 + $0x2a8] ss:$16 sps:$4 sm:$0xff]  }
  0x20   :  { %718 = vmatprep.subr.bf16.mxu0 %v1074_v33  ;;  %804 = vmatprep.subr.bf16.mxu1 %v1076_v34  ;;  %v1163_v30 = vld [vmem:[%s1581_s1 + $0x2c4] ss:$16 sps:$4 sm:$0xff]   ;;  %v1166_v31 = vld [vmem:[%s1581_s1 + $0x2cc] ss:$16 sps:$4 sm:$0xff]   ;;  %v1161_v32 = vld [vmem:[%s1581_s1 + $0x2c0] ss:$16 sps:$4 sm:$0xff]  }
  0x21   :  { %136 = vperm.xlu0 %1025, %v128_v21   ;;  %v1164_v33 = vld [vmem:[%s1581_s1 + $0x2c8] ss:$16 sps:$4 sm:$0xff]   ;;  %v1169_v34 = vld [vmem:[%s1581_s1 + $0x2e4] ss:$16 sps:$4 sm:$0xff]  }
  0x22   :  { %v1188_v49 = vld [vmem:[%s1581_s1 + $0x348] ss:$16 sps:$4 sm:$0xff]  }
  0x23   :  { %719 = vmatpush1.bf16.msra.mxu0 %v1078_v35  ;;  %805 = vmatpush1.bf16.msra.mxu1 %v1079_v36  ;;  %v1172_v35 = vld [vmem:[%s1581_s1 + $0x2ec] ss:$16 sps:$4 sm:$0xff]   ;;  %v1167_v36 = vld [vmem:[%s1581_s1 + $0x2e0] ss:$16 sps:$4 sm:$0xff]  }
  0x24   :  { %720 = vmatprep.subr.bf16.mxu0 %v1080_v37  ;;  %806 = vmatprep.subr.bf16.mxu1 %v1082_v38  ;;  %v1170_v37 = vld [vmem:[%s1581_s1 + $0x2e8] ss:$16 sps:$4 sm:$0xff]   ;;  %v1175_v38 = vld [vmem:[%s1581_s1 + $0x304] ss:$16 sps:$4 sm:$0xff]  }
  0x27   :  { %721 = vmatpush1.bf16.msra.mxu0 %v1084_v39  ;;  %807 = vmatpush1.bf16.msra.mxu1 %v1085_v40  ;;  %v1178_v39 = vld [vmem:[%s1581_s1 + $0x30c] ss:$16 sps:$4 sm:$0xff]   ;;  %v1173_v40 = vld [vmem:[%s1581_s1 + $0x300] ss:$16 sps:$4 sm:$0xff]  }
  0x28   :  { %722 = vmatprep.subr.bf16.mxu0 %v1086_v41  ;;  %808 = vmatprep.subr.bf16.mxu1 %v1088_v42  ;;  %v1176_v41 = vld [vmem:[%s1581_s1 + $0x308] ss:$16 sps:$4 sm:$0xff]   ;;  %v1181_v42 = vld [vmem:[%s1581_s1 + $0x324] ss:$16 sps:$4 sm:$0xff]  }
  0x2b   :  { %723 = vmatpush1.bf16.msra.mxu0 %v1090_v43  ;;  %809 = vmatpush1.bf16.msra.mxu1 %v1091_v44  ;;  %v1184_v43 = vld [vmem:[%s1581_s1 + $0x32c] ss:$16 sps:$4 sm:$0xff]   ;;  %v1179_v44 = vld [vmem:[%s1581_s1 + $0x320] ss:$16 sps:$4 sm:$0xff]  }
  0x2c   :  { %724 = vmatprep.subr.bf16.mxu0 %v1092_v45  ;;  %810 = vmatprep.subr.bf16.mxu1 %v1094_v46  ;;  %v1182_v45 = vld [vmem:[%s1581_s1 + $0x328] ss:$16 sps:$4 sm:$0xff]   ;;  %v1187_v46 = vld [vmem:[%s1581_s1 + $0x344] ss:$16 sps:$4 sm:$0xff]  }
  0x2f   :  { %725 = vmatpush1.bf16.msra.mxu0 %v1096_v47  ;;  %811 = vmatpush1.bf16.msra.mxu1 %v1097_v48  ;;  %v1190_v47 = vld [vmem:[%s1581_s1 + $0x34c] ss:$16 sps:$4 sm:$0xff]   ;;  %v1185_v48 = vld [vmem:[%s1581_s1 + $0x340] ss:$16 sps:$4 sm:$0xff]  }
  0x30   :  { %726 = vmatprep.subr.bf16.mxu0 %v1098_v50  ;;  %812 = vmatprep.subr.bf16.mxu1 %v1100_v51  ;;  %v1193_v50 = vld [vmem:[%s1582_s0 + $0x8] ss:$16 sps:$4 sm:$0xff]  }
  0x33   :  { %727 = vmatpush1.bf16.msra.mxu0 %v1102_v52  ;;  %813 = vmatpush1.bf16.msra.mxu1 %v1103_v53 }
  0x34   :  { %728 = vmatprep.subr.bf16.mxu0 %v1104_v54  ;;  %814 = vmatprep.subr.bf16.mxu1 %v1106_v55 }
  0x37   :  { %729 = vmatpush1.bf16.msra.mxu0 %v1108_v56  ;;  %815 = vmatpush1.bf16.msra.mxu1 %v1109_v57 }
  0x38   :  { %730 = vmatprep.subr.bf16.mxu0 %v1110_v58  ;;  %816 = vmatprep.subr.bf16.mxu1 %v1112_v59 }
  0x3b   :  { %731 = vmatpush1.bf16.msra.mxu0 %v1114_v60  ;;  %817 = vmatpush1.bf16.msra.mxu1 %v1115_v61 }
  0x3c   :  { %732 = vmatprep.subr.bf16.mxu0 %v1116_v62  ;;  %818 = vmatprep.subr.bf16.mxu1 %v1118_v63 }
  0x3f   :  { %733 = vmatpush1.bf16.msra.mxu0 %v1120_v0  ;;  %819 = vmatpush1.bf16.msra.mxu1 %v1121_v1 }
  0x40   :  { %745 = vmatprep.subr.bf16.mxu0 %v1127_v2  ;;  %831 = vmatprep.subr.bf16.mxu1 %v1130_v3 }
  0x42   :  { %735 = vmatmul.mubr.bf16.vlgmr.msra.gmra.mrb[0].mxu0 %v1122_v4  ;;  %821 = vmatmul.mubr.bf16.vlgmr.msra.gmra.mrb[0].mxu1 %v1122_v4 }
  0x43   :  { %746 = vmatpush1.bf16.msra.mxu0 %v1125_v5  ;;  %832 = vmatpush1.bf16.msra.mxu1 %v1128_v6 }
  0x44   :  { %747 = vmatprep.subr.bf16.mxu0 %v1133_v7  ;;  %833 = vmatprep.subr.bf16.mxu1 %v1136_v8 }
  0x45   :  { %1006 = vmatprep.mubr.msk.bf16.mxu0 %vm698_vm0, %v1191_v17  ;;  %1007 = vmatprep.mubr.msk.bf16.mxu1 %vm698_vm0, %v1191_v17 }
  0x47   :  { %748 = vmatpush1.bf16.msra.mxu0 %v1131_v9  ;;  %834 = vmatpush1.bf16.msra.mxu1 %v1134_v10 }
  0x48   :  { %749 = vmatprep.subr.bf16.mxu0 %v1139_v11  ;;  %835 = vmatprep.subr.bf16.mxu1 %v1142_v12 }
  0x4b   :  { %750 = vmatpush1.bf16.msra.mxu0 %v1137_v13  ;;  %836 = vmatpush1.bf16.msra.mxu1 %v1140_v14 }
  0x4c   :  { %751 = vmatprep.subr.bf16.mxu0 %v1145_v15  ;;  %837 = vmatprep.subr.bf16.mxu1 %v1148_v16 }
  0x4f   :  { %752 = vmatpush1.bf16.msra.mxu0 %v1143_v19  ;;  %838 = vmatpush1.bf16.msra.mxu1 %v1146_v20 }
  0x50   :  { %753 = vmatprep.subr.bf16.mxu0 %v1151_v22  ;;  %839 = vmatprep.subr.bf16.mxu1 %v1154_v23 }
  0x53   :  { %754 = vmatpush1.bf16.msra.mxu0 %v1149_v24  ;;  %840 = vmatpush1.bf16.msra.mxu1 %v1152_v25 }
  0x54   :  { %755 = vmatprep.subr.bf16.mxu0 %v1157_v26  ;;  %841 = vmatprep.subr.bf16.mxu1 %v1160_v27 }
  0x57   :  { %756 = vmatpush1.bf16.msra.mxu0 %v1155_v28  ;;  %842 = vmatpush1.bf16.msra.mxu1 %v1158_v29 }
  0x58   :  { %757 = vmatprep.subr.bf16.mxu0 %v1163_v30  ;;  %843 = vmatprep.subr.bf16.mxu1 %v1166_v31 }
  0x5b   :  { %758 = vmatpush1.bf16.msra.mxu0 %v1161_v32  ;;  %844 = vmatpush1.bf16.msra.mxu1 %v1164_v33 }
  0x5c   :  { %759 = vmatprep.subr.bf16.mxu0 %v1169_v34  ;;  %845 = vmatprep.subr.bf16.mxu1 %v1172_v35 }
  0x5f   :  { %760 = vmatpush1.bf16.msra.mxu0 %v1167_v36  ;;  %846 = vmatpush1.bf16.msra.mxu1 %v1170_v37 }
  0x60   :  { %761 = vmatprep.subr.bf16.mxu0 %v1175_v38  ;;  %847 = vmatprep.subr.bf16.mxu1 %v1178_v39 }
  0x63   :  { %762 = vmatpush1.bf16.msra.mxu0 %v1173_v40  ;;  %848 = vmatpush1.bf16.msra.mxu1 %v1176_v41 }
  0x64   :  { %763 = vmatprep.subr.bf16.mxu0 %v1181_v42  ;;  %849 = vmatprep.subr.bf16.mxu1 %v1184_v43 }
  0x67   :  { %764 = vmatpush1.bf16.msra.mxu0 %v1179_v44  ;;  %850 = vmatpush1.bf16.msra.mxu1 %v1182_v45 }
  0x68   :  { %765 = vmatprep.subr.bf16.mxu0 %v1187_v46  ;;  %851 = vmatprep.subr.bf16.mxu1 %v1190_v47 }
  0x6b   :  { %766 = vmatpush1.bf16.msra.mxu0 %v1185_v48  ;;  %852 = vmatpush1.bf16.msra.mxu1 %v1188_v49 }
  0x6e   :  { %778 = vmatmul.mubr.bf16.vlgmr.msra.gmra.mrb[0].mxu0 %v1193_v50  ;;  %864 = vmatmul.mubr.bf16.vlgmr.msra.gmra.mrb[0].mxu1 %v1193_v50 }
  0x9c   :  { %v132_v51 = vpop.permute.xlu0 %131 }
  0xa0   :  { %v137_v52 = vpop.permute.xlu0 %136 }
 0x141   :  { %v779_v53 = vpop.f32.mrb[0].mxu0  ;;  %v865_v54 = vpop.f32.mrb[0].mxu1 }
 0x142   :  { %v1008_v55 = vadd.f32 %v779_v53, %v132_v51  ;;  %v1012_v56 = vadd.f32 %v865_v54, %v132_v51  ;;  %v781_v57 = vpop.f32.mrb[1].mxu0  ;;  %v867_v58 = vpop.f32.mrb[1].mxu1 }
 0x143   :  { %v1009_v59 = vadd.f32 %v781_v57, %v132_v51  ;;  %v1013_v60 = vadd.f32 %v867_v58, %v132_v51  ;;  %v783_v61 = vpop.f32.mrb[2].mxu0  ;;  %v869_v62 = vpop.f32.mrb[2].mxu1 }
 0x144   :  { %v874_v63 = vmax.f32 %v1008_v55, 0.0  ;;  %v876_v0 = vmax.f32 %v1012_v56, 0.0  ;;  %v1010_v1 = vadd.f32 %v783_v61, %v137_v52  ;;  %v1014_v2 = vadd.f32 %v869_v62, %v137_v52  ;;  %v785_v3 = vpop.f32.mrb[3].mxu0  ;;  %v871_v4 = vpop.f32.mrb[3].mxu1 }
 0x145   :  { %v875_v5 = vmax.f32 %v1009_v59, 0.0  ;;  %v877_v6 = vmax.f32 %v1013_v60, 0.0  ;;  %v1011_v7 = vadd.f32 %v785_v3, %v137_v52  ;;  %v1015_v8 = vadd.f32 %v871_v4, %v137_v52 }
 0x146   :  { %882 = vst [vmem:[%s1584_s3] sm:$0xff] %v874_v63  ;;  %884 = vst [vmem:[%s1584_s3 + $0x10] sm:$0xff] %v876_v0  ;;  %v878_v9 = vmax.f32 %v1010_v1, 0.0  ;;  %v880_v10 = vmax.f32 %v1014_v2, 0.0 }
 0x147   :  { %883 = vst [vmem:[%s1584_s3 + $0x8] sm:$0xff] %v875_v5  ;;  %885 = vst [vmem:[%s1584_s3 + $0x18] sm:$0xff] %v877_v6  ;;  %v879_v11 = vmax.f32 %v1011_v7, 0.0  ;;  %v881_v12 = vmax.f32 %v1015_v8, 0.0 }
 0x148   :  { %886 = vst [vmem:[%s1584_s3 + $0x20] sm:$0xff] %v878_v9  ;;  %888 = vst [vmem:[%s1584_s3 + $0x30] sm:$0xff] %v880_v10 }
 0x149   :  { %887 = vst [vmem:[%s1584_s3 + $0x28] sm:$0xff] %v879_v11  ;;  %889 = vst [vmem:[%s1584_s3 + $0x38] sm:$0xff] %v881_v12 }

// kernel: unet_forward.12
= control target key start
LH: loop header
LB: loop body
LE: loop exit
PB: predicated region body
PF: predicated region fallthrough
CT: control target
= control target key end

     0   :  { %v299_v1 = vmov 0   ;;  %vm125_vm0 = vcmask 392192   ;;  %s422_s1 = inlined_call_operand.vmem [shape: bf16[48,512], index: 1, kind: input, shape index: {}]   ;;  %s423_s0 = inlined_call_operand.vmem [shape: bf16[32,48], index: 0, kind: input, shape index: {}]   ;;  %s424_s2 = inlined_call_operand.vmem [shape: f32[32,1], index: 2, kind: input, shape index: {}]   ;;  %s425_s3 = inlined_call_operand.vmem [shape: f32[32,512], index: 3, kind: output, shape index: {}]  }
   0x1   :  { %v279_v0 = vld [vmem:[%s422_s1 + $0x4] ss:$16 sps:$4 sm:$0xff]   ;;  %164 = vmatprep.mubr.bf16.mxu0 %v299_v1  ;;  %217 = vmatprep.mubr.bf16.mxu1 %v299_v1  ;;  %v281_v2 = vld [vmem:[%s422_s1 + $0xc] ss:$16 sps:$4 sm:$0xff]   ;;  %v283_v3 = vld [vmem:[%s422_s1] ss:$16 sps:$4 sm:$0xff]  }
   0x2   :  { %277 = vset.pattern.permute.xlu0 %v299_v1  ;;  %278 = vset.pattern.permute.xlu1 %v299_v1  ;;  %v284_v4 = vld [vmem:[%s422_s1 + $0x8] ss:$16 sps:$4 sm:$0xff]   ;;  %v285_v5 = vld [vmem:[%s422_s1 + $0x24] ss:$16 sps:$4 sm:$0xff]   ;;  %v287_v6 = vld [vmem:[%s422_s1 + $0x2c] ss:$16 sps:$4 sm:$0xff]  }
   0x3   :  { %132 = vmatprep.subr.bf16.mxu0 %v279_v0  ;;  %185 = vmatprep.subr.bf16.mxu1 %v281_v2  ;;  %v289_v7 = vld [vmem:[%s422_s1 + $0x20] ss:$16 sps:$4 sm:$0xff]   ;;  %v290_v8 = vld [vmem:[%s422_s1 + $0x28] ss:$16 sps:$4 sm:$0xff]   ;;  %v291_v9 = vld [vmem:[%s422_s1 + $0x44] ss:$16 sps:$4 sm:$0xff]  }
   0x4   :  { %133 = vmatpush1.bf16.msra.mxu0 %v283_v3  ;;  %186 = vmatpush1.bf16.msra.mxu1 %v284_v4  ;;  %v293_v10 = vld [vmem:[%s422_s1 + $0x4c] ss:$16 sps:$4 sm:$0xff]   ;;  %v295_v11 = vld [vmem:[%s422_s1 + $0x40] ss:$16 sps:$4 sm:$0xff]   ;;  %v296_v12 = vld [vmem:[%s422_s1 + $0x48] ss:$16 sps:$4 sm:$0xff]  }
   0x5   :  { %134 = vmatprep.subr.bf16.mxu0 %v285_v5  ;;  %187 = vmatprep.subr.bf16.mxu1 %v287_v6  ;;  %v31_v13 = vld [vmem:[%s424_s2] sm:$0xff]  ;;  %v33_v14 = vld [vmem:[%s424_s2 + $0x10] sm:$0xff]  ;;  %v32_v16 = vld [vmem:[%s424_s2 + $0x8] sm:$0xff] }
   0x6   :  { %v297_v15 = vld [vmem:[%s423_s0] sm:$0xff]   ;;  %37 = vperm.xlu0 %277, %v31_v13   ;;  %47 = vperm.xlu1 %278, %v33_v14   ;;  %v34_v17 = vld [vmem:[%s424_s2 + $0x18] sm:$0xff]  ;;  %v298_v18 = vld [vmem:[%s423_s0 + $0x8] sm:$0xff]  }
   0x8   :  { %135 = vmatpush1.bf16.msra.mxu0 %v289_v7  ;;  %188 = vmatpush1.bf16.msra.mxu1 %v290_v8 }
   0x9   :  { %136 = vmatprep.subr.bf16.mxu0 %v291_v9  ;;  %189 = vmatprep.subr.bf16.mxu1 %v293_v10 }
   0xa   :  { %42 = vperm.xlu0 %277, %v32_v16   ;;  %52 = vperm.xlu1 %278, %v34_v17  }
   0xc   :  { %137 = vmatpush1.bf16.msra.mxu0 %v295_v11  ;;  %190 = vmatpush1.bf16.msra.mxu1 %v296_v12 }
   0xf   :  { %272 = vmatmul.mubr.msk.bf16.vlgmr.msra.gmra.mrb[0].mxu0 %vm125_vm0, %v297_v15  ;;  %274 = vmatmul.mubr.msk.bf16.vlgmr.msra.gmra.mrb[0].mxu1 %vm125_vm0, %v297_v15 }
  0x10   :  { %174 = vmatprep.mubr.bf16.mxu0 %v299_v1  ;;  %227 = vmatprep.mubr.bf16.mxu1 %v299_v1 }
  0x17   :  { %273 = vmatmul.mubr.msk.bf16.gmra.mrb[4].mxu0 %vm125_vm0, %v298_v18  ;;  %275 = vmatmul.mubr.msk.bf16.gmra.mrb[4].mxu1 %vm125_vm0, %v298_v18 }
  0x85   :  { %v38_v19 = vpop.permute.xlu0 %37  ;;  %v48_v21 = vpop.permute.xlu1 %47 }
  0x89   :  { %v43_v20 = vpop.permute.xlu0 %42  ;;  %v53_v38 = vpop.permute.xlu1 %52 }
  0xe2   :  { %v166_v22 = vpop.f32.mrb[0].mxu0  ;;  %v219_v23 = vpop.f32.mrb[0].mxu1 }
  0xe3   :  { %v167_v24 = vadd.f32 %v166_v22, %v38_v19  ;;  %v220_v25 = vadd.f32 %v219_v23, %v38_v19  ;;  %v168_v26 = vpop.f32.mrb[1].mxu0  ;;  %v221_v27 = vpop.f32.mrb[1].mxu1 }
  0xe4   :  { %v169_v28 = vadd.f32 %v168_v26, %v38_v19  ;;  %v222_v29 = vadd.f32 %v221_v27, %v38_v19  ;;  %v170_v30 = vpop.f32.mrb[2].mxu0  ;;  %v223_v31 = vpop.f32.mrb[2].mxu1 }
  0xe5   :  { %238 = vst [vmem:[%s425_s3] sm:$0xff] %v167_v24  ;;  %240 = vst [vmem:[%s425_s3 + $0x10] sm:$0xff] %v220_v25  ;;  %v171_v32 = vadd.f32 %v170_v30, %v43_v20  ;;  %v224_v33 = vadd.f32 %v223_v31, %v43_v20  ;;  %v172_v34 = vpop.f32.mrb[3].mxu0  ;;  %v225_v35 = vpop.f32.mrb[3].mxu1 }
  0xe6   :  { %239 = vst [vmem:[%s425_s3 + $0x8] sm:$0xff] %v169_v28  ;;  %241 = vst [vmem:[%s425_s3 + $0x18] sm:$0xff] %v222_v29  ;;  %v173_v36 = vadd.f32 %v172_v34, %v43_v20  ;;  %v226_v37 = vadd.f32 %v225_v35, %v43_v20 }
  0xe7   :  { %242 = vst [vmem:[%s425_s3 + $0x20] sm:$0xff] %v171_v32  ;;  %244 = vst [vmem:[%s425_s3 + $0x30] sm:$0xff] %v224_v33 }
  0xe8   :  { %243 = vst [vmem:[%s425_s3 + $0x28] sm:$0xff] %v173_v36  ;;  %245 = vst [vmem:[%s425_s3 + $0x38] sm:$0xff] %v226_v37 }
  0xea   :  { %v176_v39 = vpop.f32.mrb[4].mxu0  ;;  %v229_v40 = vpop.f32.mrb[4].mxu1 }
  0xeb   :  { %v177_v41 = vadd.f32 %v176_v39, %v48_v21  ;;  %v230_v42 = vadd.f32 %v229_v40, %v48_v21  ;;  %v178_v43 = vpop.f32.mrb[5].mxu0  ;;  %v231_v44 = vpop.f32.mrb[5].mxu1 }
  0xec   :  { %v179_v45 = vadd.f32 %v178_v43, %v48_v21  ;;  %v232_v46 = vadd.f32 %v231_v44, %v48_v21  ;;  %v180_v47 = vpop.f32.mrb[6].mxu0  ;;  %v233_v48 = vpop.f32.mrb[6].mxu1 }
  0xed   :  { %246 = vst [vmem:[%s425_s3 + $0x40] sm:$0xff] %v177_v41  ;;  %248 = vst [vmem:[%s425_s3 + $0x50] sm:$0xff] %v230_v42  ;;  %v181_v49 = vadd.f32 %v180_v47, %v53_v38  ;;  %v234_v50 = vadd.f32 %v233_v48, %v53_v38  ;;  %v182_v51 = vpop.f32.mrb[7].mxu0  ;;  %v235_v52 = vpop.f32.mrb[7].mxu1 }
  0xee   :  { %247 = vst [vmem:[%s425_s3 + $0x48] sm:$0xff] %v179_v45  ;;  %249 = vst [vmem:[%s425_s3 + $0x58] sm:$0xff] %v232_v46  ;;  %v183_v53 = vadd.f32 %v182_v51, %v53_v38  ;;  %v236_v54 = vadd.f32 %v235_v52, %v53_v38 }
  0xef   :  { %250 = vst [vmem:[%s425_s3 + $0x60] sm:$0xff] %v181_v49  ;;  %252 = vst [vmem:[%s425_s3 + $0x70] sm:$0xff] %v234_v50 }
  0xf0   :  { %251 = vst [vmem:[%s425_s3 + $0x68] sm:$0xff] %v183_v53  ;;  %253 = vst [vmem:[%s425_s3 + $0x78] sm:$0xff] %v236_v54 }

// kernel: unet_forward.13
= control target key start
LH: loop header
LB: loop body
LE: loop exit
PB: predicated region body
PF: predicated region fallthrough
CT: control target
= control target key end

     0   :  { %s1692_s12 = smov 0   ;;  %s1694_s13 = smov 0   ;;  %s2095_s0 = inlined_call_operand.vmem [shape: bf16[8,432], index: 0, kind: input, shape index: {}]   ;;  %s2096_s1 = inlined_call_operand.vmem [shape: bf16[432,2048], index: 1, kind: input, shape index: {}]   ;;  %s2097_s2 = inlined_call_operand.vmem [shape: f32[8,1], index: 2, kind: input, shape index: {}]   ;;  %s2098_s3 = inlined_call_operand.vmem [shape: f32[8,2048], index: 3, kind: output, shape index: {}]  }
   0x1   :  { %s1696_s14 = smov 0  }
   0x2 LB: > { %s1315_s15 = sadd.s32 4294967295, %s1669_s14   ;;  %s1709_s16 = sadd.s32 1, %s1669_s14   ;;  %s1669_s14 = sphi %s1696_s14, %s2101_s14   ;;  %s1665_s13 = sphi %s1694_s13, %s2100_s13   ;;  %s1661_s12 = sphi %s1692_s12, %s2099_s12  }
   0x3   : > { %s38_s17 = ssub.s32 %s1669_s14, %s1709_s16  ;;  %s41_s18 = sadd.s32 1, %s1665_s13 }
   0x4   : > { %p39_p0 = scmp.eq.s32.totalorder %s38_s17, 0  ;;  %p48_p1 = scmp.ne.s32.totalorder %s1665_s13, %s1661_s12 }
   0x5   : > { %p49_p2 = scmp.eq.s32.totalorder %s1669_s14, 0  ;;  %p1318_p4 = scmp.ge.s32.totalorder %s1669_s14, 4 }
   0x6   : > { %s1718_s19 = scalar_select %p39_p0, %s1665_s13, %s41_s18  }
   0x7   : > { %p50_p3 = por %p49_p2, %p48_p1  ;;  %127 = sbr.rel (%p1318_p4) target bundleno = 72 (0x48), region = 24 }
   0xe   : > { %130 = sbr.rel (!%p50_p3) target bundleno = 72 (0x48), region = 28  ;;  %s132_s20 = sand.u32 (%p50_p3), 1, %s1665_s13  }
   0xf   : > { %s1440_s21 = sshll.u32 (%p50_p3), %s1669_s14, 4  ;;  %s1453_s22 = smul.u32 (%p50_p3), 864, %s132_s20 }
  0x10   : > { %s1726_s25 = scalar_lea.vmem (%p50_p3), %s2096_s1, %s1440_s21 }
  0x11   : > { %v150_v0 = vld [vmem:[%s1726_s25] sm:$0xff] (%p50_p3)  ;;  %v152_v1 = vld [vmem:[%s1726_s25 + $0x8] sm:$0xff] (%p50_p3)  ;;  %s1734_s26 = scalar_lea.vmem (%p50_p3), [#allocation2], %s1453_s22 }
  0x12   : > { %v154_v2 = vld [vmem:[%s1726_s25 + $0x40] sm:$0xff] (%p50_p3)  ;;  %v156_v3 = vld [vmem:[%s1726_s25 + $0x48] sm:$0xff] (%p50_p3)  ;;  %151 = vst [vmem:[%s1734_s26] sm:$0xff] (%p50_p3), %v150_v0  ;;  %153 = vst [vmem:[%s1734_s26 + $0x8] sm:$0xff] (%p50_p3), %v152_v1 }
  0x13   : > { %v158_v4 = vld [vmem:[%s1726_s25 + $0x80] sm:$0xff] (%p50_p3)  ;;  %v160_v5 = vld [vmem:[%s1726_s25 + $0x88] sm:$0xff] (%p50_p3)  ;;  %155 = vst [vmem:[%s1734_s26 + $0x10] sm:$0xff] (%p50_p3), %v154_v2  ;;  %157 = vst [vmem:[%s1734_s26 + $0x18] sm:$0xff] (%p50_p3), %v156_v3 }
  0x14   : > { %159 = vst [vmem:[%s1734_s26 + $0x20] sm:$0xff] (%p50_p3), %v158_v4  ;;  %161 = vst [vmem:[%s1734_s26 + $0x28] sm:$0xff] (%p50_p3), %v160_v5  ;;  %v162_v6 = vld [vmem:[%s1726_s25 + $0xc0] sm:$0xff] (%p50_p3)  ;;  %v164_v7 = vld [vmem:[%s1726_s25 + $0xc8] sm:$0xff] (%p50_p3) }
  0x15   : > { %v166_v8 = vld [vmem:[%s1726_s25 + $0x100] sm:$0xff]  ;;  %163 = vst [vmem:[%s1734_s26 + $0x30] sm:$0xff] %v162_v6  ;;  %165 = vst [vmem:[%s1734_s26 + $0x38] sm:$0xff] %v164_v7  ;;  %v168_v9 = vld [vmem:[%s1726_s25 + $0x108] sm:$0xff] }
  0x16   : > { %167 = vst [vmem:[%s1734_s26 + $0x40] sm:$0xff] %v166_v8  ;;  %v170_v10 = vld [vmem:[%s1726_s25 + $0x140] sm:$0xff]  ;;  %v172_v11 = vld [vmem:[%s1726_s25 + $0x148] sm:$0xff]  ;;  %169 = vst [vmem:[%s1734_s26 + $0x48] sm:$0xff] %v168_v9 }
  0x17   : > { %171 = vst [vmem:[%s1734_s26 + $0x50] sm:$0xff] %v170_v10  ;;  %173 = vst [vmem:[%s1734_s26 + $0x58] sm:$0xff] %v172_v11  ;;  %v174_v12 = vld [vmem:[%s1726_s25 + $0x180] sm:$0xff]  ;;  %v176_v13 = vld [vmem:[%s1726_s25 + $0x188] sm:$0xff] }
  0x18   : > { %v178_v14 = vld [vmem:[%s1726_s25 + $0x1c0] sm:$0xff]  ;;  %175 = vst [vmem:[%s1734_s26 + $0x60] sm:$0xff] %v174_v12  ;;  %177 = vst [vmem:[%s1734_s26 + $0x68] sm:$0xff] %v176_v13  ;;  %v180_v15 = vld [vmem:[%s1726_s25 + $0x1c8] sm:$0xff] }
  0x19   : > { %179 = vst [vmem:[%s1734_s26 + $0x70] sm:$0xff] %v178_v14  ;;  %v182_v16 = vld [vmem:[%s1726_s25 + $0x200] sm:$0xff]  ;;  %v184_v17 = vld [vmem:[%s1726_s25 + $0x208] sm:$0xff]  ;;  %181 = vst [vmem:[%s1734_s26 + $0x78] sm:$0xff] %v180_v15 }
  0x1a   : > { %183 = vst [vmem:[%s1734_s26 + $0x80] sm:$0xff] %v182_v16  ;;  %185 = vst [vmem:[%s1734_s26 + $0x88] sm:$0xff] %v184_v17  ;;  %v186_v18 = vld [vmem:[%s1726_s25 + $0x240] sm:$0xff]  ;;  %v188_v19 = vld [vmem:[%s1726_s25 + $0x248] sm:$0xff] }
  0x1b   : > { %v190_v20 = vld [vmem:[%s1726_s25 + $0x280] sm:$0xff]  ;;  %187 = vst [vmem:[%s1734_s26 + $0x90] sm:$0xff] %v186_v18  ;;  %189 = vst [vmem:[%s1734_s26 + $0x98] sm:$0xff] %v188_v19  ;;  %v192_v21 = vld [vmem:[%s1726_s25 + $0x288] sm:$0xff] }
  0x1c   : > { %191 = vst [vmem:[%s1734_s26 + $0xa0] sm:$0xff] %v190_v20  ;;  %v194_v22 = vld [vmem:[%s1726_s25 + $0x2c0] sm:$0xff]  ;;  %v196_v23 = vld [vmem:[%s1726_s25 + $0x2c8] sm:$0xff]  ;;  %193 = vst [vmem:[%s1734_s26 + $0xa8] sm:$0xff] %v192_v21 }
  0x1d   : > { %195 = vst [vmem:[%s1734_s26 + $0xb0] sm:$0xff] %v194_v22  ;;  %197 = vst [vmem:[%s1734_s26 + $0xb8] sm:$0xff] %v196_v23  ;;  %v198_v24 = vld [vmem:[%s1726_s25 + $0x300] sm:$0xff]  ;;  %v200_v25 = vld [vmem:[%s1726_s25 + $0x308] sm:$0xff] }
  0x1e   : > { %v202_v26 = vld [vmem:[%s1726_s25 + $0x340] sm:$0xff]  ;;  %199 = vst [vmem:[%s1734_s26 + $0xc0] sm:$0xff] %v198_v24  ;;  %201 = vst [vmem:[%s1734_s26 + $0xc8] sm:$0xff] %v200_v25  ;;  %v204_v27 = vld [vmem:[%s1726_s25 + $0x348] sm:$0xff] }
  0x1f   : > { %203 = vst [vmem:[%s1734_s26 + $0xd0] sm:$0xff] %v202_v26  ;;  %v206_v28 = vld [vmem:[%s1726_s25 + $0x380] sm:$0xff]  ;;  %v208_v29 = vld [vmem:[%s1726_s25 + $0x388] sm:$0xff]  ;;  %205 = vst [vmem:[%s1734_s26 + $0xd8] sm:$0xff] %v204_v27 }
  0x20   : > { %207 = vst [vmem:[%s1734_s26 + $0xe0] sm:$0xff] %v206_v28  ;;  %209 = vst [vmem:[%s1734_s26 + $0xe8] sm:$0xff] %v208_v29  ;;  %v210_v30 = vld [vmem:[%s1726_s25 + $0x3c0] sm:$0xff]  ;;  %v212_v31 = vld [vmem:[%s1726_s25 + $0x3c8] sm:$0xff] }
  0x21   : > { %v214_v32 = vld [vmem:[%s1726_s25 + $0x400] sm:$0xff]  ;;  %211 = vst [vmem:[%s1734_s26 + $0xf0] sm:$0xff] %v210_v30  ;;  %213 = vst [vmem:[%s1734_s26 + $0xf8] sm:$0xff] %v212_v31  ;;  %v216_v33 = vld [vmem:[%s1726_s25 + $0x408] sm:$0xff] }
  0x22   : > { %215 = vst [vmem:[%s1734_s26 + $0x100] sm:$0xff] %v214_v32  ;;  %v218_v34 = vld [vmem:[%s1726_s25 + $0x440] sm:$0xff]  ;;  %v220_v35 = vld [vmem:[%s1726_s25 + $0x448] sm:$0xff]  ;;  %217 = vst [vmem:[%s1734_s26 + $0x108] sm:$0xff] %v216_v33 }
  0x23   : > { %219 = vst [vmem:[%s1734_s26 + $0x110] sm:$0xff] %v218_v34  ;;  %221 = vst [vmem:[%s1734_s26 + $0x118] sm:$0xff] %v220_v35  ;;  %v222_v36 = vld [vmem:[%s1726_s25 + $0x480] sm:$0xff]  ;;  %v224_v37 = vld [vmem:[%s1726_s25 + $0x488] sm:$0xff] }
  0x24   : > { %v226_v38 = vld [vmem:[%s1726_s25 + $0x4c0] sm:$0xff]  ;;  %223 = vst [vmem:[%s1734_s26 + $0x120] sm:$0xff] %v222_v36  ;;  %225 = vst [vmem:[%s1734_s26 + $0x128] sm:$0xff] %v224_v37  ;;  %v228_v39 = vld [vmem:[%s1726_s25 + $0x4c8] sm:$0xff] }
  0x25   : > { %227 = vst [vmem:[%s1734_s26 + $0x130] sm:$0xff] %v226_v38  ;;  %v230_v40 = vld [vmem:[%s1726_s25 + $0x500] sm:$0xff]  ;;  %v232_v41 = vld [vmem:[%s1726_s25 + $0x508] sm:$0xff]  ;;  %229 = vst [vmem:[%s1734_s26 + $0x138] sm:$0xff] %v228_v39 }
  0x26   : > { %231 = vst [vmem:[%s1734_s26 + $0x140] sm:$0xff] %v230_v40  ;;  %233 = vst [vmem:[%s1734_s26 + $0x148] sm:$0xff] %v232_v41  ;;  %v234_v42 = vld [vmem:[%s1726_s25 + $0x540] sm:$0xff]  ;;  %v236_v43 = vld [vmem:[%s1726_s25 + $0x548] sm:$0xff] }
  0x27   : > { %v238_v44 = vld [vmem:[%s1726_s25 + $0x580] sm:$0xff]  ;;  %235 = vst [vmem:[%s1734_s26 + $0x150] sm:$0xff] %v234_v42  ;;  %237 = vst [vmem:[%s1734_s26 + $0x158] sm:$0xff] %v236_v43  ;;  %v240_v45 = vld [vmem:[%s1726_s25 + $0x588] sm:$0xff] }
  0x28   : > { %239 = vst [vmem:[%s1734_s26 + $0x160] sm:$0xff] %v238_v44  ;;  %v242_v46 = vld [vmem:[%s1726_s25 + $0x5c0] sm:$0xff]  ;;  %v244_v47 = vld [vmem:[%s1726_s25 + $0x5c8] sm:$0xff]  ;;  %241 = vst [vmem:[%s1734_s26 + $0x168] sm:$0xff] %v240_v45 }
  0x29   : > { %243 = vst [vmem:[%s1734_s26 + $0x170] sm:$0xff] %v242_v46  ;;  %245 = vst [vmem:[%s1734_s26 + $0x178] sm:$0xff] %v244_v47  ;;  %v246_v48 = vld [vmem:[%s1726_s25 + $0x600] sm:$0xff]  ;;  %v248_v49 = vld [vmem:[%s1726_s25 + $0x608] sm:$0xff] }
  0x2a   : > { %v250_v50 = vld [vmem:[%s1726_s25 + $0x640] sm:$0xff]  ;;  %247 = vst [vmem:[%s1734_s26 + $0x180] sm:$0xff] %v246_v48  ;;  %249 = vst [vmem:[%s1734_s26 + $0x188] sm:$0xff] %v248_v49  ;;  %v252_v51 = vld [vmem:[%s1726_s25 + $0x648] sm:$0xff] }
  0x2b   : > { %251 = vst [vmem:[%s1734_s26 + $0x190] sm:$0xff] %v250_v50  ;;  %v254_v52 = vld [vmem:[%s1726_s25 + $0x680] sm:$0xff]  ;;  %v256_v53 = vld [vmem:[%s1726_s25 + $0x688] sm:$0xff]  ;;  %253 = vst [vmem:[%s1734_s26 + $0x198] sm:$0xff] %v252_v51 }
  0x2c   : > { %255 = vst [vmem:[%s1734_s26 + $0x1a0] sm:$0xff] %v254_v52  ;;  %257 = vst [vmem:[%s1734_s26 + $0x1a8] sm:$0xff] %v256_v53  ;;  %v258_v54 = vld [vmem:[%s1726_s25 + $0x6c0] sm:$0xff]  ;;  %v260_v55 = vld [vmem:[%s1726_s25 + $0x6c8] sm:$0xff] }
  0x2d   : > { %v262_v56 = vld [vmem:[%s1726_s25 + $0x700] sm:$0xff]  ;;  %259 = vst [vmem:[%s1734_s26 + $0x1b0] sm:$0xff] %v258_v54  ;;  %261 = vst [vmem:[%s1734_s26 + $0x1b8] sm:$0xff] %v260_v55  ;;  %v264_v57 = vld [vmem:[%s1726_s25 + $0x708] sm:$0xff] }
  0x2e   : > { %263 = vst [vmem:[%s1734_s26 + $0x1c0] sm:$0xff] %v262_v56  ;;  %v266_v58 = vld [vmem:[%s1726_s25 + $0x740] sm:$0xff]  ;;  %v268_v59 = vld [vmem:[%s1726_s25 + $0x748] sm:$0xff]  ;;  %265 = vst [vmem:[%s1734_s26 + $0x1c8] sm:$0xff] %v264_v57 }
  0x2f   : > { %267 = vst [vmem:[%s1734_s26 + $0x1d0] sm:$0xff] %v266_v58  ;;  %269 = vst [vmem:[%s1734_s26 + $0x1d8] sm:$0xff] %v268_v59  ;;  %v270_v60 = vld [vmem:[%s1726_s25 + $0x780] sm:$0xff]  ;;  %v272_v61 = vld [vmem:[%s1726_s25 + $0x788] sm:$0xff] }
  0x30   : > { %v274_v62 = vld [vmem:[%s1726_s25 + $0x7c0] sm:$0xff]  ;;  %271 = vst [vmem:[%s1734_s26 + $0x1e0] sm:$0xff] %v270_v60  ;;  %273 = vst [vmem:[%s1734_s26 + $0x1e8] sm:$0xff] %v272_v61  ;;  %v276_v63 = vld [vmem:[%s1726_s25 + $0x7c8] sm:$0xff] }
  0x31   : > { %275 = vst [vmem:[%s1734_s26 + $0x1f0] sm:$0xff] %v274_v62  ;;  %v278_v0 = vld [vmem:[%s1726_s25 + $0x800] sm:$0xff]  ;;  %v280_v1 = vld [vmem:[%s1726_s25 + $0x808] sm:$0xff]  ;;  %277 = vst [vmem:[%s1734_s26 + $0x1f8] sm:$0xff] %v276_v63 }
  0x32   : > { %279 = vst [vmem:[%s1734_s26 + $0x200] sm:$0xff] %v278_v0  ;;  %281 = vst [vmem:[%s1734_s26 + $0x208] sm:$0xff] %v280_v1  ;;  %v282_v2 = vld [vmem:[%s1726_s25 + $0x840] sm:$0xff]  ;;  %v284_v3 = vld [vmem:[%s1726_s25 + $0x848] sm:$0xff] }
  0x33   : > { %v286_v4 = vld [vmem:[%s1726_s25 + $0x880] sm:$0xff]  ;;  %283 = vst [vmem:[%s1734_s26 + $0x210] sm:$0xff] %v282_v2  ;;  %285 = vst [vmem:[%s1734_s26 + $0x218] sm:$0xff] %v284_v3  ;;  %v288_v5 = vld [vmem:[%s1726_s25 + $0x888] sm:$0xff] }
  0x34   : > { %287 = vst [vmem:[%s1734_s26 + $0x220] sm:$0xff] %v286_v4  ;;  %v290_v6 = vld [vmem:[%s1726_s25 + $0x8c0] sm:$0xff]  ;;  %v292_v7 = vld [vmem:[%s1726_s25 + $0x8c8] sm:$0xff]  ;;  %289 = vst [vmem:[%s1734_s26 + $0x228] sm:$0xff] %v288_v5 }
  0x35   : > { %291 = vst [vmem:[%s1734_s26 + $0x230] sm:$0xff] %v290_v6  ;;  %293 = vst [vmem:[%s1734_s26 + $0x238] sm:$0xff] %v292_v7  ;;  %v294_v8 = vld [vmem:[%s1726_s25 + $0x900] sm:$0xff]  ;;  %v296_v9 = vld [vmem:[%s1726_s25 + $0x908] sm:$0xff] }
  0x36   : > { %v298_v10 = vld [vmem:[%s1726_s25 + $0x940] sm:$0xff]  ;;  %295 = vst [vmem:[%s1734_s26 + $0x240] sm:$0xff] %v294_v8  ;;  %297 = vst [vmem:[%s1734_s26 + $0x248] sm:$0xff] %v296_v9  ;;  %v300_v11 = vld [vmem:[%s1726_s25 + $0x948] sm:$0xff] }
  0x37   : > { %299 = vst [vmem:[%s1734_s26 + $0x250] sm:$0xff] %v298_v10  ;;  %v302_v12 = vld [vmem:[%s1726_s25 + $0x980] sm:$0xff]  ;;  %v304_v13 = vld [vmem:[%s1726_s25 + $0x988] sm:$0xff]  ;;  %301 = vst [vmem:[%s1734_s26 + $0x258] sm:$0xff] %v300_v11 }
  0x38   : > { %303 = vst [vmem:[%s1734_s26 + $0x260] sm:$0xff] %v302_v12  ;;  %305 = vst [vmem:[%s1734_s26 + $0x268] sm:$0xff] %v304_v13  ;;  %v306_v14 = vld [vmem:[%s1726_s25 + $0x9c0] sm:$0xff]  ;;  %v308_v15 = vld [vmem:[%s1726_s25 + $0x9c8] sm:$0xff] }
  0x39   : > { %v310_v16 = vld [vmem:[%s1726_s25 + $0xa00] sm:$0xff]  ;;  %307 = vst [vmem:[%s1734_s26 + $0x270] sm:$0xff] %v306_v14  ;;  %309 = vst [vmem:[%s1734_s26 + $0x278] sm:$0xff] %v308_v15  ;;  %v312_v17 = vld [vmem:[%s1726_s25 + $0xa08] sm:$0xff] }
  0x3a   : > { %311 = vst [vmem:[%s1734_s26 + $0x280] sm:$0xff] %v310_v16  ;;  %v314_v18 = vld [vmem:[%s1726_s25 + $0xa40] sm:$0xff]  ;;  %v316_v19 = vld [vmem:[%s1726_s25 + $0xa48] sm:$0xff]  ;;  %313 = vst [vmem:[%s1734_s26 + $0x288] sm:$0xff] %v312_v17 }
  0x3b   : > { %315 = vst [vmem:[%s1734_s26 + $0x290] sm:$0xff] %v314_v18  ;;  %317 = vst [vmem:[%s1734_s26 + $0x298] sm:$0xff] %v316_v19  ;;  %v318_v20 = vld [vmem:[%s1726_s25 + $0xa80] sm:$0xff]  ;;  %v320_v21 = vld [vmem:[%s1726_s25 + $0xa88] sm:$0xff] }
  0x3c   : > { %v322_v22 = vld [vmem:[%s1726_s25 + $0xac0] sm:$0xff]  ;;  %319 = vst [vmem:[%s1734_s26 + $0x2a0] sm:$0xff] %v318_v20  ;;  %321 = vst [vmem:[%s1734_s26 + $0x2a8] sm:$0xff] %v320_v21  ;;  %v324_v23 = vld [vmem:[%s1726_s25 + $0xac8] sm:$0xff] }
  0x3d   : > { %323 = vst [vmem:[%s1734_s26 + $0x2b0] sm:$0xff] %v322_v22  ;;  %v326_v24 = vld [vmem:[%s1726_s25 + $0xb00] sm:$0xff]  ;;  %v328_v25 = vld [vmem:[%s1726_s25 + $0xb08] sm:$0xff]  ;;  %325 = vst [vmem:[%s1734_s26 + $0x2b8] sm:$0xff] %v324_v23 }
  0x3e   : > { %327 = vst [vmem:[%s1734_s26 + $0x2c0] sm:$0xff] %v326_v24  ;;  %329 = vst [vmem:[%s1734_s26 + $0x2c8] sm:$0xff] %v328_v25  ;;  %v330_v26 = vld [vmem:[%s1726_s25 + $0xb40] sm:$0xff]  ;;  %v332_v27 = vld [vmem:[%s1726_s25 + $0xb48] sm:$0xff] }
  0x3f   : > { %v334_v28 = vld [vmem:[%s1726_s25 + $0xb80] sm:$0xff]  ;;  %331 = vst [vmem:[%s1734_s26 + $0x2d0] sm:$0xff] %v330_v26  ;;  %333 = vst [vmem:[%s1734_s26 + $0x2d8] sm:$0xff] %v332_v27  ;;  %v336_v29 = vld [vmem:[%s1726_s25 + $0xb88] sm:$0xff] }
  0x40   : > { %335 = vst [vmem:[%s1734_s26 + $0x2e0] sm:$0xff] %v334_v28  ;;  %v338_v30 = vld [vmem:[%s1726_s25 + $0xbc0] sm:$0xff]  ;;  %v340_v31 = vld [vmem:[%s1726_s25 + $0xbc8] sm:$0xff]  ;;  %337 = vst [vmem:[%s1734_s26 + $0x2e8] sm:$0xff] %v336_v29 }
  0x41   : > { %339 = vst [vmem:[%s1734_s26 + $0x2f0] sm:$0xff] %v338_v30  ;;  %341 = vst [vmem:[%s1734_s26 + $0x2f8] sm:$0xff] %v340_v31  ;;  %v342_v32 = vld [vmem:[%s1726_s25 + $0xc00] sm:$0xff]  ;;  %v344_v33 = vld [vmem:[%s1726_s25 + $0xc08] sm:$0xff] }
  0x42   : > { %v346_v34 = vld [vmem:[%s1726_s25 + $0xc40] sm:$0xff]  ;;  %343 = vst [vmem:[%s1734_s26 + $0x300] sm:$0xff] %v342_v32  ;;  %345 = vst [vmem:[%s1734_s26 + $0x308] sm:$0xff] %v344_v33  ;;  %v348_v35 = vld [vmem:[%s1726_s25 + $0xc48] sm:$0xff] }
  0x43   : > { %347 = vst [vmem:[%s1734_s26 + $0x310] sm:$0xff] %v346_v34  ;;  %v350_v36 = vld [vmem:[%s1726_s25 + $0xc80] sm:$0xff]  ;;  %v352_v37 = vld [vmem:[%s1726_s25 + $0xc88] sm:$0xff]  ;;  %349 = vst [vmem:[%s1734_s26 + $0x318] sm:$0xff] %v348_v35 }
  0x44   : > { %351 = vst [vmem:[%s1734_s26 + $0x320] sm:$0xff] %v350_v36  ;;  %353 = vst [vmem:[%s1734_s26 + $0x328] sm:$0xff] %v352_v37  ;;  %v354_v38 = vld [vmem:[%s1726_s25 + $0xcc0] sm:$0xff]  ;;  %v356_v39 = vld [vmem:[%s1726_s25 + $0xcc8] sm:$0xff] }
  0x45   : > { %v358_v40 = vld [vmem:[%s1726_s25 + $0xd00] sm:$0xff]  ;;  %355 = vst [vmem:[%s1734_s26 + $0x330] sm:$0xff] %v354_v38  ;;  %357 = vst [vmem:[%s1734_s26 + $0x338] sm:$0xff] %v356_v39  ;;  %v360_v41 = vld [vmem:[%s1726_s25 + $0xd08] sm:$0xff] }
  0x46   : > { %359 = vst [vmem:[%s1734_s26 + $0x340] sm:$0xff] %v358_v40  ;;  %v362_v42 = vld [vmem:[%s1726_s25 + $0xd40] sm:$0xff]  ;;  %v364_v43 = vld [vmem:[%s1726_s25 + $0xd48] sm:$0xff]  ;;  %361 = vst [vmem:[%s1734_s26 + $0x348] sm:$0xff] %v360_v41 }
  0x47   : > { %363 = vst [vmem:[%s1734_s26 + $0x350] sm:$0xff] %v362_v42  ;;  %365 = vst [vmem:[%s1734_s26 + $0x358] sm:$0xff] %v364_v43 }
  0x48 PF: > { %p1321_p5 = scmp.ge.s32.totalorder %s1669_s14, 1  ;;  %p370_p6 = scmp.lt.s32.totalorder %s1669_s14, 5 }
  0x4a   : > { %p371_p7 = pnand %p1321_p5, %p370_p6 }
  0x4b   : > { %s377_s27 = sand.u32 (!%p371_p7), 1, %s1661_s12   ;;  %v1952_v44 = vld [vmem:[%s2095_s0] sm:$0xff] (!%p371_p7)  ;;  %v1671_v47 = vmov (!%p371_p7), 0   ;;  %vm1077_vm0 = vcmask (!%p371_p7), 392192   ;;  %s1322_s9 = sshll.u32 (!%p371_p7), %s1315_s15, 2 }
  0x4c   : > { %374 = sbr.rel (%p371_p7) target bundleno = 407 (0x197), region = 51  ;;  %v518_v45 = vld [vmem:[%s2097_s2] sm:$0xff] (!%p371_p7)  ;;  %v1325_v46 = vcombine.high (!%p371_p7), %v1952_v44, %v1952_v44  ;;  %1480 = vset.pattern.permute.xlu0 (!%p371_p7), %v1671_v47  ;;  %p402_p8 = scmp.lt.s32.totalorder (!%p371_p7), %s1322_s9, 15 }
  0x4d   : > { %s1454_s5 = smul.u32 (!%p371_p7), 864, %s377_s27  ;;  %521 = vperm.xlu0 (!%p371_p7), %1480, %v518_v45  }
  0x4e   : > { %1113 = vmatprep.mubr.bf16.mxu0 (!%p371_p7), %v1325_v46  ;;  %1195 = vmatprep.mubr.bf16.mxu1 (!%p371_p7), %v1325_v46 }
  0x4f   : > { %s1959_s6 = scalar_lea.vmem (!%p371_p7), [#allocation2], %s1454_s5 }
  0x50   : > { %v1481_v48 = vld [vmem:[%s1959_s6 + $0x4] ss:$16 sps:$4 sm:$0xff] (!%p371_p7)   ;;  %v1483_v49 = vld [vmem:[%s1959_s6 + $0xc] ss:$16 sps:$4 sm:$0xff] (!%p371_p7)   ;;  %v1485_v50 = vld [vmem:[%s1959_s6] ss:$16 sps:$4 sm:$0xff] (!%p371_p7)  }
  0x51   : > { %1081 = vmatprep.subr.bf16.mxu0 (!%p371_p7), %v1481_v48  ;;  %v1486_v51 = vld [vmem:[%s1959_s6 + $0x8] ss:$16 sps:$4 sm:$0xff] (!%p371_p7)   ;;  %1163 = vmatprep.subr.bf16.mxu1 (!%p371_p7), %v1483_v49  ;;  %v1487_v52 = vld [vmem:[%s1959_s6 + $0x24] ss:$16 sps:$4 sm:$0xff] (!%p371_p7)   ;;  %v1489_v53 = vld [vmem:[%s1959_s6 + $0x2c] ss:$16 sps:$4 sm:$0xff] (!%p371_p7)  }
  0x52   : > { %1082 = vmatpush1.bf16.msra.mxu0 (!%p371_p7), %v1485_v50  ;;  %1164 = vmatpush1.bf16.msra.mxu1 (!%p371_p7), %v1486_v51  ;;  %v1491_v54 = vld [vmem:[%s1959_s6 + $0x20] ss:$16 sps:$4 sm:$0xff] (!%p371_p7)   ;;  %v1492_v55 = vld [vmem:[%s1959_s6 + $0x28] ss:$16 sps:$4 sm:$0xff] (!%p371_p7)   ;;  %v1493_v56 = vld [vmem:[%s1959_s6 + $0x44] ss:$16 sps:$4 sm:$0xff] (!%p371_p7)  }
  0x53   : > { %1083 = vmatprep.subr.bf16.mxu0 %v1487_v52  ;;  %1165 = vmatprep.subr.bf16.mxu1 %v1489_v53  ;;  %v1495_v57 = vld [vmem:[%s1959_s6 + $0x4c] ss:$16 sps:$4 sm:$0xff]   ;;  %v1497_v58 = vld [vmem:[%s1959_s6 + $0x40] ss:$16 sps:$4 sm:$0xff]   ;;  %v1498_v59 = vld [vmem:[%s1959_s6 + $0x48] ss:$16 sps:$4 sm:$0xff]   ;;  %v1324_v52 = vcombine.low %v1952_v44, %v1952_v44 }
  0x54   : > { %v1499_v60 = vld [vmem:[%s1959_s6 + $0x64] ss:$16 sps:$4 sm:$0xff]   ;;  %v1501_v61 = vld [vmem:[%s1959_s6 + $0x6c] ss:$16 sps:$4 sm:$0xff]   ;;  %v1503_v62 = vld [vmem:[%s1959_s6 + $0x60] ss:$16 sps:$4 sm:$0xff]  }
  0x55   : > { %v1504_v63 = vld [vmem:[%s1959_s6 + $0x68] ss:$16 sps:$4 sm:$0xff]   ;;  %v1505_v0 = vld [vmem:[%s1959_s6 + $0x84] ss:$16 sps:$4 sm:$0xff]   ;;  %v1507_v1 = vld [vmem:[%s1959_s6 + $0x8c] ss:$16 sps:$4 sm:$0xff]  }
  0x56   : > { %1084 = vmatpush1.bf16.msra.mxu0 %v1491_v54  ;;  %1166 = vmatpush1.bf16.msra.mxu1 %v1492_v55  ;;  %v1509_v2 = vld [vmem:[%s1959_s6 + $0x80] ss:$16 sps:$4 sm:$0xff]   ;;  %v1510_v3 = vld [vmem:[%s1959_s6 + $0x88] ss:$16 sps:$4 sm:$0xff]   ;;  %v1511_v4 = vld [vmem:[%s1959_s6 + $0xa4] ss:$16 sps:$4 sm:$0xff]  }
  0x57   : > { %1085 = vmatprep.subr.bf16.mxu0 %v1493_v56  ;;  %1167 = vmatprep.subr.bf16.mxu1 %v1495_v57  ;;  %v1513_v5 = vld [vmem:[%s1959_s6 + $0xac] ss:$16 sps:$4 sm:$0xff]   ;;  %v1515_v6 = vld [vmem:[%s1959_s6 + $0xa0] ss:$16 sps:$4 sm:$0xff]   ;;  %v1516_v7 = vld [vmem:[%s1959_s6 + $0xa8] ss:$16 sps:$4 sm:$0xff]  }
  0x58   : > { %v1517_v8 = vld [vmem:[%s1959_s6 + $0xc4] ss:$16 sps:$4 sm:$0xff]   ;;  %v1519_v9 = vld [vmem:[%s1959_s6 + $0xcc] ss:$16 sps:$4 sm:$0xff]   ;;  %v1521_v10 = vld [vmem:[%s1959_s6 + $0xc0] ss:$16 sps:$4 sm:$0xff]  }
  0x59   : > { %v1522_v11 = vld [vmem:[%s1959_s6 + $0xc8] ss:$16 sps:$4 sm:$0xff]   ;;  %v1523_v12 = vld [vmem:[%s1959_s6 + $0xe4] ss:$16 sps:$4 sm:$0xff]   ;;  %v1525_v13 = vld [vmem:[%s1959_s6 + $0xec] ss:$16 sps:$4 sm:$0xff]  }
  0x5a   : > { %1086 = vmatpush1.bf16.msra.mxu0 %v1497_v58  ;;  %1168 = vmatpush1.bf16.msra.mxu1 %v1498_v59  ;;  %v1527_v14 = vld [vmem:[%s1959_s6 + $0xe0] ss:$16 sps:$4 sm:$0xff]   ;;  %v1528_v15 = vld [vmem:[%s1959_s6 + $0xe8] ss:$16 sps:$4 sm:$0xff]   ;;  %v1529_v16 = vld [vmem:[%s1959_s6 + $0x104] ss:$16 sps:$4 sm:$0xff]  }
  0x5b   : > { %1087 = vmatprep.subr.bf16.mxu0 %v1499_v60  ;;  %1169 = vmatprep.subr.bf16.mxu1 %v1501_v61  ;;  %v1531_v17 = vld [vmem:[%s1959_s6 + $0x10c] ss:$16 sps:$4 sm:$0xff]   ;;  %v1533_v18 = vld [vmem:[%s1959_s6 + $0x100] ss:$16 sps:$4 sm:$0xff]   ;;  %v1534_v19 = vld [vmem:[%s1959_s6 + $0x108] ss:$16 sps:$4 sm:$0xff]  }
  0x5c   : > { %v1535_v20 = vld [vmem:[%s1959_s6 + $0x124] ss:$16 sps:$4 sm:$0xff]   ;;  %v1537_v21 = vld [vmem:[%s1959_s6 + $0x12c] ss:$16 sps:$4 sm:$0xff]   ;;  %v1539_v22 = vld [vmem:[%s1959_s6 + $0x120] ss:$16 sps:$4 sm:$0xff]  }
  0x5d   : > { %v1540_v23 = vld [vmem:[%s1959_s6 + $0x128] ss:$16 sps:$4 sm:$0xff]   ;;  %v1541_v24 = vld [vmem:[%s1959_s6 + $0x144] ss:$16 sps:$4 sm:$0xff]   ;;  %v1543_v25 = vld [vmem:[%s1959_s6 + $0x14c] ss:$16 sps:$4 sm:$0xff]  }
  0x5e   : > { %1088 = vmatpush1.bf16.msra.mxu0 %v1503_v62  ;;  %1170 = vmatpush1.bf16.msra.mxu1 %v1504_v63  ;;  %v1545_v26 = vld [vmem:[%s1959_s6 + $0x140] ss:$16 sps:$4 sm:$0xff]   ;;  %v1546_v27 = vld [vmem:[%s1959_s6 + $0x148] ss:$16 sps:$4 sm:$0xff]   ;;  %v1547_v28 = vld [vmem:[%s1959_s6 + $0x164] ss:$16 sps:$4 sm:$0xff]  }
  0x5f   : > { %1089 = vmatprep.subr.bf16.mxu0 %v1505_v0  ;;  %1171 = vmatprep.subr.bf16.mxu1 %v1507_v1  ;;  %v1549_v29 = vld [vmem:[%s1959_s6 + $0x16c] ss:$16 sps:$4 sm:$0xff]   ;;  %v1551_v30 = vld [vmem:[%s1959_s6 + $0x160] ss:$16 sps:$4 sm:$0xff]   ;;  %v1552_v31 = vld [vmem:[%s1959_s6 + $0x168] ss:$16 sps:$4 sm:$0xff]  }
  0x60   : > { %v1553_v32 = vld [vmem:[%s1959_s6 + $0x184] ss:$16 sps:$4 sm:$0xff]   ;;  %v1555_v33 = vld [vmem:[%s1959_s6 + $0x18c] ss:$16 sps:$4 sm:$0xff]   ;;  %v1557_v34 = vld [vmem:[%s1959_s6 + $0x180] ss:$16 sps:$4 sm:$0xff]  }
  0x61   : > { %v1558_v35 = vld [vmem:[%s1959_s6 + $0x188] ss:$16 sps:$4 sm:$0xff]   ;;  %v1559_v36 = vld [vmem:[%s1959_s6 + $0x1a4] ss:$16 sps:$4 sm:$0xff]   ;;  %v1561_v37 = vld [vmem:[%s1959_s6 + $0x1ac] ss:$16 sps:$4 sm:$0xff]  }
  0x62   : > { %1090 = vmatpush1.bf16.msra.mxu0 %v1509_v2  ;;  %1172 = vmatpush1.bf16.msra.mxu1 %v1510_v3  ;;  %v1563_v38 = vld [vmem:[%s1959_s6 + $0x1a0] ss:$16 sps:$4 sm:$0xff]   ;;  %v1564_v39 = vld [vmem:[%s1959_s6 + $0x1a8] ss:$16 sps:$4 sm:$0xff]   ;;  %v1565_v40 = vld [vmem:[%s1959_s6 + $0x1c4] ss:$16 sps:$4 sm:$0xff]  }
  0x63   : > { %1091 = vmatprep.subr.bf16.mxu0 %v1511_v4  ;;  %1173 = vmatprep.subr.bf16.mxu1 %v1513_v5  ;;  %v1567_v41 = vld [vmem:[%s1959_s6 + $0x1cc] ss:$16 sps:$4 sm:$0xff]   ;;  %v1569_v42 = vld [vmem:[%s1959_s6 + $0x1c0] ss:$16 sps:$4 sm:$0xff]   ;;  %v1570_v43 = vld [vmem:[%s1959_s6 + $0x1c8] ss:$16 sps:$4 sm:$0xff]  }
  0x64   : > { %v1571_v45 = vld [vmem:[%s1959_s6 + $0x1e4] ss:$16 sps:$4 sm:$0xff]   ;;  %v1573_v46 = vld [vmem:[%s1959_s6 + $0x1ec] ss:$16 sps:$4 sm:$0xff]   ;;  %v1575_v47 = vld [vmem:[%s1959_s6 + $0x1e0] ss:$16 sps:$4 sm:$0xff]  }
  0x65   : > { %v1576_v48 = vld [vmem:[%s1959_s6 + $0x1e8] ss:$16 sps:$4 sm:$0xff]   ;;  %v1581_v49 = vld [vmem:[%s1959_s6 + $0x204] ss:$16 sps:$4 sm:$0xff]   ;;  %v1584_v50 = vld [vmem:[%s1959_s6 + $0x20c] ss:$16 sps:$4 sm:$0xff]  }
  0x66   : > { %1092 = vmatpush1.bf16.msra.mxu0 %v1515_v6  ;;  %1174 = vmatpush1.bf16.msra.mxu1 %v1516_v7  ;;  %v2030_v51 = vld [vmem:[%s2095_s0 + $0x8] sm:$0xff]  ;;  %v1579_v53 = vld [vmem:[%s1959_s6 + $0x200] ss:$16 sps:$4 sm:$0xff]   ;;  %v1587_v55 = vld [vmem:[%s1959_s6 + $0x224] ss:$16 sps:$4 sm:$0xff]   ;;  %s2103_s9 = smov (!%p402_p8, %s1322_s9), 15 }
  0x67   : > { %1093 = vmatprep.subr.bf16.mxu0 %v1517_v8  ;;  %1175 = vmatprep.subr.bf16.mxu1 %v1519_v9  ;;  %v1582_v54 = vld [vmem:[%s1959_s6 + $0x208] ss:$16 sps:$4 sm:$0xff]   ;;  %v1590_v56 = vld [vmem:[%s1959_s6 + $0x22c] ss:$16 sps:$4 sm:$0xff]   ;;  %v1327_v57 = vcombine.high %v2030_v51, %v2030_v51  ;;  %v1585_v58 = vld [vmem:[%s1959_s6 + $0x220] ss:$16 sps:$4 sm:$0xff]  }
  0x68   : > { %v1588_v59 = vld [vmem:[%s1959_s6 + $0x228] ss:$16 sps:$4 sm:$0xff]   ;;  %v1593_v44 = vld [vmem:[%s1959_s6 + $0x244] ss:$16 sps:$4 sm:$0xff]   ;;  %v1596_v60 = vld [vmem:[%s1959_s6 + $0x24c] ss:$16 sps:$4 sm:$0xff]  }
  0x69   : > { %v1591_v61 = vld [vmem:[%s1959_s6 + $0x240] ss:$16 sps:$4 sm:$0xff]   ;;  %v1594_v62 = vld [vmem:[%s1959_s6 + $0x248] ss:$16 sps:$4 sm:$0xff]   ;;  %v1599_v63 = vld [vmem:[%s1959_s6 + $0x264] ss:$16 sps:$4 sm:$0xff]  }
  0x6a   : > { %1094 = vmatpush1.bf16.msra.mxu0 %v1521_v10  ;;  %1176 = vmatpush1.bf16.msra.mxu1 %v1522_v11  ;;  %v1602_v0 = vld [vmem:[%s1959_s6 + $0x26c] ss:$16 sps:$4 sm:$0xff]   ;;  %v1597_v1 = vld [vmem:[%s1959_s6 + $0x260] ss:$16 sps:$4 sm:$0xff]   ;;  %v1600_v2 = vld [vmem:[%s1959_s6 + $0x268] ss:$16 sps:$4 sm:$0xff]  }
  0x6b   : > { %1095 = vmatprep.subr.bf16.mxu0 %v1523_v12  ;;  %1177 = vmatprep.subr.bf16.mxu1 %v1525_v13  ;;  %v1605_v3 = vld [vmem:[%s1959_s6 + $0x284] ss:$16 sps:$4 sm:$0xff]   ;;  %v1608_v4 = vld [vmem:[%s1959_s6 + $0x28c] ss:$16 sps:$4 sm:$0xff]   ;;  %v1603_v5 = vld [vmem:[%s1959_s6 + $0x280] ss:$16 sps:$4 sm:$0xff]  }
  0x6c   : > { %v1606_v6 = vld [vmem:[%s1959_s6 + $0x288] ss:$16 sps:$4 sm:$0xff]   ;;  %v1611_v7 = vld [vmem:[%s1959_s6 + $0x2a4] ss:$16 sps:$4 sm:$0xff]   ;;  %v1614_v8 = vld [vmem:[%s1959_s6 + $0x2ac] ss:$16 sps:$4 sm:$0xff]  }
  0x6d   : > { %v1609_v9 = vld [vmem:[%s1959_s6 + $0x2a0] ss:$16 sps:$4 sm:$0xff]   ;;  %v1612_v10 = vld [vmem:[%s1959_s6 + $0x2a8] ss:$16 sps:$4 sm:$0xff]   ;;  %v1617_v11 = vld [vmem:[%s1959_s6 + $0x2c4] ss:$16 sps:$4 sm:$0xff]  }
  0x6e   : > { %1096 = vmatpush1.bf16.msra.mxu0 %v1527_v14  ;;  %1178 = vmatpush1.bf16.msra.mxu1 %v1528_v15  ;;  %v1620_v12 = vld [vmem:[%s1959_s6 + $0x2cc] ss:$16 sps:$4 sm:$0xff]   ;;  %v1615_v13 = vld [vmem:[%s1959_s6 + $0x2c0] ss:$16 sps:$4 sm:$0xff]   ;;  %v1618_v14 = vld [vmem:[%s1959_s6 + $0x2c8] ss:$16 sps:$4 sm:$0xff]  }
  0x6f   : > { %1097 = vmatprep.subr.bf16.mxu0 %v1529_v16  ;;  %1179 = vmatprep.subr.bf16.mxu1 %v1531_v17  ;;  %v1623_v15 = vld [vmem:[%s1959_s6 + $0x2e4] ss:$16 sps:$4 sm:$0xff]   ;;  %v1626_v16 = vld [vmem:[%s1959_s6 + $0x2ec] ss:$16 sps:$4 sm:$0xff]   ;;  %v1621_v17 = vld [vmem:[%s1959_s6 + $0x2e0] ss:$16 sps:$4 sm:$0xff]  }
  0x70   : > { %s1323_s10 = sshll.u32 %s2103_s9, 3 }
  0x71   : > { %s405_s17 = scalar_lea.vmem %s2098_s3, %s1323_s10 }
  0x72   : > { %1098 = vmatpush1.bf16.msra.mxu0 %v1533_v18  ;;  %1180 = vmatpush1.bf16.msra.mxu1 %v1534_v19  ;;  %v1624_v18 = vld [vmem:[%s1959_s6 + $0x2e8] ss:$16 sps:$4 sm:$0xff]   ;;  %v1629_v19 = vld [vmem:[%s1959_s6 + $0x304] ss:$16 sps:$4 sm:$0xff]  }
  0x73   : > { %1099 = vmatprep.subr.bf16.mxu0 %v1535_v20  ;;  %1181 = vmatprep.subr.bf16.mxu1 %v1537_v21  ;;  %v1632_v20 = vld [vmem:[%s1959_s6 + $0x30c] ss:$16 sps:$4 sm:$0xff]   ;;  %v1627_v21 = vld [vmem:[%s1959_s6 + $0x300] ss:$16 sps:$4 sm:$0xff]  }
  0x76   : > { %1100 = vmatpush1.bf16.msra.mxu0 %v1539_v22  ;;  %1182 = vmatpush1.bf16.msra.mxu1 %v1540_v23  ;;  %v1630_v22 = vld [vmem:[%s1959_s6 + $0x308] ss:$16 sps:$4 sm:$0xff]   ;;  %v1635_v23 = vld [vmem:[%s1959_s6 + $0x324] ss:$16 sps:$4 sm:$0xff]  }
  0x77   : > { %1101 = vmatprep.subr.bf16.mxu0 %v1541_v24  ;;  %1183 = vmatprep.subr.bf16.mxu1 %v1543_v25  ;;  %v1638_v24 = vld [vmem:[%s1959_s6 + $0x32c] ss:$16 sps:$4 sm:$0xff]   ;;  %v1633_v25 = vld [vmem:[%s1959_s6 + $0x320] ss:$16 sps:$4 sm:$0xff]  }
  0x7a   : > { %1102 = vmatpush1.bf16.msra.mxu0 %v1545_v26  ;;  %1184 = vmatpush1.bf16.msra.mxu1 %v1546_v27  ;;  %v1636_v26 = vld [vmem:[%s1959_s6 + $0x328] ss:$16 sps:$4 sm:$0xff]   ;;  %v1641_v27 = vld [vmem:[%s1959_s6 + $0x344] ss:$16 sps:$4 sm:$0xff]  }
  0x7b   : > { %1103 = vmatprep.subr.bf16.mxu0 %v1547_v28  ;;  %1185 = vmatprep.subr.bf16.mxu1 %v1549_v29  ;;  %v1644_v28 = vld [vmem:[%s1959_s6 + $0x34c] ss:$16 sps:$4 sm:$0xff]   ;;  %v1639_v29 = vld [vmem:[%s1959_s6 + $0x340] ss:$16 sps:$4 sm:$0xff]  }
  0x7e   : > { %1104 = vmatpush1.bf16.msra.mxu0 %v1551_v30  ;;  %1186 = vmatpush1.bf16.msra.mxu1 %v1552_v31  ;;  %v1642_v30 = vld [vmem:[%s1959_s6 + $0x348] ss:$16 sps:$4 sm:$0xff]   ;;  %v1326_v31 = vcombine.low %v2030_v51, %v2030_v51 }
  0x7f   : > { %1105 = vmatprep.subr.bf16.mxu0 %v1553_v32  ;;  %1187 = vmatprep.subr.bf16.mxu1 %v1555_v33 }
  0x82   : > { %1106 = vmatpush1.bf16.msra.mxu0 %v1557_v34  ;;  %1188 = vmatpush1.bf16.msra.mxu1 %v1558_v35 }
  0x83   : > { %1107 = vmatprep.subr.bf16.mxu0 %v1559_v36  ;;  %1189 = vmatprep.subr.bf16.mxu1 %v1561_v37 }
  0x86   : > { %1108 = vmatpush1.bf16.msra.mxu0 %v1563_v38  ;;  %1190 = vmatpush1.bf16.msra.mxu1 %v1564_v39 }
  0x87   : > { %1109 = vmatprep.subr.bf16.mxu0 %v1565_v40  ;;  %1191 = vmatprep.subr.bf16.mxu1 %v1567_v41 }
  0x8a   : > { %1110 = vmatpush1.bf16.msra.mxu0 %v1569_v42  ;;  %1192 = vmatpush1.bf16.msra.mxu1 %v1570_v43 }
  0x8b   : > { %1111 = vmatprep.subr.bf16.mxu0 %v1571_v45  ;;  %1193 = vmatprep.subr.bf16.mxu1 %v1573_v46 }
  0x8e   : > { %1112 = vmatpush1.bf16.msra.mxu0 %v1575_v47  ;;  %1194 = vmatpush1.bf16.msra.mxu1 %v1576_v48 }
  0x8f   : > { %1122 = vmatprep.subr.bf16.mxu0 %v1581_v49  ;;  %1204 = vmatprep.subr.bf16.mxu1 %v1584_v50 }
  0x91   : > { %1114 = vmatmul.mubr.bf16.vlgmr.msra.gmra.mrb[0].mxu0 %v1324_v52  ;;  %1196 = vmatmul.mubr.bf16.vlgmr.msra.gmra.mrb[0].mxu1 %v1324_v52 }
  0x92   : > { %1123 = vmatpush1.bf16.msra.mxu0 %v1579_v53  ;;  %1205 = vmatpush1.bf16.msra.mxu1 %v1582_v54 }
  0x93   : > { %1124 = vmatprep.subr.bf16.mxu0 %v1587_v55  ;;  %1206 = vmatprep.subr.bf16.mxu1 %v1590_v56 }
  0x94   : > { %1436 = vmatprep.mubr.msk.bf16.mxu0 %vm1077_vm0, %v1327_v57  ;;  %1437 = vmatprep.mubr.msk.bf16.mxu1 %vm1077_vm0, %v1327_v57 }
  0x96   : > { %1125 = vmatpush1.bf16.msra.mxu0 %v1585_v58  ;;  %1207 = vmatpush1.bf16.msra.mxu1 %v1588_v59 }
  0x97   : > { %1126 = vmatprep.subr.bf16.mxu0 %v1593_v44  ;;  %1208 = vmatprep.subr.bf16.mxu1 %v1596_v60 }
  0x9a   : > { %1127 = vmatpush1.bf16.msra.mxu0 %v1591_v61  ;;  %1209 = vmatpush1.bf16.msra.mxu1 %v1594_v62 }
  0x9b   : > { %1128 = vmatprep.subr.bf16.mxu0 %v1599_v63  ;;  %1210 = vmatprep.subr.bf16.mxu1 %v1602_v0 }
  0x9e   : > { %1129 = vmatpush1.bf16.msra.mxu0 %v1597_v1  ;;  %1211 = vmatpush1.bf16.msra.mxu1 %v1600_v2 }
  0x9f   : > { %1130 = vmatprep.subr.bf16.mxu0 %v1605_v3  ;;  %1212 = vmatprep.subr.bf16.mxu1 %v1608_v4 }
  0xa2   : > { %1131 = vmatpush1.bf16.msra.mxu0 %v1603_v5  ;;  %1213 = vmatpush1.bf16.msra.mxu1 %v1606_v6 }
  0xa3   : > { %1132 = vmatprep.subr.bf16.mxu0 %v1611_v7  ;;  %1214 = vmatprep.subr.bf16.mxu1 %v1614_v8 }
  0xa6   : > { %1133 = vmatpush1.bf16.msra.mxu0 %v1609_v9  ;;  %1215 = vmatpush1.bf16.msra.mxu1 %v1612_v10 }
  0xa7   : > { %1134 = vmatprep.subr.bf16.mxu0 %v1617_v11  ;;  %1216 = vmatprep.subr.bf16.mxu1 %v1620_v12 }
  0xaa   : > { %1135 = vmatpush1.bf16.msra.mxu0 %v1615_v13  ;;  %1217 = vmatpush1.bf16.msra.mxu1 %v1618_v14 }
  0xab   : > { %1136 = vmatprep.subr.bf16.mxu0 %v1623_v15  ;;  %1218 = vmatprep.subr.bf16.mxu1 %v1626_v16 }
  0xae   : > { %1137 = vmatpush1.bf16.msra.mxu0 %v1621_v17  ;;  %1219 = vmatpush1.bf16.msra.mxu1 %v1624_v18 }
  0xaf   : > { %1138 = vmatprep.subr.bf16.mxu0 %v1629_v19  ;;  %1220 = vmatprep.subr.bf16.mxu1 %v1632_v20 }
  0xb2   : > { %1139 = vmatpush1.bf16.msra.mxu0 %v1627_v21  ;;  %1221 = vmatpush1.bf16.msra.mxu1 %v1630_v22 }
  0xb3   : > { %1140 = vmatprep.subr.bf16.mxu0 %v1635_v23  ;;  %1222 = vmatprep.subr.bf16.mxu1 %v1638_v24 }
  0xb6   : > { %1141 = vmatpush1.bf16.msra.mxu0 %v1633_v25  ;;  %1223 = vmatpush1.bf16.msra.mxu1 %v1636_v26 }
  0xb7   : > { %1142 = vmatprep.subr.bf16.mxu0 %v1641_v27  ;;  %1224 = vmatprep.subr.bf16.mxu1 %v1644_v28 }
  0xba   : > { %1143 = vmatpush1.bf16.msra.mxu0 %v1639_v29  ;;  %1225 = vmatpush1.bf16.msra.mxu1 %v1642_v30 }
  0xbd   : > { %1155 = vmatmul.mubr.bf16.vlgmr.msra.gmra.mrb[0].mxu0 %v1326_v31  ;;  %1237 = vmatmul.mubr.bf16.vlgmr.msra.gmra.mrb[0].mxu1 %v1326_v31 }
  0xcc   : > { %v522_v32 = vpop.permute.xlu0 %521 }
 0x190   : > { %v1156_v33 = vpop.f32.mrb[0].mxu0  ;;  %v1238_v34 = vpop.f32.mrb[0].mxu1 }
 0x191   : > { %v1441_v35 = vadd.f32 %v1156_v33, %v522_v32  ;;  %v1443_v36 = vadd.f32 %v1238_v34, %v522_v32  ;;  %v1158_v37 = vpop.f32.mrb[1].mxu0  ;;  %v1240_v38 = vpop.f32.mrb[1].mxu1 }
 0x192   : > { %v1442_v39 = vadd.f32 %v1158_v37, %v522_v32  ;;  %v1444_v40 = vadd.f32 %v1240_v38, %v522_v32  ;;  %v1160_v41 = vpop.f32.mrb[2].mxu0  ;;  %v1242_v42 = vpop.f32.mrb[2].mxu1 }
 0x193   : > { %v1245_v43 = vmax.f32 %v1441_v35, 0.0  ;;  %v1247_v45 = vmax.f32 %v1443_v36, 0.0  ;;  %v1161_v46 = vpop.f32.mrb[3].mxu0  ;;  %v1243_v47 = vpop.f32.mrb[3].mxu1 }
 0x194   : > { %v1246_v48 = vmax.f32 %v1442_v39, 0.0  ;;  %v1248_v49 = vmax.f32 %v1444_v40, 0.0 }
 0x195   : > { %1249 = vst [vmem:[%s405_s17] sm:$0xff] %v1245_v43  ;;  %1251 = vst [vmem:[%s405_s17 + $0x10] sm:$0xff] %v1247_v45 }
 0x196   : > { %1250 = vst [vmem:[%s405_s17 + $0x8] sm:$0xff] %v1246_v48  ;;  %1252 = vst [vmem:[%s405_s17 + $0x18] sm:$0xff] %v1248_v49 }
 0x197 PF: > { %p10_p9 = scmp.ge.s32.totalorder %s1709_s16, 6   ;;  %s2099_s12 = smov %s1665_s13 }
 0x198   : > { %s2100_s13 = smov %s1718_s19  ;;  %s2101_s14 = smov %s1709_s16 }
 0x199   :  { %12 = sbr.rel (!%p10_p9) target bundleno = 2 (0x2), region = 90 }

// kernel: unet_forward.15
= control target key start
LH: loop header
LB: loop body
LE: loop exit
PB: predicated region body
PF: predicated region fallthrough
CT: control target
= control target key end

     0   :  { %s1040_s12 = smov 0   ;;  %s1042_s13 = smov 0   ;;  %s1272_s0 = inlined_call_operand.vmem [shape: bf16[3,216], index: 0, kind: input, shape index: {}]   ;;  %s1273_s1 = inlined_call_operand.vmem [shape: bf16[216,2048], index: 1, kind: input, shape index: {}]   ;;  %s1274_s2 = inlined_call_operand.vmem [shape: f32[3,1], index: 2, kind: input, shape index: {}]   ;;  %s1275_s3 = inlined_call_operand.vmem [shape: f32[3,2048], index: 3, kind: output, shape index: {}]  }
   0x1   :  { %s1044_s14 = smov 0  }
   0x2 LB: > { %s812_s15 = sadd.s32 4294967295, %s1017_s14   ;;  %s1057_s16 = sadd.s32 1, %s1017_s14   ;;  %s1017_s14 = sphi %s1044_s14, %s1278_s14   ;;  %s1013_s13 = sphi %s1042_s13, %s1277_s13   ;;  %s1009_s12 = sphi %s1040_s12, %s1276_s12  }
   0x3   : > { %s38_s17 = ssub.s32 %s1017_s14, %s1057_s16  ;;  %s41_s18 = sadd.s32 1, %s1013_s13 }
   0x4   : > { %p39_p0 = scmp.eq.s32.totalorder %s38_s17, 0  ;;  %p48_p1 = scmp.ne.s32.totalorder %s1013_s13, %s1009_s12 }
   0x5   : > { %p49_p2 = scmp.eq.s32.totalorder %s1017_s14, 0  ;;  %p815_p4 = scmp.ge.s32.totalorder %s1017_s14, 4 }
   0x6   : > { %s1066_s19 = scalar_select %p39_p0, %s1013_s13, %s41_s18  }
   0x7   : > { %p50_p3 = por %p49_p2, %p48_p1  ;;  %127 = sbr.rel (%p815_p4) target bundleno = 45 (0x2d), region = 24 }
   0xe   : > { %130 = sbr.rel (!%p50_p3) target bundleno = 45 (0x2d), region = 28  ;;  %s132_s20 = sand.u32 (%p50_p3), 1, %s1013_s13  }
   0xf   : > { %s884_s21 = sshll.u32 (%p50_p3), %s1017_s14, 4  ;;  %s885_s22 = smul.u32 (%p50_p3), 432, %s132_s20 }
  0x10   : > { %s1074_s25 = scalar_lea.vmem (%p50_p3), %s1273_s1, %s884_s21 }
  0x11   : > { %v150_v0 = vld [vmem:[%s1074_s25] sm:$0xff] (%p50_p3)  ;;  %v152_v1 = vld [vmem:[%s1074_s25 + $0x8] sm:$0xff] (%p50_p3)  ;;  %s1082_s26 = scalar_lea.vmem (%p50_p3), [#allocation2], %s885_s22 }
  0x12   : > { %v154_v2 = vld [vmem:[%s1074_s25 + $0x40] sm:$0xff] (%p50_p3)  ;;  %v156_v3 = vld [vmem:[%s1074_s25 + $0x48] sm:$0xff] (%p50_p3)  ;;  %151 = vst [vmem:[%s1082_s26] sm:$0xff] (%p50_p3), %v150_v0  ;;  %153 = vst [vmem:[%s1082_s26 + $0x8] sm:$0xff] (%p50_p3), %v152_v1 }
  0x13   : > { %v158_v4 = vld [vmem:[%s1074_s25 + $0x80] sm:$0xff] (%p50_p3)  ;;  %v160_v5 = vld [vmem:[%s1074_s25 + $0x88] sm:$0xff] (%p50_p3)  ;;  %155 = vst [vmem:[%s1082_s26 + $0x10] sm:$0xff] (%p50_p3), %v154_v2  ;;  %157 = vst [vmem:[%s1082_s26 + $0x18] sm:$0xff] (%p50_p3), %v156_v3 }
  0x14   : > { %159 = vst [vmem:[%s1082_s26 + $0x20] sm:$0xff] (%p50_p3), %v158_v4  ;;  %161 = vst [vmem:[%s1082_s26 + $0x28] sm:$0xff] (%p50_p3), %v160_v5  ;;  %v162_v6 = vld [vmem:[%s1074_s25 + $0xc0] sm:$0xff] (%p50_p3)  ;;  %v164_v7 = vld [vmem:[%s1074_s25 + $0xc8] sm:$0xff] (%p50_p3) }
  0x15   : > { %v166_v8 = vld [vmem:[%s1074_s25 + $0x100] sm:$0xff]  ;;  %163 = vst [vmem:[%s1082_s26 + $0x30] sm:$0xff] %v162_v6  ;;  %165 = vst [vmem:[%s1082_s26 + $0x38] sm:$0xff] %v164_v7  ;;  %v168_v9 = vld [vmem:[%s1074_s25 + $0x108] sm:$0xff] }
  0x16   : > { %167 = vst [vmem:[%s1082_s26 + $0x40] sm:$0xff] %v166_v8  ;;  %v170_v10 = vld [vmem:[%s1074_s25 + $0x140] sm:$0xff]  ;;  %v172_v11 = vld [vmem:[%s1074_s25 + $0x148] sm:$0xff]  ;;  %169 = vst [vmem:[%s1082_s26 + $0x48] sm:$0xff] %v168_v9 }
  0x17   : > { %171 = vst [vmem:[%s1082_s26 + $0x50] sm:$0xff] %v170_v10  ;;  %173 = vst [vmem:[%s1082_s26 + $0x58] sm:$0xff] %v172_v11  ;;  %v174_v12 = vld [vmem:[%s1074_s25 + $0x180] sm:$0xff]  ;;  %v176_v13 = vld [vmem:[%s1074_s25 + $0x188] sm:$0xff] }
  0x18   : > { %v178_v14 = vld [vmem:[%s1074_s25 + $0x1c0] sm:$0xff]  ;;  %175 = vst [vmem:[%s1082_s26 + $0x60] sm:$0xff] %v174_v12  ;;  %177 = vst [vmem:[%s1082_s26 + $0x68] sm:$0xff] %v176_v13  ;;  %v180_v15 = vld [vmem:[%s1074_s25 + $0x1c8] sm:$0xff] }
  0x19   : > { %179 = vst [vmem:[%s1082_s26 + $0x70] sm:$0xff] %v178_v14  ;;  %v182_v16 = vld [vmem:[%s1074_s25 + $0x200] sm:$0xff]  ;;  %v184_v17 = vld [vmem:[%s1074_s25 + $0x208] sm:$0xff]  ;;  %181 = vst [vmem:[%s1082_s26 + $0x78] sm:$0xff] %v180_v15 }
  0x1a   : > { %183 = vst [vmem:[%s1082_s26 + $0x80] sm:$0xff] %v182_v16  ;;  %185 = vst [vmem:[%s1082_s26 + $0x88] sm:$0xff] %v184_v17  ;;  %v186_v18 = vld [vmem:[%s1074_s25 + $0x240] sm:$0xff]  ;;  %v188_v19 = vld [vmem:[%s1074_s25 + $0x248] sm:$0xff] }
  0x1b   : > { %v190_v20 = vld [vmem:[%s1074_s25 + $0x280] sm:$0xff]  ;;  %187 = vst [vmem:[%s1082_s26 + $0x90] sm:$0xff] %v186_v18  ;;  %189 = vst [vmem:[%s1082_s26 + $0x98] sm:$0xff] %v188_v19  ;;  %v192_v21 = vld [vmem:[%s1074_s25 + $0x288] sm:$0xff] }
  0x1c   : > { %191 = vst [vmem:[%s1082_s26 + $0xa0] sm:$0xff] %v190_v20  ;;  %v194_v22 = vld [vmem:[%s1074_s25 + $0x2c0] sm:$0xff]  ;;  %v196_v23 = vld [vmem:[%s1074_s25 + $0x2c8] sm:$0xff]  ;;  %193 = vst [vmem:[%s1082_s26 + $0xa8] sm:$0xff] %v192_v21 }
  0x1d   : > { %195 = vst [vmem:[%s1082_s26 + $0xb0] sm:$0xff] %v194_v22  ;;  %197 = vst [vmem:[%s1082_s26 + $0xb8] sm:$0xff] %v196_v23  ;;  %v198_v24 = vld [vmem:[%s1074_s25 + $0x300] sm:$0xff]  ;;  %v200_v25 = vld [vmem:[%s1074_s25 + $0x308] sm:$0xff] }
  0x1e   : > { %v202_v26 = vld [vmem:[%s1074_s25 + $0x340] sm:$0xff]  ;;  %199 = vst [vmem:[%s1082_s26 + $0xc0] sm:$0xff] %v198_v24  ;;  %201 = vst [vmem:[%s1082_s26 + $0xc8] sm:$0xff] %v200_v25  ;;  %v204_v27 = vld [vmem:[%s1074_s25 + $0x348] sm:$0xff] }
  0x1f   : > { %203 = vst [vmem:[%s1082_s26 + $0xd0] sm:$0xff] %v202_v26  ;;  %v206_v28 = vld [vmem:[%s1074_s25 + $0x380] sm:$0xff]  ;;  %v208_v29 = vld [vmem:[%s1074_s25 + $0x388] sm:$0xff]  ;;  %205 = vst [vmem:[%s1082_s26 + $0xd8] sm:$0xff] %v204_v27 }
  0x20   : > { %207 = vst [vmem:[%s1082_s26 + $0xe0] sm:$0xff] %v206_v28  ;;  %209 = vst [vmem:[%s1082_s26 + $0xe8] sm:$0xff] %v208_v29  ;;  %v210_v30 = vld [vmem:[%s1074_s25 + $0x3c0] sm:$0xff]  ;;  %v212_v31 = vld [vmem:[%s1074_s25 + $0x3c8] sm:$0xff] }
  0x21   : > { %v214_v32 = vld [vmem:[%s1074_s25 + $0x400] sm:$0xff]  ;;  %211 = vst [vmem:[%s1082_s26 + $0xf0] sm:$0xff] %v210_v30  ;;  %213 = vst [vmem:[%s1082_s26 + $0xf8] sm:$0xff] %v212_v31  ;;  %v216_v33 = vld [vmem:[%s1074_s25 + $0x408] sm:$0xff] }
  0x22   : > { %215 = vst [vmem:[%s1082_s26 + $0x100] sm:$0xff] %v214_v32  ;;  %v218_v34 = vld [vmem:[%s1074_s25 + $0x440] sm:$0xff]  ;;  %v220_v35 = vld [vmem:[%s1074_s25 + $0x448] sm:$0xff]  ;;  %217 = vst [vmem:[%s1082_s26 + $0x108] sm:$0xff] %v216_v33 }
  0x23   : > { %219 = vst [vmem:[%s1082_s26 + $0x110] sm:$0xff] %v218_v34  ;;  %221 = vst [vmem:[%s1082_s26 + $0x118] sm:$0xff] %v220_v35  ;;  %v222_v36 = vld [vmem:[%s1074_s25 + $0x480] sm:$0xff]  ;;  %v224_v37 = vld [vmem:[%s1074_s25 + $0x488] sm:$0xff] }
  0x24   : > { %v226_v38 = vld [vmem:[%s1074_s25 + $0x4c0] sm:$0xff]  ;;  %223 = vst [vmem:[%s1082_s26 + $0x120] sm:$0xff] %v222_v36  ;;  %225 = vst [vmem:[%s1082_s26 + $0x128] sm:$0xff] %v224_v37  ;;  %v228_v39 = vld [vmem:[%s1074_s25 + $0x4c8] sm:$0xff] }
  0x25   : > { %227 = vst [vmem:[%s1082_s26 + $0x130] sm:$0xff] %v226_v38  ;;  %v230_v40 = vld [vmem:[%s1074_s25 + $0x500] sm:$0xff]  ;;  %v232_v41 = vld [vmem:[%s1074_s25 + $0x508] sm:$0xff]  ;;  %229 = vst [vmem:[%s1082_s26 + $0x138] sm:$0xff] %v228_v39 }
  0x26   : > { %231 = vst [vmem:[%s1082_s26 + $0x140] sm:$0xff] %v230_v40  ;;  %233 = vst [vmem:[%s1082_s26 + $0x148] sm:$0xff] %v232_v41  ;;  %v234_v42 = vld [vmem:[%s1074_s25 + $0x540] sm:$0xff]  ;;  %v236_v43 = vld [vmem:[%s1074_s25 + $0x548] sm:$0xff] }
  0x27   : > { %v238_v44 = vld [vmem:[%s1074_s25 + $0x580] sm:$0xff]  ;;  %235 = vst [vmem:[%s1082_s26 + $0x150] sm:$0xff] %v234_v42  ;;  %237 = vst [vmem:[%s1082_s26 + $0x158] sm:$0xff] %v236_v43  ;;  %v240_v45 = vld [vmem:[%s1074_s25 + $0x588] sm:$0xff] }
  0x28   : > { %239 = vst [vmem:[%s1082_s26 + $0x160] sm:$0xff] %v238_v44  ;;  %v242_v46 = vld [vmem:[%s1074_s25 + $0x5c0] sm:$0xff]  ;;  %v244_v47 = vld [vmem:[%s1074_s25 + $0x5c8] sm:$0xff]  ;;  %241 = vst [vmem:[%s1082_s26 + $0x168] sm:$0xff] %v240_v45 }
  0x29   : > { %243 = vst [vmem:[%s1082_s26 + $0x170] sm:$0xff] %v242_v46  ;;  %245 = vst [vmem:[%s1082_s26 + $0x178] sm:$0xff] %v244_v47  ;;  %v246_v48 = vld [vmem:[%s1074_s25 + $0x600] sm:$0xff]  ;;  %v248_v49 = vld [vmem:[%s1074_s25 + $0x608] sm:$0xff] }
  0x2a   : > { %v250_v50 = vld [vmem:[%s1074_s25 + $0x640] sm:$0xff]  ;;  %247 = vst [vmem:[%s1082_s26 + $0x180] sm:$0xff] %v246_v48  ;;  %249 = vst [vmem:[%s1082_s26 + $0x188] sm:$0xff] %v248_v49  ;;  %v252_v51 = vld [vmem:[%s1074_s25 + $0x648] sm:$0xff] }
  0x2b   : > { %251 = vst [vmem:[%s1082_s26 + $0x190] sm:$0xff] %v250_v50  ;;  %v254_v52 = vld [vmem:[%s1074_s25 + $0x680] sm:$0xff]  ;;  %v256_v53 = vld [vmem:[%s1074_s25 + $0x688] sm:$0xff]  ;;  %253 = vst [vmem:[%s1082_s26 + $0x198] sm:$0xff] %v252_v51 }
  0x2c   : > { %255 = vst [vmem:[%s1082_s26 + $0x1a0] sm:$0xff] %v254_v52  ;;  %257 = vst [vmem:[%s1082_s26 + $0x1a8] sm:$0xff] %v256_v53 }
  0x2d PF: > { %p818_p5 = scmp.ge.s32.totalorder %s1017_s14, 1  ;;  %p262_p6 = scmp.lt.s32.totalorder %s1017_s14, 5 }
  0x2f   : > { %p263_p7 = pnand %p818_p5, %p262_p6 }
  0x30   : > { %s269_s27 = sand.u32 (!%p263_p7), 1, %s1009_s12   ;;  %v1192_v54 = vld.sshfl [vmem:[%s1272_s0] sm:$0x33 pattern:$0x76325410] (!%p263_p7)  ;;  %vm641_vm0 = vcmask (!%p263_p7), 719872  }
  0x31   : > { %266 = sbr.rel (%p263_p7) target bundleno = 328 (0x148), region = 51  ;;  %v369_v55 = vcombine.high (!%p263_p7), %v1192_v54, %v1192_v54  ;;  %v355_v56 = vld [vmem:[%s1274_s2] sm:$0x7] (!%p263_p7)  ;;  %v1019_v57 = vmov (!%p263_p7), 0   ;;  %vm645_vm1 = vcmask (!%p263_p7), 1043456   ;;  %s819_s7 = sshll.u32 (!%p263_p7), %s812_s15, 2 }
  0x32   : > { %s886_s30 = smul.u32 (!%p263_p7), 432, %s269_s27  ;;  %912 = vset.pattern.permute.xlu0 (!%p263_p7), %v1019_v57  ;;  %p294_p8 = scmp.lt.s32.totalorder (!%p263_p7), %s819_s7, 15 }
  0x33   : > { %879 = vmatprep.mubr.msk.bf16.mxu0 (!%p263_p7), %vm641_vm0, %v369_v55  ;;  %881 = vmatprep.mubr.msk.bf16.mxu1 (!%p263_p7), %vm641_vm0, %v369_v55 }
  0x34   : > { %s1199_s6 = scalar_lea.vmem (!%p263_p7), [#allocation2], %s886_s30  ;;  %358 = vperm.xlu0 (!%p263_p7), %912, %v355_v56  }
  0x35   : > { %v913_v58 = vld [vmem:[%s1199_s6 + $0x4] ss:$16 sps:$4 sm:$0xff] (!%p263_p7)   ;;  %v915_v59 = vld [vmem:[%s1199_s6 + $0xc] ss:$16 sps:$4 sm:$0xff] (!%p263_p7)   ;;  %v917_v60 = vld [vmem:[%s1199_s6] ss:$16 sps:$4 sm:$0xff] (!%p263_p7)  }
  0x36   : > { %658 = vmatprep.subr.bf16.mxu0 (!%p263_p7), %v913_v58  ;;  %v918_v61 = vld [vmem:[%s1199_s6 + $0x8] ss:$16 sps:$4 sm:$0xff] (!%p263_p7)   ;;  %699 = vmatprep.subr.bf16.mxu1 (!%p263_p7), %v915_v59  ;;  %v919_v62 = vld [vmem:[%s1199_s6 + $0x24] ss:$16 sps:$4 sm:$0xff] (!%p263_p7)   ;;  %v921_v63 = vld [vmem:[%s1199_s6 + $0x2c] ss:$16 sps:$4 sm:$0xff] (!%p263_p7)  }
  0x37   : > { %659 = vmatpush1.bf16.msra.mxu0 (!%p263_p7), %v917_v60  ;;  %700 = vmatpush1.bf16.msra.mxu1 (!%p263_p7), %v918_v61  ;;  %v923_v0 = vld [vmem:[%s1199_s6 + $0x20] ss:$16 sps:$4 sm:$0xff] (!%p263_p7)   ;;  %v924_v1 = vld [vmem:[%s1199_s6 + $0x28] ss:$16 sps:$4 sm:$0xff] (!%p263_p7)   ;;  %v925_v2 = vld [vmem:[%s1199_s6 + $0x44] ss:$16 sps:$4 sm:$0xff] (!%p263_p7)  }
  0x38   : > { %660 = vmatprep.subr.bf16.mxu0 %v919_v62  ;;  %701 = vmatprep.subr.bf16.mxu1 %v921_v63  ;;  %v927_v3 = vld [vmem:[%s1199_s6 + $0x4c] ss:$16 sps:$4 sm:$0xff]   ;;  %v929_v4 = vld [vmem:[%s1199_s6 + $0x40] ss:$16 sps:$4 sm:$0xff]   ;;  %v930_v5 = vld [vmem:[%s1199_s6 + $0x48] ss:$16 sps:$4 sm:$0xff]  }
  0x39   : > { %v931_v6 = vld [vmem:[%s1199_s6 + $0x64] ss:$16 sps:$4 sm:$0xff]   ;;  %v933_v7 = vld [vmem:[%s1199_s6 + $0x6c] ss:$16 sps:$4 sm:$0xff]   ;;  %v935_v8 = vld [vmem:[%s1199_s6 + $0x60] ss:$16 sps:$4 sm:$0xff]  }
  0x3a   : > { %v936_v9 = vld [vmem:[%s1199_s6 + $0x68] ss:$16 sps:$4 sm:$0xff]   ;;  %v937_v10 = vld [vmem:[%s1199_s6 + $0x84] ss:$16 sps:$4 sm:$0xff]   ;;  %v939_v11 = vld [vmem:[%s1199_s6 + $0x8c] ss:$16 sps:$4 sm:$0xff]  }
  0x3b   : > { %661 = vmatpush1.bf16.msra.mxu0 %v923_v0  ;;  %702 = vmatpush1.bf16.msra.mxu1 %v924_v1  ;;  %v941_v12 = vld [vmem:[%s1199_s6 + $0x80] ss:$16 sps:$4 sm:$0xff]   ;;  %v942_v13 = vld [vmem:[%s1199_s6 + $0x88] ss:$16 sps:$4 sm:$0xff]   ;;  %v943_v14 = vld [vmem:[%s1199_s6 + $0xa4] ss:$16 sps:$4 sm:$0xff]  }
  0x3c   : > { %662 = vmatprep.subr.bf16.mxu0 %v925_v2  ;;  %703 = vmatprep.subr.bf16.mxu1 %v927_v3  ;;  %v945_v15 = vld [vmem:[%s1199_s6 + $0xac] ss:$16 sps:$4 sm:$0xff]   ;;  %v947_v16 = vld [vmem:[%s1199_s6 + $0xa0] ss:$16 sps:$4 sm:$0xff]   ;;  %v948_v17 = vld [vmem:[%s1199_s6 + $0xa8] ss:$16 sps:$4 sm:$0xff]  }
  0x3d   : > { %v949_v18 = vld [vmem:[%s1199_s6 + $0xc4] ss:$16 sps:$4 sm:$0xff]   ;;  %v951_v19 = vld [vmem:[%s1199_s6 + $0xcc] ss:$16 sps:$4 sm:$0xff]   ;;  %v953_v20 = vld [vmem:[%s1199_s6 + $0xc0] ss:$16 sps:$4 sm:$0xff]  }
  0x3e   : > { %v954_v21 = vld [vmem:[%s1199_s6 + $0xc8] ss:$16 sps:$4 sm:$0xff]   ;;  %v955_v22 = vld [vmem:[%s1199_s6 + $0xe4] ss:$16 sps:$4 sm:$0xff]   ;;  %v957_v23 = vld [vmem:[%s1199_s6 + $0xec] ss:$16 sps:$4 sm:$0xff]  }
  0x3f   : > { %663 = vmatpush1.bf16.msra.mxu0 %v929_v4  ;;  %704 = vmatpush1.bf16.msra.mxu1 %v930_v5  ;;  %v959_v24 = vld [vmem:[%s1199_s6 + $0xe0] ss:$16 sps:$4 sm:$0xff]   ;;  %v960_v25 = vld [vmem:[%s1199_s6 + $0xe8] ss:$16 sps:$4 sm:$0xff]   ;;  %v961_v26 = vld [vmem:[%s1199_s6 + $0x104] ss:$16 sps:$4 sm:$0xff]  }
  0x40   : > { %664 = vmatprep.subr.bf16.mxu0 %v931_v6  ;;  %705 = vmatprep.subr.bf16.mxu1 %v933_v7  ;;  %v963_v27 = vld [vmem:[%s1199_s6 + $0x10c] ss:$16 sps:$4 sm:$0xff]   ;;  %v965_v28 = vld [vmem:[%s1199_s6 + $0x100] ss:$16 sps:$4 sm:$0xff]   ;;  %v966_v29 = vld [vmem:[%s1199_s6 + $0x108] ss:$16 sps:$4 sm:$0xff]  }
  0x41   : > { %v967_v30 = vld [vmem:[%s1199_s6 + $0x124] ss:$16 sps:$4 sm:$0xff]   ;;  %v969_v31 = vld [vmem:[%s1199_s6 + $0x12c] ss:$16 sps:$4 sm:$0xff]   ;;  %v971_v32 = vld [vmem:[%s1199_s6 + $0x120] ss:$16 sps:$4 sm:$0xff]  }
  0x42   : > { %v972_v33 = vld [vmem:[%s1199_s6 + $0x128] ss:$16 sps:$4 sm:$0xff]   ;;  %v973_v34 = vld [vmem:[%s1199_s6 + $0x144] ss:$16 sps:$4 sm:$0xff]   ;;  %v975_v35 = vld [vmem:[%s1199_s6 + $0x14c] ss:$16 sps:$4 sm:$0xff]  }
  0x43   : > { %665 = vmatpush1.bf16.msra.mxu0 %v935_v8  ;;  %706 = vmatpush1.bf16.msra.mxu1 %v936_v9  ;;  %v977_v36 = vld [vmem:[%s1199_s6 + $0x140] ss:$16 sps:$4 sm:$0xff]   ;;  %v978_v37 = vld [vmem:[%s1199_s6 + $0x148] ss:$16 sps:$4 sm:$0xff]   ;;  %v979_v38 = vld [vmem:[%s1199_s6 + $0x164] ss:$16 sps:$4 sm:$0xff]  }
  0x44   : > { %666 = vmatprep.subr.bf16.mxu0 %v937_v10  ;;  %707 = vmatprep.subr.bf16.mxu1 %v939_v11  ;;  %v981_v39 = vld [vmem:[%s1199_s6 + $0x16c] ss:$16 sps:$4 sm:$0xff]   ;;  %v983_v40 = vld [vmem:[%s1199_s6 + $0x160] ss:$16 sps:$4 sm:$0xff]   ;;  %v984_v41 = vld [vmem:[%s1199_s6 + $0x168] ss:$16 sps:$4 sm:$0xff]  }
  0x45   : > { %v985_v42 = vld [vmem:[%s1199_s6 + $0x184] ss:$16 sps:$4 sm:$0xff]   ;;  %v987_v43 = vld [vmem:[%s1199_s6 + $0x18c] ss:$16 sps:$4 sm:$0xff]   ;;  %v989_v46 = vld [vmem:[%s1199_s6 + $0x180] ss:$16 sps:$4 sm:$0xff]  }
  0x46   : > { %v353_v44 = vld [vmem:[%s1199_s6 + $0x1a0] sm:$0xff]  ;;  %v354_v45 = vld [vmem:[%s1199_s6 + $0x1a8] sm:$0xff]  ;;  %s1280_s7 = smov (!%p294_p8, %s819_s7), 15 }
  0x47   : > { %667 = vmatpush1.bf16.msra.mxu0 %v941_v12  ;;  %708 = vmatpush1.bf16.msra.mxu1 %v942_v13  ;;  %v990_v47 = vld [vmem:[%s1199_s6 + $0x188] ss:$16 sps:$4 sm:$0xff]   ;;  %v875_v48 = vcombine.high %v353_v44, %v353_v44  ;;  %v877_v49 = vcombine.high %v354_v45, %v354_v45  ;;  %v874_v50 = vcombine.low %v353_v44, %v353_v44  ;;  %s820_s8 = sshll.u32 %s1280_s7, 2 }
  0x48   : > { %668 = vmatprep.subr.bf16.mxu0 %v943_v14  ;;  %709 = vmatprep.subr.bf16.mxu1 %v945_v15  ;;  %v876_v51 = vcombine.low %v354_v45, %v354_v45  ;;  %s297_s11 = scalar_lea.vmem %s1275_s3, %s820_s8 }
  0x49   : > { %v647_v52 = vsel %vm645_vm1, %v874_v50, 0 }
  0x4a   : > { %v653_v53 = vsel %vm645_vm1, %v876_v51, 0 }
  0x4b   : > { %669 = vmatpush1.bf16.msra.mxu0 %v947_v16  ;;  %710 = vmatpush1.bf16.msra.mxu1 %v948_v17 }
  0x4c   : > { %670 = vmatprep.subr.bf16.mxu0 %v949_v18  ;;  %711 = vmatprep.subr.bf16.mxu1 %v951_v19 }
  0x4f   : > { %671 = vmatpush1.bf16.msra.mxu0 %v953_v20  ;;  %712 = vmatpush1.bf16.msra.mxu1 %v954_v21 }
  0x50   : > { %672 = vmatprep.subr.bf16.mxu0 %v955_v22  ;;  %713 = vmatprep.subr.bf16.mxu1 %v957_v23 }
  0x53   : > { %673 = vmatpush1.bf16.msra.mxu0 %v959_v24  ;;  %714 = vmatpush1.bf16.msra.mxu1 %v960_v25 }
  0x54   : > { %674 = vmatprep.subr.bf16.mxu0 %v961_v26  ;;  %715 = vmatprep.subr.bf16.mxu1 %v963_v27 }
  0x57   : > { %675 = vmatpush1.bf16.msra.mxu0 %v965_v28  ;;  %716 = vmatpush1.bf16.msra.mxu1 %v966_v29 }
  0x58   : > { %676 = vmatprep.subr.bf16.mxu0 %v967_v30  ;;  %717 = vmatprep.subr.bf16.mxu1 %v969_v31 }
  0x5b   : > { %677 = vmatpush1.bf16.msra.mxu0 %v971_v32  ;;  %718 = vmatpush1.bf16.msra.mxu1 %v972_v33 }
  0x5c   : > { %678 = vmatprep.subr.bf16.mxu0 %v973_v34  ;;  %719 = vmatprep.subr.bf16.mxu1 %v975_v35 }
  0x5f   : > { %679 = vmatpush1.bf16.msra.mxu0 %v977_v36  ;;  %720 = vmatpush1.bf16.msra.mxu1 %v978_v37 }
  0x60   : > { %680 = vmatprep.subr.bf16.mxu0 %v979_v38  ;;  %721 = vmatprep.subr.bf16.mxu1 %v981_v39 }
  0x63   : > { %681 = vmatpush1.bf16.msra.mxu0 %v983_v40  ;;  %722 = vmatpush1.bf16.msra.mxu1 %v984_v41 }
  0x64   : > { %682 = vmatprep.subr.bf16.mxu0 %v985_v42  ;;  %723 = vmatprep.subr.bf16.mxu1 %v987_v43 }
  0x67   : > { %683 = vmatpush1.bf16.msra.mxu0 %v989_v46  ;;  %724 = vmatpush1.bf16.msra.mxu1 %v990_v47 }
  0x68   : > { %878 = vmatprep.subr.msk.bf16.mxu0 %vm645_vm1, %v875_v48  ;;  %880 = vmatprep.subr.msk.bf16.mxu1 %vm645_vm1, %v877_v49 }
  0x6b   : > { %685 = vmatpush1.bf16.msra.mxu0 %v647_v52  ;;  %726 = vmatpush1.bf16.msra.mxu1 %v653_v53 }
  0x6e   : > { %691 = vmatmul.mubr.bf16.vlgmr.msra.gmra.mrb[0].mxu0 %v1192_v54  ;;  %732 = vmatmul.mubr.bf16.vlgmr.msra.gmra.mrb[0].mxu1 %v1192_v54 }
  0xb3   : > { %v359_v55 = vpop.permute.xlu0 %358 }
 0x141   : > { %v692_v56 = vpop.f32.mrb[0].mxu0  ;;  %v733_v57 = vpop.f32.mrb[0].mxu1 }
 0x142   : > { %v693_v58 = vadd.f32 %v692_v56, %v359_v55  ;;  %v734_v59 = vadd.f32 %v733_v57, %v359_v55  ;;  %v694_v60 = vpop.f32.mrb[1].mxu0  ;;  %v735_v61 = vpop.f32.mrb[1].mxu1 }
 0x143   : > { %v695_v62 = vadd.f32 %v694_v60, %v359_v55  ;;  %v736_v63 = vadd.f32 %v735_v61, %v359_v55  ;;  %v696_v0 = vpop.f32.mrb[2].mxu0  ;;  %v737_v1 = vpop.f32.mrb[2].mxu1 }
 0x144   : > { %v697_v54 = vpop.f32.mrb[3].mxu0  ;;  %v738_v2 = vpop.f32.mrb[3].mxu1 }
 0x145   : > { %v744_v3 = vcombine.low %v693_v58, %v695_v62  ;;  %v745_v4 = vcombine.low %v734_v59, %v736_v63 }
 0x147   : > { %748 = vst [vmem:[%s297_s11] sm:$0x77] %v744_v3  ;;  %749 = vst [vmem:[%s297_s11 + $0x8] sm:$0x77] %v745_v4 }
 0x148 PF: > { %p10_p9 = scmp.ge.s32.totalorder %s1057_s16, 6   ;;  %s1276_s12 = smov %s1013_s13 }
 0x149   : > { %s1277_s13 = smov %s1066_s19  ;;  %s1278_s14 = smov %s1057_s16 }
 0x14a   :  { %12 = sbr.rel (!%p10_p9) target bundleno = 2 (0x2), region = 90 }

</bundles_post_ra>
